<compile_context>
chip_gen: v6e
topology: v6e:2x2x1
jax: 0.10.0
libtpu: 0.0.40
codegen_flags: <defaults>
</compile_context>

<pallas_src>
import jax
import jax.numpy as jnp
from jax import lax
from jax.experimental import pallas as pl
from jax.experimental.pallas import tpu as pltpu

INPUT_SIZE = 3 * 32 * 32          # 3072
NUM_CLASSES = 10
HIDDEN = (512, 256, 256, 128)
HEAD_PAD = 128                    # lane-dense padded head width
BN_EPS = 1e-5
TB_MAX = 512                      # max batch-tile rows per grid step

_MACS_PER_ROW = (INPUT_SIZE * 512 + 512 * 256 + 256 * 256 + 256 * 128
                 + 128 * HEAD_PAD)
_WEIGHT_BYTES = 2 * _MACS_PER_ROW + 4 * (512 + 256 + 256 + 128 + HEAD_PAD)


def cifar_mlp_kernel(
    x_ref,
    w1_ref, b1_ref,
    w2_ref, b2_ref,
    w3_ref, b3_ref,
    w4_ref, b4_ref,
    w5_ref, b5_ref,
    o_ref,
):
    # Per-tile bf16 cast in VMEM (x is DMA'd as f32; no wrapper-side cast pass).
    x = x_ref[...].astype(jnp.bfloat16)

    # Each block: (BN-folded) Linear + ReLU. bf16 operands, f32 MXU accumulation,
    # bias add as a direct (1,N)+(TB,N) broadcast (no explicit broadcast_to).
    h = jnp.dot(x, w1_ref[...], preferred_element_type=jnp.float32) + b1_ref[...]
    h = jnp.maximum(h, 0.0).astype(jnp.bfloat16)

    h = jnp.dot(h, w2_ref[...], preferred_element_type=jnp.float32) + b2_ref[...]
    h = jnp.maximum(h, 0.0).astype(jnp.bfloat16)          # Dropout(0.2) == id in eval

    h = jnp.dot(h, w3_ref[...], preferred_element_type=jnp.float32) + b3_ref[...]
    h = jnp.maximum(h, 0.0).astype(jnp.bfloat16)          # Dropout(0.2) == id in eval

    h = jnp.dot(h, w4_ref[...], preferred_element_type=jnp.float32) + b4_ref[...]
    h = jnp.maximum(h, 0.0).astype(jnp.bfloat16)

    # Padded head: (TB, 128) unmasked lane-dense store; real logits are cols [:10].
    o_ref[...] = jnp.dot(h, w5_ref[...], preferred_element_type=jnp.float32) + b5_ref[...]


def init_params(key):
    """Deterministic parameters matching the PyTorch module's shapes.

    Linear weights are stored transposed, i.e. (in, out), so the kernel does
    x @ W.  BatchNorm params are stored as (1, N) rows.  All in f32; folding /
    bf16 casting happens once in fold_params().
    """
    dims = (INPUT_SIZE,) + HIDDEN + (NUM_CLASSES,)
    params = []
    keys = jax.random.split(key, len(dims) - 1)
    for li, (fan_in, fan_out) in enumerate(zip(dims[:-1], dims[1:])):
        kw, kb = jax.random.split(keys[li])
        bound = 1.0 / (fan_in ** 0.5)
        w = jax.random.uniform(kw, (fan_in, fan_out), jnp.float32, -bound, bound)
        b = jax.random.uniform(kb, (1, fan_out), jnp.float32, -bound, bound)
        params.extend([w, b])
        if li < len(HIDDEN):  # BN after every linear except the head
            params.extend([
                jnp.ones((1, fan_out), jnp.float32),    # gamma
                jnp.zeros((1, fan_out), jnp.float32),   # beta
                jnp.zeros((1, fan_out), jnp.float32),   # running_mean
                jnp.ones((1, fan_out), jnp.float32),    # running_var
            ])
    return params


def fold_params(params):
    """Fold eval-mode BN into each Linear, cast weights to bf16, pad the head.

    Call ONCE (outside the per-call forward) and reuse the result; this keeps
    the f32 master weights and the fold/cast/pad passes out of the per-call
    HBM traffic.
    """
    folded = []
    i = 0
    for _ in range(len(HIDDEN)):
        w, b, gamma, beta, mean, var = params[i:i + 6]
        i += 6
        scale = gamma * lax.rsqrt(var + BN_EPS)               # (1, N)
        folded.append((w * scale).astype(jnp.bfloat16))       # W' (in, N) bf16
        folded.append((b - mean) * scale + beta)              # b' (1, N) f32
    w5, b5 = params[i:i + 2]
    w5p = jnp.zeros((w5.shape[0], HEAD_PAD), jnp.float32).at[:, :NUM_CLASSES].set(w5)
    b5p = jnp.zeros((1, HEAD_PAD), jnp.float32).at[:, :NUM_CLASSES].set(b5)
    folded.append(w5p.astype(jnp.bfloat16))
    folded.append(b5p)
    return folded


def _round_up(n, m):
    return ((n + m - 1) // m) * m


def _pick_batch_tile(b):
    """Batch-tile rows per grid step.

    Multiple of 16 sublanes (bf16 packing), capped at TB_MAX, and chosen so the
    grid has >= 2 steps whenever the batch allows it (keeps both v7x
    TensorCores busy on the "parallel" batch axis).
    """
    if b <= 16:
        return 16
    n_tiles = max(2, -(-b // TB_MAX))
    return min(TB_MAX, _round_up(-(-b // n_tiles), 16))


@jax.jit
def cifar_nn_forward(x_nchw, folded_params):
    """Eval-mode forward.  `folded_params` must come from fold_params()."""
    b = x_nchw.shape[0]
    x_flat = x_nchw.reshape(b, INPUT_SIZE)     # nn.Flatten (row-major); stays f32

    tb = _pick_batch_tile(b)
    b_pad = _round_up(b, tb)
    if b_pad != b:
        x_flat = jnp.pad(x_flat, ((0, b_pad - b), (0, 0)))

    def resident(shape):
        # Full-array block, constant index_map -> DMA'd once, stays in VMEM
        # across grid steps.  (pipeline_mode=pl.Buffered(1) would drop the dead
        # second buffer if TB is ever pushed past 512 on v7x's 64 MiB VMEM.)
        return pl.BlockSpec(shape, lambda i: (0, 0))

    in_specs = [pl.BlockSpec((tb, INPUT_SIZE), lambda i: (i, 0))]
    in_specs += [resident(a.shape) for a in folded_params]

    cost = pl.CostEstimate(
        flops=2 * b_pad * _MACS_PER_ROW,
        transcendentals=0,
        bytes_accessed=b_pad * INPUT_SIZE * 4 + _WEIGHT_BYTES + b_pad * HEAD_PAD * 4,
    )

    out = pl.pallas_call(
        cifar_mlp_kernel,
        out_shape=jax.ShapeDtypeStruct((b_pad, HEAD_PAD), jnp.float32),
        grid=(b_pad // tb,),
        in_specs=in_specs,
        out_specs=pl.BlockSpec((tb, HEAD_PAD), lambda i: (i, 0)),
        compiler_params=pltpu.CompilerParams(
            dimension_semantics=("parallel",),   # megacore sharding on v7x
            vmem_limit_bytes=48 << 20,           # TB=512 uses ~20 MiB; headroom kept
        ),
        cost_estimate=cost,
    )(x_flat, *folded_params)

    return out[:b, :NUM_CLASSES]


if __name__ == "__main__":
    key = jax.random.PRNGKey(0)
    k_x, k_p = jax.random.split(key)

    # CIFAR-shaped batch: (batch=2, channels=3, 32, 32) -> flatten = 3072.
    x = jax.random.normal(k_x, (2, 3, 32, 32), dtype=jnp.float32)
    params = init_params(k_p)

    # One-time parameter preparation (BN fold + bf16 cast + head pad), reused
    # across every forward call.
    folded = fold_params(params)

    logits = cifar_nn_forward(x, folded)
    jax.block_until_ready(logits)

    assert logits.shape == (2, NUM_CLASSES)
    assert logits.dtype == jnp.float32
    assert bool(jnp.all(jnp.isfinite(logits)))
    print("KERNEL_OK")
</pallas_src>

<mosaic_0001>
module attributes {stable_mosaic.version = 11 : i64} {
  func.func @cifar_mlp_kernel(%arg0: i32, %arg1: memref<16x3072xf32, #tpu.memory_space<vmem>>, %arg2: memref<3072x512xbf16, #tpu.memory_space<vmem>>, %arg3: memref<1x512xf32, #tpu.memory_space<vmem>>, %arg4: memref<512x256xbf16, #tpu.memory_space<vmem>>, %arg5: memref<1x256xf32, #tpu.memory_space<vmem>>, %arg6: memref<256x256xbf16, #tpu.memory_space<vmem>>, %arg7: memref<1x256xf32, #tpu.memory_space<vmem>>, %arg8: memref<256x128xbf16, #tpu.memory_space<vmem>>, %arg9: memref<1x128xf32, #tpu.memory_space<vmem>>, %arg10: memref<128x128xbf16, #tpu.memory_space<vmem>>, %arg11: memref<1x128xf32, #tpu.memory_space<vmem>>, %arg12: memref<16x128xf32, #tpu.memory_space<vmem>>) attributes {dimension_semantics = [#tpu.dimension_semantics<parallel>], iteration_bounds = array<i64: 1>, scalar_prefetch = 0 : i64, scratch_operands = 0 : i64, tpu.core_type = #tpu.core_type<tc>, window_params = [{transform_indices = @transform_0, window_bounds = array<i64: 16, 3072>}, {pipeline_mode = #tpu.pipeline_mode<synchronous>, transform_indices = @transform_1, window_bounds = array<i64: 3072, 512>}, {pipeline_mode = #tpu.pipeline_mode<synchronous>, transform_indices = @transform_2, window_bounds = array<i64: 1, 512>}, {pipeline_mode = #tpu.pipeline_mode<synchronous>, transform_indices = @transform_3, window_bounds = array<i64: 512, 256>}, {pipeline_mode = #tpu.pipeline_mode<synchronous>, transform_indices = @transform_4, window_bounds = array<i64: 1, 256>}, {pipeline_mode = #tpu.pipeline_mode<synchronous>, transform_indices = @transform_5, window_bounds = array<i64: 256, 256>}, {pipeline_mode = #tpu.pipeline_mode<synchronous>, transform_indices = @transform_6, window_bounds = array<i64: 1, 256>}, {pipeline_mode = #tpu.pipeline_mode<synchronous>, transform_indices = @transform_7, window_bounds = array<i64: 256, 128>}, {pipeline_mode = #tpu.pipeline_mode<synchronous>, transform_indices = @transform_8, window_bounds = array<i64: 1, 128>}, {pipeline_mode = #tpu.pipeline_mode<synchronous>, transform_indices = @transform_9, window_bounds = array<i64: 128, 128>}, {pipeline_mode = #tpu.pipeline_mode<synchronous>, transform_indices = @transform_10, window_bounds = array<i64: 1, 128>}, {transform_indices = @transform_11, window_bounds = array<i64: 16, 128>}]} {
    %c0 = arith.constant 0 : index
    %c0_0 = arith.constant 0 : index
    %0 = vector.load %arg1[%c0, %c0_0] : memref<16x3072xf32, #tpu.memory_space<vmem>>, vector<16x3072xf32>
    %1 = arith.truncf %0 : vector<16x3072xf32> to vector<16x3072xbf16>
    %c0_1 = arith.constant 0 : index
    %c0_2 = arith.constant 0 : index
    %2 = vector.load %arg2[%c0_1, %c0_2] : memref<3072x512xbf16, #tpu.memory_space<vmem>>, vector<3072x512xbf16>
    %cst = arith.constant dense<0.000000e+00> : vector<16x512xf32>
    %3 = tpu.matmul %1, %2, %cst {dimension_numbers = #tpu.dot_dimension_numbers<[1], [0], [0], [1], [0, 0, 1, 1], [], []>} : vector<16x3072xbf16>, vector<3072x512xbf16>, vector<16x512xf32> -> vector<16x512xf32>
    %c0_3 = arith.constant 0 : index
    %c0_4 = arith.constant 0 : index
    %4 = vector.load %arg3[%c0_3, %c0_4] : memref<1x512xf32, #tpu.memory_space<vmem>>, vector<1x512xf32>
    %5 = vector.broadcast %4 : vector<1x512xf32> to vector<16x512xf32>
    %6 = arith.addf %3, %5 : vector<16x512xf32>
    %cst_5 = arith.constant 0.000000e+00 : f32
    %7 = vector.broadcast %cst_5 : f32 to vector<16x512xf32>
    %8 = arith.maximumf %6, %7 : vector<16x512xf32>
    %9 = arith.truncf %8 : vector<16x512xf32> to vector<16x512xbf16>
    %c0_6 = arith.constant 0 : index
    %c0_7 = arith.constant 0 : index
    %10 = vector.load %arg4[%c0_6, %c0_7] : memref<512x256xbf16, #tpu.memory_space<vmem>>, vector<512x256xbf16>
    %cst_8 = arith.constant dense<0.000000e+00> : vector<16x256xf32>
    %11 = tpu.matmul %9, %10, %cst_8 {dimension_numbers = #tpu.dot_dimension_numbers<[1], [0], [0], [1], [0, 0, 1, 1], [], []>} : vector<16x512xbf16>, vector<512x256xbf16>, vector<16x256xf32> -> vector<16x256xf32>
    %c0_9 = arith.constant 0 : index
    %c0_10 = arith.constant 0 : index
    %12 = vector.load %arg5[%c0_9, %c0_10] : memref<1x256xf32, #tpu.memory_space<vmem>>, vector<1x256xf32>
    %13 = vector.broadcast %12 : vector<1x256xf32> to vector<16x256xf32>
    %14 = arith.addf %11, %13 : vector<16x256xf32>
    %cst_11 = arith.constant 0.000000e+00 : f32
    %15 = vector.broadcast %cst_11 : f32 to vector<16x256xf32>
    %16 = arith.maximumf %14, %15 : vector<16x256xf32>
    %17 = arith.truncf %16 : vector<16x256xf32> to vector<16x256xbf16>
    %c0_12 = arith.constant 0 : index
    %c0_13 = arith.constant 0 : index
    %18 = vector.load %arg6[%c0_12, %c0_13] : memref<256x256xbf16, #tpu.memory_space<vmem>>, vector<256x256xbf16>
    %cst_14 = arith.constant dense<0.000000e+00> : vector<16x256xf32>
    %19 = tpu.matmul %17, %18, %cst_14 {dimension_numbers = #tpu.dot_dimension_numbers<[1], [0], [0], [1], [0, 0, 1, 1], [], []>} : vector<16x256xbf16>, vector<256x256xbf16>, vector<16x256xf32> -> vector<16x256xf32>
    %c0_15 = arith.constant 0 : index
    %c0_16 = arith.constant 0 : index
    %20 = vector.load %arg7[%c0_15, %c0_16] : memref<1x256xf32, #tpu.memory_space<vmem>>, vector<1x256xf32>
    %21 = vector.broadcast %20 : vector<1x256xf32> to vector<16x256xf32>
    %22 = arith.addf %19, %21 : vector<16x256xf32>
    %cst_17 = arith.constant 0.000000e+00 : f32
    %23 = vector.broadcast %cst_17 : f32 to vector<16x256xf32>
    %24 = arith.maximumf %22, %23 : vector<16x256xf32>
    %25 = arith.truncf %24 : vector<16x256xf32> to vector<16x256xbf16>
    %c0_18 = arith.constant 0 : index
    %c0_19 = arith.constant 0 : index
    %26 = vector.load %arg8[%c0_18, %c0_19] : memref<256x128xbf16, #tpu.memory_space<vmem>>, vector<256x128xbf16>
    %cst_20 = arith.constant dense<0.000000e+00> : vector<16x128xf32>
    %27 = tpu.matmul %25, %26, %cst_20 {dimension_numbers = #tpu.dot_dimension_numbers<[1], [0], [0], [1], [0, 0, 1, 1], [], []>} : vector<16x256xbf16>, vector<256x128xbf16>, vector<16x128xf32> -> vector<16x128xf32>
    %c0_21 = arith.constant 0 : index
    %c0_22 = arith.constant 0 : index
    %28 = vector.load %arg9[%c0_21, %c0_22] : memref<1x128xf32, #tpu.memory_space<vmem>>, vector<1x128xf32>
    %29 = vector.broadcast %28 : vector<1x128xf32> to vector<16x128xf32>
    %30 = arith.addf %27, %29 : vector<16x128xf32>
    %cst_23 = arith.constant 0.000000e+00 : f32
    %31 = vector.broadcast %cst_23 : f32 to vector<16x128xf32>
    %32 = arith.maximumf %30, %31 : vector<16x128xf32>
    %33 = arith.truncf %32 : vector<16x128xf32> to vector<16x128xbf16>
    %c0_24 = arith.constant 0 : index
    %c0_25 = arith.constant 0 : index
    %34 = vector.load %arg10[%c0_24, %c0_25] : memref<128x128xbf16, #tpu.memory_space<vmem>>, vector<128x128xbf16>
    %cst_26 = arith.constant dense<0.000000e+00> : vector<16x128xf32>
    %35 = tpu.matmul %33, %34, %cst_26 {dimension_numbers = #tpu.dot_dimension_numbers<[1], [0], [0], [1], [0, 0, 1, 1], [], []>} : vector<16x128xbf16>, vector<128x128xbf16>, vector<16x128xf32> -> vector<16x128xf32>
    %c0_27 = arith.constant 0 : index
    %c0_28 = arith.constant 0 : index
    %36 = vector.load %arg11[%c0_27, %c0_28] : memref<1x128xf32, #tpu.memory_space<vmem>>, vector<1x128xf32>
    %37 = vector.broadcast %36 : vector<1x128xf32> to vector<16x128xf32>
    %38 = arith.addf %35, %37 : vector<16x128xf32>
    %c0_29 = arith.constant 0 : index
    %c0_30 = arith.constant 0 : index
    %39 = vector.load %arg12[%c0_29, %c0_30] : memref<16x128xf32, #tpu.memory_space<vmem>>, vector<16x128xf32>
    tpu.vector_store %arg12[%c0_29, %c0_30], %38 {strides = array<i32>} : memref<16x128xf32, #tpu.memory_space<vmem>>, vector<16x128xf32>,
    return
  }
  func.func @transform_0(%arg0: i32) -> (i32, i32) {
    %c0_i32 = arith.constant 0 : i32
    %c0_i32_0 = arith.constant 0 : i32
    return %arg0, %c0_i32 : i32, i32
  }
  func.func @transform_1(%arg0: i32) -> (i32, i32) {
    %c0_i32 = arith.constant 0 : i32
    %c0_i32_0 = arith.constant 0 : i32
    %c0_i32_1 = arith.constant 0 : i32
    return %c0_i32, %c0_i32_0 : i32, i32
  }
  func.func @transform_2(%arg0: i32) -> (i32, i32) {
    %c0_i32 = arith.constant 0 : i32
    %c0_i32_0 = arith.constant 0 : i32
    %c0_i32_1 = arith.constant 0 : i32
    return %c0_i32, %c0_i32_0 : i32, i32
  }
  func.func @transform_3(%arg0: i32) -> (i32, i32) {
    %c0_i32 = arith.constant 0 : i32
    %c0_i32_0 = arith.constant 0 : i32
    %c0_i32_1 = arith.constant 0 : i32
    return %c0_i32, %c0_i32_0 : i32, i32
  }
  func.func @transform_4(%arg0: i32) -> (i32, i32) {
    %c0_i32 = arith.constant 0 : i32
    %c0_i32_0 = arith.constant 0 : i32
    %c0_i32_1 = arith.constant 0 : i32
    return %c0_i32, %c0_i32_0 : i32, i32
  }
  func.func @transform_5(%arg0: i32) -> (i32, i32) {
    %c0_i32 = arith.constant 0 : i32
    %c0_i32_0 = arith.constant 0 : i32
    %c0_i32_1 = arith.constant 0 : i32
    return %c0_i32, %c0_i32_0 : i32, i32
  }
  func.func @transform_6(%arg0: i32) -> (i32, i32) {
    %c0_i32 = arith.constant 0 : i32
    %c0_i32_0 = arith.constant 0 : i32
    %c0_i32_1 = arith.constant 0 : i32
    return %c0_i32, %c0_i32_0 : i32, i32
  }
  func.func @transform_7(%arg0: i32) -> (i32, i32) {
    %c0_i32 = arith.constant 0 : i32
    %c0_i32_0 = arith.constant 0 : i32
    %c0_i32_1 = arith.constant 0 : i32
    return %c0_i32, %c0_i32_0 : i32, i32
  }
  func.func @transform_8(%arg0: i32) -> (i32, i32) {
    %c0_i32 = arith.constant 0 : i32
    %c0_i32_0 = arith.constant 0 : i32
    %c0_i32_1 = arith.constant 0 : i32
    return %c0_i32, %c0_i32_0 : i32, i32
  }
  func.func @transform_9(%arg0: i32) -> (i32, i32) {
    %c0_i32 = arith.constant 0 : i32
    %c0_i32_0 = arith.constant 0 : i32
    %c0_i32_1 = arith.constant 0 : i32
    return %c0_i32, %c0_i32_0 : i32, i32
  }
  func.func @transform_10(%arg0: i32) -> (i32, i32) {
    %c0_i32 = arith.constant 0 : i32
    %c0_i32_0 = arith.constant 0 : i32
    %c0_i32_1 = arith.constant 0 : i32
    return %c0_i32, %c0_i32_0 : i32, i32
  }
  func.func @transform_11(%arg0: i32) -> (i32, i32) {
    %c0_i32 = arith.constant 0 : i32
    %c0_i32_0 = arith.constant 0 : i32
    return %arg0, %c0_i32 : i32, i32
  }
}

</mosaic_0001>

<bundles_post_ra>
// kernel: cifar_nn_forward.1
= control target key start
LH: loop header
LB: loop body
LE: loop exit
PB: predicated region body
PF: predicated region fallthrough
CT: control target
= control target key end

     0   :  { %16 = vsyncpa [#allocation3], 0  ;;  %s9966_s0 = inlined_call_operand.vmem [shape: f32[16,3072], index: 0, kind: input, shape index: {}]   ;;  %s9967_s1 = inlined_call_operand.hbm [shape: bf16[3072,512], index: 1, kind: input, shape index: {}]   ;;  %s9968_s2 = inlined_call_operand.hbm [shape: f32[1,512], index: 2, kind: input, shape index: {}]   ;;  %s9969_s3 = inlined_call_operand.hbm [shape: bf16[512,256], index: 3, kind: input, shape index: {}]   ;;  %s9970_s4 = inlined_call_operand.hbm [shape: f32[1,256], index: 4, kind: input, shape index: {}]   ;;  %s9971_s5 = inlined_call_operand.hbm [shape: bf16[256,256], index: 5, kind: input, shape index: {}]   ;;  %s9972_s6 = inlined_call_operand.hbm [shape: f32[1,256], index: 6, kind: input, shape index: {}]   ;;  %s9973_s7 = inlined_call_operand.hbm [shape: bf16[256,128], index: 7, kind: input, shape index: {}]   ;;  %s9974_s8 = inlined_call_operand.hbm [shape: f32[1,128], index: 8, kind: input, shape index: {}]   ;;  %s9975_s9 = inlined_call_operand.hbm [shape: bf16[128,128], index: 9, kind: input, shape index: {}]   ;;  %s9976_s10 = inlined_call_operand.hbm [shape: f32[1,128], index: 10, kind: input, shape index: {}]   ;;  %s9977_s11 = inlined_call_operand.vmem [shape: f32[16,128], index: 11, kind: output, shape index: {}]  }
   0x1   :  { %17 = vsyncpa [#allocation5], 0 }
   0x2   :  { %18 = vsyncpa [#allocation8], 0 }
   0x3   :  { %19 = vsyncpa [#allocation11], 0 }
   0x4   :  { %20 = vsyncpa [#allocation14], 0 }
   0x5   :  { %21 = vsyncpa [#allocation17], 0  ;;  %s9447_s17 = smov [#allocation4]   ;;  %s9448_s19 = smov [#allocation7]  }
   0x6   :  { %s42_s18 = sshll.u32 %s9447_s17, 4  ;;  %s64_s20 = sshll.u32 %s9448_s19, 4  ;;  %s43_s18 = int_to_ptr.vmem [resolvable:$true] %s42_s18  ;;  %s65_s20 = int_to_ptr.vmem [resolvable:$true] %s64_s20 }
   0x7   :  { %s9243_s21 = scalar_lea.vmem %s43_s18, 64  ;;  %p9248_p1 = scmp.lt.s32.totalorder %s43_s18, %s43_s18 }
   0x8   :  { %p9244_p0 = scmp.ne.s32.totalorder %s43_s18, %s9243_s21  ;;  %p9249_p2 = scmp.lt.s32.totalorder %s9243_s21, %s9243_s21 }
   0xa   :  { %p9250_p3 = por %p9249_p2, %p9248_p1 }
   0xc   :  { %p9251_p4 = pnand %p9250_p3, %p9244_p0 }
   0xe   :  { %9254 = shalt.err (!%p9251_p4)
}
   0xf   :  { %45 = dma.hbm_to_vmem [thread:$0]  %s9968_s2, 64, %s43_s18, [#allocation5]  }
  0x10   :  { %s9263_s24 = scalar_lea.vmem %s65_s20, 32  ;;  %p9268_p6 = scmp.lt.s32.totalorder %s65_s20, %s65_s20 }
  0x11   :  { %p9264_p5 = scmp.ne.s32.totalorder %s65_s20, %s9263_s24  ;;  %p9269_p7 = scmp.lt.s32.totalorder %s9263_s24, %s9263_s24 }
  0x13   :  { %p9270_p8 = por %p9269_p7, %p9268_p6 }
  0x15   :  { %p9271_p9 = pnand %p9270_p8, %p9264_p5 }
  0x17   :  { %9274 = shalt.err (!%p9271_p9)
}
  0x18   :  { %67 = dma.hbm_to_vmem [thread:$0]  %s9970_s4, 32, %s65_s20, [#allocation8]  }
  0x19   :  { %s9449_s27 = smov [#allocation10]   ;;  %s9450_s29 = smov [#allocation13]  }
  0x1a   :  { %s86_s28 = sshll.u32 %s9449_s27, 4  ;;  %s108_s30 = sshll.u32 %s9450_s29, 4  ;;  %s87_s28 = int_to_ptr.vmem [resolvable:$true] %s86_s28  ;;  %s109_s30 = int_to_ptr.vmem [resolvable:$true] %s108_s30 }
  0x1b   :  { %s9283_s12 = scalar_lea.vmem %s87_s28, 32  ;;  %p9288_p11 = scmp.lt.s32.totalorder %s87_s28, %s87_s28 }
  0x1c   :  { %p9284_p10 = scmp.ne.s32.totalorder %s87_s28, %s9283_s12  ;;  %p9289_p12 = scmp.lt.s32.totalorder %s9283_s12, %s9283_s12 }
  0x1e   :  { %p9290_p13 = por %p9289_p12, %p9288_p11 }
  0x20   :  { %p9291_p0 = pnand %p9290_p13, %p9284_p10 }
  0x22   :  { %9294 = shalt.err (!%p9291_p0)
}
  0x23   :  { %89 = dma.hbm_to_vmem [thread:$0]  %s9972_s6, 32, %s87_s28, [#allocation11]  }
  0x24   :  { %s9303_s14 = scalar_lea.vmem %s109_s30, 16  ;;  %s9307_s4 = scalar_lea.vmem %s109_s30, 32 }
  0x25   :  { %p9304_p1 = scmp.ne.s32.totalorder %s109_s30, %s9303_s14  ;;  %p9308_p2 = scmp.lt.s32.totalorder %s109_s30, %s109_s30 }
  0x26   :  { %p9309_p3 = scmp.lt.s32.totalorder %s9307_s4, %s9303_s14 }
  0x28   :  { %p9310_p4 = por %p9309_p3, %p9308_p2 }
  0x2a   :  { %p9311_p5 = pnand %p9310_p4, %p9304_p1 }
  0x2c   :  { %9314 = shalt.err (!%p9311_p5)
}
  0x2d   :  { %111 = dma.hbm_to_vmem [thread:$0]  %s9974_s8, 16, %s109_s30, [#allocation14]  }
  0x2e   :  { %s9451_s17 = smov [#allocation2]  }
  0x2f   :  { %s29_s18 = sshll.u32 %s9451_s17, 4  ;;  %s30_s18 = int_to_ptr.vmem [resolvable:$true] %s29_s18 }
  0x30   :  { %s9323_s19 = scalar_lea.vmem %s30_s18, 98304  ;;  %p9328_p7 = scmp.lt.s32.totalorder %s30_s18, %s30_s18 }
  0x31   :  { %p9324_p6 = scmp.ne.s32.totalorder %s30_s18, %s9323_s19  ;;  %p9329_p8 = scmp.lt.s32.totalorder %s9323_s19, %s9323_s19 }
  0x33   :  { %p9330_p9 = por %p9329_p8, %p9328_p7 }
  0x35   :  { %p9331_p10 = pnand %p9330_p9, %p9324_p6 }
  0x37   :  { %9334 = shalt.err (!%p9331_p10)
}
  0x38   :  { %s9452_s6 = smov 256   ;;  %s9453_s20 = smov 16  }
  0x39   :  { %35 = dma.hbm_to_vmem [thread:$0]  %s9967_s1, 98304, %s30_s18, [#allocation3], %s9452_s6, %s9452_s6, %s9453_s20  }
  0x3a   :  { %s9454_s23 = smov [#allocation6]  }
  0x3b   :  { %s51_s24 = sshll.u32 %s9454_s23, 4  ;;  %s52_s24 = int_to_ptr.vmem [resolvable:$true] %s51_s24 }
  0x3c   :  { %s9343_s8 = scalar_lea.vmem %s52_s24, 8192  ;;  %p9348_p12 = scmp.lt.s32.totalorder %s52_s24, %s52_s24 }
  0x3d   :  { %p9344_p11 = scmp.ne.s32.totalorder %s52_s24, %s9343_s8  ;;  %p9349_p13 = scmp.lt.s32.totalorder %s9343_s8, %s9343_s8 }
  0x3f   :  { %p9350_p0 = por %p9349_p13, %p9348_p12 }
  0x41   :  { %p9351_p1 = pnand %p9350_p0, %p9344_p11 }
  0x43   :  { %9354 = shalt.err (!%p9351_p1)
}
  0x44   :  { %s9455_s25 = smov 128   ;;  %s9456_s26 = smov 8  }
  0x45   :  { %57 = dma.hbm_to_vmem [thread:$0]  %s9969_s3, 8192, %s52_s24, [#allocation5], %s9455_s25, %s9455_s25, %s9456_s26  }
  0x46   :  { %s9457_s29 = smov [#allocation9]   ;;  %s9458_s12 = smov [#allocation12]  }
  0x47   :  { %s73_s30 = sshll.u32 %s9457_s29, 4  ;;  %s95_s1 = sshll.u32 %s9458_s12, 4  ;;  %s74_s30 = int_to_ptr.vmem [resolvable:$true] %s73_s30  ;;  %s96_s1 = int_to_ptr.vmem [resolvable:$true] %s95_s1 }
  0x48   :  { %s9363_s2 = scalar_lea.vmem %s74_s30, 4096  ;;  %p9368_p3 = scmp.lt.s32.totalorder %s74_s30, %s74_s30 }
  0x49   :  { %p9364_p2 = scmp.ne.s32.totalorder %s74_s30, %s9363_s2  ;;  %p9369_p4 = scmp.lt.s32.totalorder %s9363_s2, %s9363_s2 }
  0x4b   :  { %p9370_p5 = por %p9369_p4, %p9368_p3 }
  0x4d   :  { %p9371_p6 = pnand %p9370_p5, %p9364_p2 }
  0x4f   :  { %9374 = shalt.err (!%p9371_p6)
}
  0x50   :  { %79 = dma.hbm_to_vmem [thread:$0]  %s9971_s5, 4096, %s74_s30, [#allocation8], %s9455_s25, %s9455_s25, %s9456_s26  }
  0x51   :  { %s9383_s4 = scalar_lea.vmem %s96_s1, 2048  ;;  %p9388_p8 = scmp.lt.s32.totalorder %s96_s1, %s96_s1 }
  0x52   :  { %p9384_p7 = scmp.ne.s32.totalorder %s96_s1, %s9383_s4  ;;  %p9389_p9 = scmp.lt.s32.totalorder %s9383_s4, %s9383_s4 }
  0x54   :  { %p9390_p10 = por %p9389_p9, %p9388_p8 }
  0x56   :  { %p9391_p11 = pnand %p9390_p10, %p9384_p7 }
  0x58   :  { %9394 = shalt.err (!%p9391_p11)
}
  0x59   :  { %s9459_s3 = smov 64   ;;  %s9460_s15 = smov 4  }
  0x5a   :  { %101 = dma.hbm_to_vmem [thread:$0]  %s9973_s7, 2048, %s96_s1, [#allocation11], %s9459_s3, %s9459_s3, %s9460_s15  }
  0x5b   :  { %s9461_s18 = smov [#allocation15]   ;;  %s9462_s6 = smov [#allocation16]  }
  0x5c   :  { %s117_s19 = sshll.u32 %s9461_s18, 4  ;;  %s130_s20 = sshll.u32 %s9462_s6, 4  ;;  %s118_s19 = int_to_ptr.vmem [resolvable:$true] %s117_s19  ;;  %s131_s20 = int_to_ptr.vmem [resolvable:$true] %s130_s20 }
  0x5d   :  { %s9403_s5 = scalar_lea.vmem %s118_s19, 1024  ;;  %p9408_p13 = scmp.lt.s32.totalorder %s118_s19, %s118_s19 }
  0x5e   :  { %p9404_p12 = scmp.ne.s32.totalorder %s118_s19, %s9403_s5  ;;  %p9409_p0 = scmp.lt.s32.totalorder %s9403_s5, %s9403_s5 }
  0x60   :  { %p9410_p1 = por %p9409_p0, %p9408_p13 }
  0x62   :  { %p9411_p2 = pnand %p9410_p1, %p9404_p12 }
  0x64   :  { %9414 = shalt.err (!%p9411_p2)
}
  0x65   :  { %123 = dma.hbm_to_vmem [thread:$0]  %s9975_s9, 1024, %s118_s19, [#allocation14], %s9459_s3, %s9459_s3, %s9460_s15  }
  0x66   :  { %s9423_s23 = scalar_lea.vmem %s131_s20, 16  ;;  %s9427_s7 = scalar_lea.vmem %s131_s20, 32 }
  0x67   :  { %p9424_p3 = scmp.ne.s32.totalorder %s131_s20, %s9423_s23  ;;  %p9428_p4 = scmp.lt.s32.totalorder %s131_s20, %s131_s20 }
  0x68   :  { %p9429_p5 = scmp.lt.s32.totalorder %s9427_s7, %s9423_s23 }
  0x6a   :  { %p9430_p6 = por %p9429_p5, %p9428_p4 }
  0x6c   :  { %p9431_p7 = pnand %p9430_p6, %p9424_p3 }
  0x6e   :  { %9434 = shalt.err (!%p9431_p7)
}
  0x6f   :  { %133 = dma.hbm_to_vmem [thread:$0]  %s9976_s10, 16, %s131_s20, [#allocation17]  }
  0x70   :  { %9435 = dma.done.wait [#allocation3], 98304  }
  0x71   :  { %9436 = vsyncadd [#allocation3], 4294868992 }
  0x72   :  { %9437 = dma.done.wait [#allocation5], 8256  }
  0x73   :  { %9438 = vsyncadd [#allocation5], 4294959040 }
  0x74   :  { %9439 = dma.done.wait [#allocation8], 4128  }
  0x75   :  { %9440 = vsyncadd [#allocation8], 4294963168 }
  0x76   :  { %9441 = dma.done.wait [#allocation11], 2080  }
  0x77   :  { %9442 = vsyncadd [#allocation11], 4294965216 }
  0x78   :  { %9443 = dma.done.wait [#allocation14], 1040  }
  0x79   :  { %9444 = vsyncadd [#allocation14], 4294966256 }
  0x7a   :  { %9445 = dma.done.wait [#allocation17], 16  }
  0x7b   :  { %9446 = vsyncadd [#allocation17], 4294967280  ;;  %v7914_v0 = vld [vmem:[#allocation2 + $0xe4] ss:$16 sps:$4 sm:$0xff]   ;;  %v7918_v2 = vld [vmem:[#allocation2 + $0xe0] ss:$16 sps:$4 sm:$0xff]  }
  0x7c   :  { %v7916_v1 = vld [vmem:[#allocation2 + $0x2e4] ss:$16 sps:$4 sm:$0xff]   ;;  %4867 = vmatprep.subr.bf16.mxu0 %v7914_v0  ;;  %v7919_v3 = vld [vmem:[#allocation2 + $0x2e0] ss:$16 sps:$4 sm:$0xff]   ;;  %v166_v46 = vld [vmem:[%s9966_s0 + $0x8] sm:$0xff]  ;;  %vm9464_vm0 = vmmov 0  }
  0x7d   :  { %4910 = vmatprep.subr.bf16.mxu1 %v7916_v1  ;;  %v7920_v4 = vld [vmem:[#allocation2 + $0xc4] ss:$16 sps:$4 sm:$0xff]   ;;  %4868 = vmatpush1.bf16.msra.mxu0 %v7918_v2  ;;  %v7924_v6 = vld [vmem:[#allocation2 + $0xc0] ss:$16 sps:$4 sm:$0xff]   ;;  %v190_v47 = vld [vmem:[%s9966_s0 + $0xc8] sm:$0xff] }
  0x7e   :  { %4911 = vmatpush1.bf16.msra.mxu1 %v7919_v3  ;;  %v7922_v5 = vld [vmem:[#allocation2 + $0x2c4] ss:$16 sps:$4 sm:$0xff]   ;;  %4869 = vmatprep.subr.bf16.mxu0 %v7920_v4  ;;  %v7925_v7 = vld [vmem:[#allocation2 + $0x2c0] ss:$16 sps:$4 sm:$0xff]   ;;  %v168_v48 = vld [vmem:[%s9966_s0 + $0x18] sm:$0xff]  ;;  %v9567_v53 = vpack.c.bf16 %v190_v47, %v166_v46 }
  0x7f   :  { %4912 = vmatprep.subr.bf16.mxu1 %v7922_v5  ;;  %v7926_v8 = vld [vmem:[#allocation2 + $0xa4] ss:$16 sps:$4 sm:$0xff]   ;;  %v7930_v10 = vld [vmem:[#allocation2 + $0xa0] ss:$16 sps:$4 sm:$0xff]   ;;  %v192_v49 = vld [vmem:[%s9966_s0 + $0xd8] sm:$0xff] }
  0x80   :  { %v7928_v9 = vld [vmem:[#allocation2 + $0x2a4] ss:$16 sps:$4 sm:$0xff]   ;;  %v7931_v11 = vld [vmem:[#allocation2 + $0x2a0] ss:$16 sps:$4 sm:$0xff]   ;;  %v9569_v54 = vpack.c.bf16 %v192_v49, %v168_v48  ;;  %4899 = vmatprep.mubr.bf16.mxu0 %v9567_v53  ;;  %v196_v46 = vld [vmem:[%s9966_s0 + $0xf8] sm:$0xff] }
  0x81   :  { %4870 = vmatpush1.bf16.msra.mxu0 %v7924_v6  ;;  %v7932_v12 = vld [vmem:[#allocation2 + $0x84] ss:$16 sps:$4 sm:$0xff]   ;;  %v7936_v14 = vld [vmem:[#allocation2 + $0x80] ss:$16 sps:$4 sm:$0xff]  }
  0x82   :  { %4913 = vmatpush1.bf16.msra.mxu1 %v7925_v7  ;;  %4871 = vmatprep.subr.bf16.mxu0 %v7926_v8  ;;  %v7934_v13 = vld [vmem:[#allocation2 + $0x284] ss:$16 sps:$4 sm:$0xff]   ;;  %v7937_v15 = vld [vmem:[#allocation2 + $0x280] ss:$16 sps:$4 sm:$0xff]  }
  0x83   :  { %4914 = vmatprep.subr.bf16.mxu1 %v7928_v9  ;;  %v7938_v16 = vld [vmem:[#allocation2 + $0x64] ss:$16 sps:$4 sm:$0xff]   ;;  %v7942_v18 = vld [vmem:[#allocation2 + $0x60] ss:$16 sps:$4 sm:$0xff]   ;;  %4942 = vmatprep.mubr.bf16.mxu1 %v9569_v54 }
  0x84   :  { %v7940_v17 = vld [vmem:[#allocation2 + $0x264] ss:$16 sps:$4 sm:$0xff]   ;;  %v7943_v19 = vld [vmem:[#allocation2 + $0x260] ss:$16 sps:$4 sm:$0xff]  }
  0x85   :  { %4872 = vmatpush1.bf16.msra.mxu0 %v7930_v10  ;;  %v7944_v20 = vld [vmem:[#allocation2 + $0x44] ss:$16 sps:$4 sm:$0xff]   ;;  %v7948_v22 = vld [vmem:[#allocation2 + $0x40] ss:$16 sps:$4 sm:$0xff]  }
  0x86   :  { %4915 = vmatpush1.bf16.msra.mxu1 %v7931_v11  ;;  %4873 = vmatprep.subr.bf16.mxu0 %v7932_v12  ;;  %v7946_v21 = vld [vmem:[#allocation2 + $0x244] ss:$16 sps:$4 sm:$0xff]   ;;  %v7949_v23 = vld [vmem:[#allocation2 + $0x240] ss:$16 sps:$4 sm:$0xff]  }
  0x87   :  { %4916 = vmatprep.subr.bf16.mxu1 %v7934_v13  ;;  %v7950_v24 = vld [vmem:[#allocation2 + $0x24] ss:$16 sps:$4 sm:$0xff]   ;;  %v7954_v26 = vld [vmem:[#allocation2 + $0x20] ss:$16 sps:$4 sm:$0xff]  }
  0x88   :  { %v7952_v25 = vld [vmem:[#allocation2 + $0x224] ss:$16 sps:$4 sm:$0xff]   ;;  %v7955_v27 = vld [vmem:[#allocation2 + $0x220] ss:$16 sps:$4 sm:$0xff]  }
  0x89   :  { %4874 = vmatpush1.bf16.msra.mxu0 %v7936_v14  ;;  %v7956_v28 = vld [vmem:[#allocation2 + $0x4] ss:$16 sps:$4 sm:$0xff]   ;;  %v7960_v30 = vld [vmem:[#allocation2] ss:$16 sps:$4 sm:$0xff]  }
  0x8a   :  { %4917 = vmatpush1.bf16.msra.mxu1 %v7937_v15  ;;  %4875 = vmatprep.subr.bf16.mxu0 %v7938_v16  ;;  %v7958_v29 = vld [vmem:[#allocation2 + $0x204] ss:$16 sps:$4 sm:$0xff]   ;;  %v7961_v31 = vld [vmem:[#allocation2 + $0x200] ss:$16 sps:$4 sm:$0xff]  }
  0x8b   :  { %4918 = vmatprep.subr.bf16.mxu1 %v7940_v17  ;;  %v7962_v32 = vld [vmem:[#allocation2 + $0x1e4] ss:$16 sps:$4 sm:$0xff]   ;;  %v7966_v34 = vld [vmem:[#allocation2 + $0x1e0] ss:$16 sps:$4 sm:$0xff]  }
  0x8c   :  { %v7964_v33 = vld [vmem:[#allocation2 + $0x3e4] ss:$16 sps:$4 sm:$0xff]   ;;  %v7967_v35 = vld [vmem:[#allocation2 + $0x3e0] ss:$16 sps:$4 sm:$0xff]  }
  0x8d   :  { %4876 = vmatpush1.bf16.msra.mxu0 %v7942_v18  ;;  %v7968_v36 = vld [vmem:[#allocation2 + $0x1c4] ss:$16 sps:$4 sm:$0xff]   ;;  %v7972_v38 = vld [vmem:[#allocation2 + $0x1c0] ss:$16 sps:$4 sm:$0xff]  }
  0x8e   :  { %4919 = vmatpush1.bf16.msra.mxu1 %v7943_v19  ;;  %4877 = vmatprep.subr.bf16.mxu0 %v7944_v20  ;;  %v7970_v37 = vld [vmem:[#allocation2 + $0x3c4] ss:$16 sps:$4 sm:$0xff]   ;;  %v7973_v39 = vld [vmem:[#allocation2 + $0x3c0] ss:$16 sps:$4 sm:$0xff]  }
  0x8f   :  { %4920 = vmatprep.subr.bf16.mxu1 %v7946_v21  ;;  %v7974_v40 = vld [vmem:[#allocation2 + $0x1a4] ss:$16 sps:$4 sm:$0xff]   ;;  %v7978_v42 = vld [vmem:[#allocation2 + $0x1a0] ss:$16 sps:$4 sm:$0xff]  }
  0x90   :  { %v7976_v41 = vld [vmem:[#allocation2 + $0x3a4] ss:$16 sps:$4 sm:$0xff]   ;;  %v7979_v43 = vld [vmem:[#allocation2 + $0x3a0] ss:$16 sps:$4 sm:$0xff]  }
  0x91   :  { %4878 = vmatpush1.bf16.msra.mxu0 %v7948_v22  ;;  %v7980_v44 = vld [vmem:[#allocation2 + $0x184] ss:$16 sps:$4 sm:$0xff]   ;;  %v7984_v50 = vld [vmem:[#allocation2 + $0x180] ss:$16 sps:$4 sm:$0xff]  }
  0x92   :  { %4921 = vmatpush1.bf16.msra.mxu1 %v7949_v23  ;;  %4879 = vmatprep.subr.bf16.mxu0 %v7950_v24  ;;  %v7982_v45 = vld [vmem:[#allocation2 + $0x384] ss:$16 sps:$4 sm:$0xff]   ;;  %v7985_v51 = vld [vmem:[#allocation2 + $0x380] ss:$16 sps:$4 sm:$0xff]  }
  0x93   :  { %4922 = vmatprep.subr.bf16.mxu1 %v7952_v25  ;;  %v7986_v52 = vld [vmem:[#allocation2 + $0x164] ss:$16 sps:$4 sm:$0xff]   ;;  %v7990_v56 = vld [vmem:[#allocation2 + $0x160] ss:$16 sps:$4 sm:$0xff]  }
  0x94   :  { %v7988_v55 = vld [vmem:[#allocation2 + $0x364] ss:$16 sps:$4 sm:$0xff]   ;;  %v7991_v57 = vld [vmem:[#allocation2 + $0x360] ss:$16 sps:$4 sm:$0xff]  }
  0x95   :  { %4880 = vmatpush1.bf16.msra.mxu0 %v7954_v26  ;;  %v7992_v58 = vld [vmem:[#allocation2 + $0x144] ss:$16 sps:$4 sm:$0xff]   ;;  %v7996_v60 = vld [vmem:[#allocation2 + $0x140] ss:$16 sps:$4 sm:$0xff]  }
  0x96   :  { %4923 = vmatpush1.bf16.msra.mxu1 %v7955_v27  ;;  %4881 = vmatprep.subr.bf16.mxu0 %v7956_v28  ;;  %v7994_v59 = vld [vmem:[#allocation2 + $0x344] ss:$16 sps:$4 sm:$0xff]   ;;  %v7997_v61 = vld [vmem:[#allocation2 + $0x340] ss:$16 sps:$4 sm:$0xff]  }
  0x97   :  { %4924 = vmatprep.subr.bf16.mxu1 %v7958_v29  ;;  %v7998_v62 = vld [vmem:[#allocation2 + $0x124] ss:$16 sps:$4 sm:$0xff]   ;;  %v8002_v0 = vld [vmem:[#allocation2 + $0x120] ss:$16 sps:$4 sm:$0xff]  }
  0x98   :  { %v8000_v63 = vld [vmem:[#allocation2 + $0x324] ss:$16 sps:$4 sm:$0xff]   ;;  %v8003_v1 = vld [vmem:[#allocation2 + $0x320] ss:$16 sps:$4 sm:$0xff]  }
  0x99   :  { %4882 = vmatpush1.bf16.msra.mxu0 %v7960_v30  ;;  %v8004_v2 = vld [vmem:[#allocation2 + $0x104] ss:$16 sps:$4 sm:$0xff]   ;;  %v8008_v4 = vld [vmem:[#allocation2 + $0x100] ss:$16 sps:$4 sm:$0xff]  }
  0x9a   :  { %4925 = vmatpush1.bf16.msra.mxu1 %v7961_v31  ;;  %4883 = vmatprep.subr.bf16.mxu0 %v7962_v32  ;;  %v8006_v3 = vld [vmem:[#allocation2 + $0x304] ss:$16 sps:$4 sm:$0xff]   ;;  %v8009_v5 = vld [vmem:[#allocation2 + $0x300] ss:$16 sps:$4 sm:$0xff]  }
  0x9b   :  { %4926 = vmatprep.subr.bf16.mxu1 %v7964_v33  ;;  %v165_v6 = vld [vmem:[%s9966_s0] sm:$0xff]  ;;  %v167_v8 = vld [vmem:[%s9966_s0 + $0x10] sm:$0xff] }
  0x9c   :  { %v189_v7 = vld [vmem:[%s9966_s0 + $0xc0] sm:$0xff]  ;;  %v191_v9 = vld [vmem:[%s9966_s0 + $0xd0] sm:$0xff] }
  0x9d   :  { %4884 = vmatpush2.bf16.msra.mxu0 %v7966_v34  ;;  %v8012_v10 = vld [vmem:[#allocation2 + $0x4e4] ss:$16 sps:$4 sm:$0xff]   ;;  %v9585_v12 = vpack.c.bf16 %v189_v7, %v165_v6  ;;  %v9587_v13 = vpack.c.bf16 %v191_v9, %v167_v8  ;;  %v8010_v14 = vld [vmem:[#allocation2 + $0x4e0] ss:$16 sps:$4 sm:$0xff]  }
  0x9e   :  { %4927 = vmatpush2.bf16.msra.mxu1 %v7967_v35  ;;  %4885 = vmatprep.subr.bf16.mxu0 %v7968_v36  ;;  %v8015_v11 = vld [vmem:[#allocation2 + $0x6e4] ss:$16 sps:$4 sm:$0xff]   ;;  %v8013_v15 = vld [vmem:[#allocation2 + $0x6e0] ss:$16 sps:$4 sm:$0xff]  }
  0x9f   :  { %4928 = vmatprep.subr.bf16.mxu1 %v7970_v37  ;;  %v8018_v16 = vld [vmem:[#allocation2 + $0x4c4] ss:$16 sps:$4 sm:$0xff]   ;;  %v8016_v18 = vld [vmem:[#allocation2 + $0x4c0] ss:$16 sps:$4 sm:$0xff]  }
  0xa0   :  { %v8021_v17 = vld [vmem:[#allocation2 + $0x6c4] ss:$16 sps:$4 sm:$0xff]   ;;  %v8019_v19 = vld [vmem:[#allocation2 + $0x6c0] ss:$16 sps:$4 sm:$0xff]  }
  0xa1   :  { %4886 = vmatpush2.bf16.msra.mxu0 %v7972_v38  ;;  %v8024_v20 = vld [vmem:[#allocation2 + $0x4a4] ss:$16 sps:$4 sm:$0xff]   ;;  %v8022_v22 = vld [vmem:[#allocation2 + $0x4a0] ss:$16 sps:$4 sm:$0xff]  }
  0xa2   :  { %4929 = vmatpush2.bf16.msra.mxu1 %v7973_v39  ;;  %4887 = vmatprep.subr.bf16.mxu0 %v7974_v40  ;;  %v8027_v21 = vld [vmem:[#allocation2 + $0x6a4] ss:$16 sps:$4 sm:$0xff]   ;;  %v8025_v23 = vld [vmem:[#allocation2 + $0x6a0] ss:$16 sps:$4 sm:$0xff]   ;;  %v170_v40 = vld [vmem:[%s9966_s0 + $0x28] sm:$0xff] }
  0xa3   :  { %4930 = vmatprep.subr.bf16.mxu1 %v7976_v41  ;;  %v8030_v24 = vld [vmem:[#allocation2 + $0x484] ss:$16 sps:$4 sm:$0xff]   ;;  %v8028_v26 = vld [vmem:[#allocation2 + $0x480] ss:$16 sps:$4 sm:$0xff]   ;;  %v194_v41 = vld [vmem:[%s9966_s0 + $0xe8] sm:$0xff] }
  0xa4   :  { %v8033_v25 = vld [vmem:[#allocation2 + $0x684] ss:$16 sps:$4 sm:$0xff]   ;;  %v8031_v27 = vld [vmem:[#allocation2 + $0x680] ss:$16 sps:$4 sm:$0xff]  }
  0xa5   :  { %4888 = vmatpush2.bf16.msra.mxu0 %v7978_v42  ;;  %v8036_v28 = vld [vmem:[#allocation2 + $0x464] ss:$16 sps:$4 sm:$0xff]   ;;  %v8034_v30 = vld [vmem:[#allocation2 + $0x460] ss:$16 sps:$4 sm:$0xff]   ;;  %v172_v42 = vld [vmem:[%s9966_s0 + $0x38] sm:$0xff] }
  0xa6   :  { %4931 = vmatpush2.bf16.msra.mxu1 %v7979_v43  ;;  %4889 = vmatprep.subr.bf16.mxu0 %v7980_v44  ;;  %v8039_v29 = vld [vmem:[#allocation2 + $0x664] ss:$16 sps:$4 sm:$0xff]   ;;  %v8037_v31 = vld [vmem:[#allocation2 + $0x660] ss:$16 sps:$4 sm:$0xff]   ;;  %v9605_v47 = vpack.c.bf16 %v196_v46, %v172_v42  ;;  %v200_v42 = vld [vmem:[%s9966_s0 + $0x118] sm:$0xff] }
  0xa7   :  { %4932 = vmatprep.subr.bf16.mxu1 %v7982_v45  ;;  %v8042_v32 = vld [vmem:[#allocation2 + $0x444] ss:$16 sps:$4 sm:$0xff]   ;;  %v8040_v34 = vld [vmem:[#allocation2 + $0x440] ss:$16 sps:$4 sm:$0xff]   ;;  %v9600_v45 = vpack.c.bf16 %v194_v41, %v170_v40  ;;  %v176_v41 = vld [vmem:[%s9966_s0 + $0x58] sm:$0xff] }
  0xa8   :  { %v8045_v33 = vld [vmem:[#allocation2 + $0x644] ss:$16 sps:$4 sm:$0xff]   ;;  %v8043_v35 = vld [vmem:[#allocation2 + $0x640] ss:$16 sps:$4 sm:$0xff]   ;;  %v9641_v46 = vpack.c.bf16 %v200_v42, %v176_v41 }
  0xa9   :  { %4890 = vmatpush2.bf16.msra.mxu0 %v7984_v50  ;;  %v8048_v36 = vld [vmem:[#allocation2 + $0x424] ss:$16 sps:$4 sm:$0xff]   ;;  %v8046_v38 = vld [vmem:[#allocation2 + $0x420] ss:$16 sps:$4 sm:$0xff]  }
  0xaa   :  { %4933 = vmatpush2.bf16.msra.mxu1 %v7985_v51  ;;  %4891 = vmatprep.subr.bf16.mxu0 %v7986_v52  ;;  %v8051_v37 = vld [vmem:[#allocation2 + $0x624] ss:$16 sps:$4 sm:$0xff]   ;;  %v8049_v39 = vld [vmem:[#allocation2 + $0x620] ss:$16 sps:$4 sm:$0xff]  }
  0xab   :  { %4934 = vmatprep.subr.bf16.mxu1 %v7988_v55  ;;  %v8054_v43 = vld [vmem:[#allocation2 + $0x404] ss:$16 sps:$4 sm:$0xff]   ;;  %v8052_v48 = vld [vmem:[#allocation2 + $0x400] ss:$16 sps:$4 sm:$0xff]  }
  0xac   :  { %v8057_v44 = vld [vmem:[#allocation2 + $0x604] ss:$16 sps:$4 sm:$0xff]   ;;  %v8055_v49 = vld [vmem:[#allocation2 + $0x600] ss:$16 sps:$4 sm:$0xff]  }
  0xad   :  { %4892 = vmatpush2.bf16.msra.mxu0 %v7990_v56  ;;  %v8060_v50 = vld [vmem:[#allocation2 + $0x5e4] ss:$16 sps:$4 sm:$0xff]   ;;  %v8058_v52 = vld [vmem:[#allocation2 + $0x5e0] ss:$16 sps:$4 sm:$0xff]  }
  0xae   :  { %4935 = vmatpush2.bf16.msra.mxu1 %v7991_v57  ;;  %4893 = vmatprep.subr.bf16.mxu0 %v7992_v58  ;;  %v8063_v51 = vld [vmem:[#allocation2 + $0x7e4] ss:$16 sps:$4 sm:$0xff]   ;;  %v8061_v55 = vld [vmem:[#allocation2 + $0x7e0] ss:$16 sps:$4 sm:$0xff]  }
  0xaf   :  { %4936 = vmatprep.subr.bf16.mxu1 %v7994_v59  ;;  %v8066_v56 = vld [vmem:[#allocation2 + $0x5c4] ss:$16 sps:$4 sm:$0xff]   ;;  %v8064_v58 = vld [vmem:[#allocation2 + $0x5c0] ss:$16 sps:$4 sm:$0xff]  }
  0xb0   :  { %v8069_v57 = vld [vmem:[#allocation2 + $0x7c4] ss:$16 sps:$4 sm:$0xff]   ;;  %v8067_v59 = vld [vmem:[#allocation2 + $0x7c0] ss:$16 sps:$4 sm:$0xff]  }
  0xb1   :  { %4894 = vmatpush2.bf16.msra.mxu0 %v7996_v60  ;;  %v8072_v60 = vld [vmem:[#allocation2 + $0x5a4] ss:$16 sps:$4 sm:$0xff]   ;;  %v8082_v6 = vld [vmem:[#allocation2 + $0x560] ss:$16 sps:$4 sm:$0xff]  }
  0xb2   :  { %4937 = vmatpush2.bf16.msra.mxu1 %v7997_v61  ;;  %4895 = vmatprep.subr.bf16.mxu0 %v7998_v62  ;;  %v8075_v61 = vld [vmem:[#allocation2 + $0x7a4] ss:$16 sps:$4 sm:$0xff]   ;;  %v8070_v62 = vld [vmem:[#allocation2 + $0x5a0] ss:$16 sps:$4 sm:$0xff]  }
  0xb3   :  { %4938 = vmatprep.subr.bf16.mxu1 %v8000_v63  ;;  %v8073_v63 = vld [vmem:[#allocation2 + $0x7a0] ss:$16 sps:$4 sm:$0xff]   ;;  %v8090_v8 = vld [vmem:[#allocation2 + $0x544] ss:$16 sps:$4 sm:$0xff]  }
  0xb4   :  { %v8085_v7 = vld [vmem:[#allocation2 + $0x760] ss:$16 sps:$4 sm:$0xff]   ;;  %v8093_v9 = vld [vmem:[#allocation2 + $0x744] ss:$16 sps:$4 sm:$0xff]  }
  0xb5   :  { %4896 = vmatpush2.bf16.msra.mxu0 %v8002_v0  ;;  %v8078_v0 = vld [vmem:[#allocation2 + $0x584] ss:$16 sps:$4 sm:$0xff]   ;;  %v8196_v41 = vld [vmem:[#allocation2 + $0x900] ss:$16 sps:$4 sm:$0xff]  }
  0xb6   :  { %4939 = vmatpush2.bf16.msra.mxu1 %v8003_v1  ;;  %4897 = vmatprep.subr.bf16.mxu0 %v8004_v2  ;;  %v8081_v1 = vld [vmem:[#allocation2 + $0x784] ss:$16 sps:$4 sm:$0xff]   ;;  %v8076_v2 = vld [vmem:[#allocation2 + $0x580] ss:$16 sps:$4 sm:$0xff]  }
  0xb7   :  { %4940 = vmatprep.subr.bf16.mxu1 %v8006_v3  ;;  %v8079_v3 = vld [vmem:[#allocation2 + $0x780] ss:$16 sps:$4 sm:$0xff]  }
  0xb8   :  { %v8199_v42 = vld [vmem:[#allocation2 + $0xb00] ss:$16 sps:$4 sm:$0xff]  }
  0xb9   :  { %4898 = vmatpush2.bf16.msra.mxu0 %v8008_v4  ;;  %v8084_v4 = vld [vmem:[#allocation2 + $0x564] ss:$16 sps:$4 sm:$0xff]  }
  0xba   :  { %4941 = vmatpush2.bf16.msra.mxu1 %v8009_v5  ;;  %4953 = vmatprep.subr.bf16.mxu0 %v8012_v10  ;;  %v8087_v5 = vld [vmem:[#allocation2 + $0x764] ss:$16 sps:$4 sm:$0xff]   ;;  %v8088_v10 = vld [vmem:[#allocation2 + $0x540] ss:$16 sps:$4 sm:$0xff]  }
  0xbb   :  { %4996 = vmatprep.subr.bf16.mxu1 %v8015_v11  ;;  %v8091_v11 = vld [vmem:[#allocation2 + $0x740] ss:$16 sps:$4 sm:$0xff]  }
  0xbc   :  { %4900 = vmatmul.mubr.bf16.vlgmr.msra.gmra.mxu0 %v9585_v12 }
  0xbd   :  { %4943 = vmatmul.mubr.bf16.vlgmr.msra.gmra.mxu1 %v9587_v13  ;;  %4954 = vmatpush1.bf16.msra.mxu0 %v8010_v14  ;;  %v8096_v14 = vld [vmem:[#allocation2 + $0x524] ss:$16 sps:$4 sm:$0xff]  }
  0xbe   :  { %4997 = vmatpush1.bf16.msra.mxu1 %v8013_v15  ;;  %4955 = vmatprep.subr.bf16.mxu0 %v8018_v16  ;;  %v8099_v15 = vld [vmem:[#allocation2 + $0x724] ss:$16 sps:$4 sm:$0xff]   ;;  %v8094_v16 = vld [vmem:[#allocation2 + $0x520] ss:$16 sps:$4 sm:$0xff]  }
  0xbf   :  { %4998 = vmatprep.subr.bf16.mxu1 %v8021_v17  ;;  %4985 = vmatprep.mubr.bf16.mxu0 %v9600_v45  ;;  %v8097_v17 = vld [vmem:[#allocation2 + $0x720] ss:$16 sps:$4 sm:$0xff]  }
  0xc0   :  { %5028 = vmatprep.mubr.bf16.mxu1 %v9605_v47 }
  0xc1   :  { %4956 = vmatpush1.bf16.msra.mxu0 %v8016_v18  ;;  %v8102_v18 = vld [vmem:[#allocation2 + $0x504] ss:$16 sps:$4 sm:$0xff]  }
  0xc2   :  { %4999 = vmatpush1.bf16.msra.mxu1 %v8019_v19  ;;  %4957 = vmatprep.subr.bf16.mxu0 %v8024_v20  ;;  %v8105_v19 = vld [vmem:[#allocation2 + $0x704] ss:$16 sps:$4 sm:$0xff]   ;;  %v8100_v20 = vld [vmem:[#allocation2 + $0x500] ss:$16 sps:$4 sm:$0xff]  }
  0xc3   :  { %5000 = vmatprep.subr.bf16.mxu1 %v8027_v21  ;;  %v8103_v21 = vld [vmem:[#allocation2 + $0x700] ss:$16 sps:$4 sm:$0xff]  }
  0xc5   :  { %4958 = vmatpush1.bf16.msra.mxu0 %v8022_v22  ;;  %v169_v22 = vld [vmem:[%s9966_s0 + $0x20] sm:$0xff] }
  0xc6   :  { %5001 = vmatpush1.bf16.msra.mxu1 %v8025_v23  ;;  %4959 = vmatprep.subr.bf16.mxu0 %v8030_v24  ;;  %v193_v23 = vld [vmem:[%s9966_s0 + $0xe0] sm:$0xff]  ;;  %v171_v24 = vld [vmem:[%s9966_s0 + $0x30] sm:$0xff] }
  0xc7   :  { %5002 = vmatprep.subr.bf16.mxu1 %v8033_v25  ;;  %v195_v25 = vld [vmem:[%s9966_s0 + $0xf0] sm:$0xff] }
  0xc9   :  { %4960 = vmatpush1.bf16.msra.mxu0 %v8028_v26  ;;  %v8108_v26 = vld [vmem:[#allocation2 + $0x8e4] ss:$16 sps:$4 sm:$0xff]  }
  0xca   :  { %5003 = vmatpush1.bf16.msra.mxu1 %v8031_v27  ;;  %4961 = vmatprep.subr.bf16.mxu0 %v8036_v28  ;;  %v8111_v27 = vld [vmem:[#allocation2 + $0xae4] ss:$16 sps:$4 sm:$0xff]   ;;  %v9621_v28 = vpack.c.bf16 %v193_v23, %v169_v22  ;;  %v8172_v22 = vld [vmem:[#allocation2 + $0x980] ss:$16 sps:$4 sm:$0xff]  }
  0xcb   :  { %5004 = vmatprep.subr.bf16.mxu1 %v8039_v29  ;;  %v9623_v29 = vpack.c.bf16 %v195_v25, %v171_v24  ;;  %v8175_v23 = vld [vmem:[#allocation2 + $0xb80] ss:$16 sps:$4 sm:$0xff]   ;;  %v8180_v24 = vld [vmem:[#allocation2 + $0x964] ss:$16 sps:$4 sm:$0xff]  }
  0xcc   :  { %v8183_v25 = vld [vmem:[#allocation2 + $0xb64] ss:$16 sps:$4 sm:$0xff]  }
  0xcd   :  { %4962 = vmatpush1.bf16.msra.mxu0 %v8034_v30  ;;  %v8106_v30 = vld [vmem:[#allocation2 + $0x8e0] ss:$16 sps:$4 sm:$0xff]  }
  0xce   :  { %5005 = vmatpush1.bf16.msra.mxu1 %v8037_v31  ;;  %4963 = vmatprep.subr.bf16.mxu0 %v8042_v32  ;;  %v8109_v31 = vld [vmem:[#allocation2 + $0xae0] ss:$16 sps:$4 sm:$0xff]   ;;  %v8114_v32 = vld [vmem:[#allocation2 + $0x8c4] ss:$16 sps:$4 sm:$0xff]  }
  0xcf   :  { %5006 = vmatprep.subr.bf16.mxu1 %v8045_v33  ;;  %v8117_v33 = vld [vmem:[#allocation2 + $0xac4] ss:$16 sps:$4 sm:$0xff]  }
  0xd1   :  { %4964 = vmatpush1.bf16.msra.mxu0 %v8040_v34  ;;  %v8112_v34 = vld [vmem:[#allocation2 + $0x8c0] ss:$16 sps:$4 sm:$0xff]  }
  0xd2   :  { %5007 = vmatpush1.bf16.msra.mxu1 %v8043_v35  ;;  %4965 = vmatprep.subr.bf16.mxu0 %v8048_v36  ;;  %v8115_v35 = vld [vmem:[#allocation2 + $0xac0] ss:$16 sps:$4 sm:$0xff]   ;;  %v8120_v36 = vld [vmem:[#allocation2 + $0x8a4] ss:$16 sps:$4 sm:$0xff]  }
  0xd3   :  { %5008 = vmatprep.subr.bf16.mxu1 %v8051_v37  ;;  %v8123_v37 = vld [vmem:[#allocation2 + $0xaa4] ss:$16 sps:$4 sm:$0xff]  }
  0xd5   :  { %4966 = vmatpush1.bf16.msra.mxu0 %v8046_v38  ;;  %v174_v38 = vld [vmem:[%s9966_s0 + $0x48] sm:$0xff] }
  0xd6   :  { %5009 = vmatpush1.bf16.msra.mxu1 %v8049_v39  ;;  %4967 = vmatprep.subr.bf16.mxu0 %v8054_v43  ;;  %v198_v39 = vld [vmem:[%s9966_s0 + $0x108] sm:$0xff]  ;;  %v8118_v43 = vld [vmem:[#allocation2 + $0x8a0] ss:$16 sps:$4 sm:$0xff]  }
  0xd7   :  { %5010 = vmatprep.subr.bf16.mxu1 %v8057_v44  ;;  %v9633_v40 = vpack.c.bf16 %v198_v39, %v174_v38  ;;  %v8121_v44 = vld [vmem:[#allocation2 + $0xaa0] ss:$16 sps:$4 sm:$0xff]   ;;  %v8198_v38 = vld [vmem:[#allocation2 + $0x904] ss:$16 sps:$4 sm:$0xff]  }
  0xd8   :  { %v8201_v39 = vld [vmem:[#allocation2 + $0xb04] ss:$16 sps:$4 sm:$0xff]  }
  0xd9   :  { %4968 = vmatpush1.bf16.msra.mxu0 %v8052_v48  ;;  %v8126_v48 = vld [vmem:[#allocation2 + $0x884] ss:$16 sps:$4 sm:$0xff]  }
  0xda   :  { %5011 = vmatpush1.bf16.msra.mxu1 %v8055_v49  ;;  %4969 = vmatprep.subr.bf16.mxu0 %v8060_v50  ;;  %v8129_v49 = vld [vmem:[#allocation2 + $0xa84] ss:$16 sps:$4 sm:$0xff]   ;;  %v8124_v50 = vld [vmem:[#allocation2 + $0x880] ss:$16 sps:$4 sm:$0xff]  }
  0xdb   :  { %5012 = vmatprep.subr.bf16.mxu1 %v8063_v51  ;;  %v8127_v51 = vld [vmem:[#allocation2 + $0xa80] ss:$16 sps:$4 sm:$0xff]  }
  0xdd   :  { %4970 = vmatpush2.bf16.msra.mxu0 %v8058_v52  ;;  %v8132_v52 = vld [vmem:[#allocation2 + $0x864] ss:$16 sps:$4 sm:$0xff]  }
  0xde   :  { %5013 = vmatpush2.bf16.msra.mxu1 %v8061_v55  ;;  %4971 = vmatprep.subr.bf16.mxu0 %v8066_v56  ;;  %v8135_v55 = vld [vmem:[#allocation2 + $0xa64] ss:$16 sps:$4 sm:$0xff]   ;;  %v8130_v56 = vld [vmem:[#allocation2 + $0x860] ss:$16 sps:$4 sm:$0xff]  }
  0xdf   :  { %5014 = vmatprep.subr.bf16.mxu1 %v8069_v57  ;;  %v8133_v57 = vld [vmem:[#allocation2 + $0xa60] ss:$16 sps:$4 sm:$0xff]  }
  0xe1   :  { %4972 = vmatpush2.bf16.msra.mxu0 %v8064_v58  ;;  %v8138_v58 = vld [vmem:[#allocation2 + $0x844] ss:$16 sps:$4 sm:$0xff]  }
  0xe2   :  { %5015 = vmatpush2.bf16.msra.mxu1 %v8067_v59  ;;  %4973 = vmatprep.subr.bf16.mxu0 %v8072_v60  ;;  %v8141_v59 = vld [vmem:[#allocation2 + $0xa44] ss:$16 sps:$4 sm:$0xff]   ;;  %v8136_v60 = vld [vmem:[#allocation2 + $0x840] ss:$16 sps:$4 sm:$0xff]  }
  0xe3   :  { %5016 = vmatprep.subr.bf16.mxu1 %v8075_v61  ;;  %v8139_v61 = vld [vmem:[#allocation2 + $0xa40] ss:$16 sps:$4 sm:$0xff]  }
  0xe5   :  { %4974 = vmatpush2.bf16.msra.mxu0 %v8070_v62  ;;  %v8144_v62 = vld [vmem:[#allocation2 + $0x824] ss:$16 sps:$4 sm:$0xff]  }
  0xe6   :  { %5017 = vmatpush2.bf16.msra.mxu1 %v8073_v63  ;;  %4975 = vmatprep.subr.bf16.mxu0 %v8078_v0  ;;  %v8147_v63 = vld [vmem:[#allocation2 + $0xa24] ss:$16 sps:$4 sm:$0xff]   ;;  %v8142_v0 = vld [vmem:[#allocation2 + $0x820] ss:$16 sps:$4 sm:$0xff]  }
  0xe7   :  { %5018 = vmatprep.subr.bf16.mxu1 %v8081_v1  ;;  %v8145_v1 = vld [vmem:[#allocation2 + $0xa20] ss:$16 sps:$4 sm:$0xff]  }
  0xe9   :  { %4976 = vmatpush2.bf16.msra.mxu0 %v8076_v2  ;;  %v8150_v2 = vld [vmem:[#allocation2 + $0x804] ss:$16 sps:$4 sm:$0xff]  }
  0xea   :  { %5019 = vmatpush2.bf16.msra.mxu1 %v8079_v3  ;;  %4977 = vmatprep.subr.bf16.mxu0 %v8084_v4  ;;  %v8153_v3 = vld [vmem:[#allocation2 + $0xa04] ss:$16 sps:$4 sm:$0xff]   ;;  %v8148_v4 = vld [vmem:[#allocation2 + $0x800] ss:$16 sps:$4 sm:$0xff]  }
  0xeb   :  { %5020 = vmatprep.subr.bf16.mxu1 %v8087_v5  ;;  %v8151_v5 = vld [vmem:[#allocation2 + $0xa00] ss:$16 sps:$4 sm:$0xff]  }
  0xed   :  { %4978 = vmatpush2.bf16.msra.mxu0 %v8082_v6  ;;  %v8156_v6 = vld [vmem:[#allocation2 + $0x9e4] ss:$16 sps:$4 sm:$0xff]  }
  0xee   :  { %5021 = vmatpush2.bf16.msra.mxu1 %v8085_v7  ;;  %4979 = vmatprep.subr.bf16.mxu0 %v8090_v8  ;;  %v8159_v7 = vld [vmem:[#allocation2 + $0xbe4] ss:$16 sps:$4 sm:$0xff]   ;;  %v8154_v8 = vld [vmem:[#allocation2 + $0x9e0] ss:$16 sps:$4 sm:$0xff]  }
  0xef   :  { %5022 = vmatprep.subr.bf16.mxu1 %v8093_v9  ;;  %v8157_v9 = vld [vmem:[#allocation2 + $0xbe0] ss:$16 sps:$4 sm:$0xff]  }
  0xf1   :  { %4980 = vmatpush2.bf16.msra.mxu0 %v8088_v10  ;;  %v8162_v10 = vld [vmem:[#allocation2 + $0x9c4] ss:$16 sps:$4 sm:$0xff]  }
  0xf2   :  { %5023 = vmatpush2.bf16.msra.mxu1 %v8091_v11  ;;  %4981 = vmatprep.subr.bf16.mxu0 %v8096_v14  ;;  %v8165_v11 = vld [vmem:[#allocation2 + $0xbc4] ss:$16 sps:$4 sm:$0xff]   ;;  %v8160_v14 = vld [vmem:[#allocation2 + $0x9c0] ss:$16 sps:$4 sm:$0xff]  }
  0xf3   :  { %5024 = vmatprep.subr.bf16.mxu1 %v8099_v15  ;;  %v8163_v15 = vld [vmem:[#allocation2 + $0xbc0] ss:$16 sps:$4 sm:$0xff]  }
  0xf5   :  { %4982 = vmatpush2.bf16.msra.mxu0 %v8094_v16  ;;  %v8168_v16 = vld [vmem:[#allocation2 + $0x9a4] ss:$16 sps:$4 sm:$0xff]  }
  0xf6   :  { %5025 = vmatpush2.bf16.msra.mxu1 %v8097_v17  ;;  %4983 = vmatprep.subr.bf16.mxu0 %v8102_v18  ;;  %v8171_v17 = vld [vmem:[#allocation2 + $0xba4] ss:$16 sps:$4 sm:$0xff]   ;;  %v8166_v18 = vld [vmem:[#allocation2 + $0x9a0] ss:$16 sps:$4 sm:$0xff]  }
  0xf7   :  { %5026 = vmatprep.subr.bf16.mxu1 %v8105_v19  ;;  %v8169_v19 = vld [vmem:[#allocation2 + $0xba0] ss:$16 sps:$4 sm:$0xff]  }
  0xf9   :  { %4984 = vmatpush2.bf16.msra.mxu0 %v8100_v20  ;;  %v8174_v20 = vld [vmem:[#allocation2 + $0x984] ss:$16 sps:$4 sm:$0xff]  }
  0xfa   :  { %5027 = vmatpush2.bf16.msra.mxu1 %v8103_v21  ;;  %5039 = vmatprep.subr.bf16.mxu0 %v8108_v26  ;;  %v8177_v21 = vld [vmem:[#allocation2 + $0xb84] ss:$16 sps:$4 sm:$0xff]   ;;  %v8178_v26 = vld [vmem:[#allocation2 + $0x960] ss:$16 sps:$4 sm:$0xff]  }
  0xfb   :  { %5082 = vmatprep.subr.bf16.mxu1 %v8111_v27  ;;  %v8181_v27 = vld [vmem:[#allocation2 + $0xb60] ss:$16 sps:$4 sm:$0xff]  }
  0xfc   :  { %4986 = vmatmul.mubr.bf16.vlgmr.msra.gmra.mxu0 %v9621_v28 }
  0xfd   :  { %5029 = vmatmul.mubr.bf16.vlgmr.msra.gmra.mxu1 %v9623_v29  ;;  %5040 = vmatpush1.bf16.msra.mxu0 %v8106_v30  ;;  %v8186_v30 = vld [vmem:[#allocation2 + $0x944] ss:$16 sps:$4 sm:$0xff]  }
  0xfe   :  { %5083 = vmatpush1.bf16.msra.mxu1 %v8109_v31  ;;  %5041 = vmatprep.subr.bf16.mxu0 %v8114_v32  ;;  %v8189_v31 = vld [vmem:[#allocation2 + $0xb44] ss:$16 sps:$4 sm:$0xff]   ;;  %v8184_v32 = vld [vmem:[#allocation2 + $0x940] ss:$16 sps:$4 sm:$0xff]  }
  0xff   :  { %5084 = vmatprep.subr.bf16.mxu1 %v8117_v33  ;;  %5071 = vmatprep.mubr.bf16.mxu0 %v9633_v40  ;;  %v8187_v33 = vld [vmem:[#allocation2 + $0xb40] ss:$16 sps:$4 sm:$0xff]  }
 0x100   :  { %5114 = vmatprep.mubr.bf16.mxu1 %v9641_v46 }
 0x101   :  { %5042 = vmatpush1.bf16.msra.mxu0 %v8112_v34  ;;  %v8192_v34 = vld [vmem:[#allocation2 + $0x924] ss:$16 sps:$4 sm:$0xff]  }
 0x102   :  { %5085 = vmatpush1.bf16.msra.mxu1 %v8115_v35  ;;  %5043 = vmatprep.subr.bf16.mxu0 %v8120_v36  ;;  %v8195_v35 = vld [vmem:[#allocation2 + $0xb24] ss:$16 sps:$4 sm:$0xff]   ;;  %v8190_v36 = vld [vmem:[#allocation2 + $0x920] ss:$16 sps:$4 sm:$0xff]  }
 0x103   :  { %5086 = vmatprep.subr.bf16.mxu1 %v8123_v37  ;;  %v8193_v37 = vld [vmem:[#allocation2 + $0xb20] ss:$16 sps:$4 sm:$0xff]  }
 0x105   :  { %5044 = vmatpush1.bf16.msra.mxu0 %v8118_v43  ;;  %v173_v43 = vld [vmem:[%s9966_s0 + $0x40] sm:$0xff] }
 0x106   :  { %5087 = vmatpush1.bf16.msra.mxu1 %v8121_v44  ;;  %5045 = vmatprep.subr.bf16.mxu0 %v8126_v48  ;;  %v197_v44 = vld [vmem:[%s9966_s0 + $0x100] sm:$0xff]  ;;  %v175_v48 = vld [vmem:[%s9966_s0 + $0x50] sm:$0xff] }
 0x107   :  { %5088 = vmatprep.subr.bf16.mxu1 %v8129_v49  ;;  %v199_v49 = vld [vmem:[%s9966_s0 + $0x110] sm:$0xff] }
 0x109   :  { %5046 = vmatpush1.bf16.msra.mxu0 %v8124_v50  ;;  %v8204_v50 = vld [vmem:[#allocation2 + $0xce4] ss:$16 sps:$4 sm:$0xff]  }
 0x10a   :  { %5089 = vmatpush1.bf16.msra.mxu1 %v8127_v51  ;;  %5047 = vmatprep.subr.bf16.mxu0 %v8132_v52  ;;  %v8207_v51 = vld [vmem:[#allocation2 + $0xee4] ss:$16 sps:$4 sm:$0xff]   ;;  %v178_v52 = vld [vmem:[%s9966_s0 + $0x68] sm:$0xff] }
 0x10b   :  { %5090 = vmatprep.subr.bf16.mxu1 %v8135_v55  ;;  %v8202_v55 = vld [vmem:[#allocation2 + $0xce0] ss:$16 sps:$4 sm:$0xff]  }
 0x10d   :  { %5048 = vmatpush1.bf16.msra.mxu0 %v8130_v56  ;;  %v202_v56 = vld [vmem:[%s9966_s0 + $0x128] sm:$0xff] }
 0x10e   :  { %5091 = vmatpush1.bf16.msra.mxu1 %v8133_v57  ;;  %5049 = vmatprep.subr.bf16.mxu0 %v8138_v58  ;;  %v180_v57 = vld [vmem:[%s9966_s0 + $0x78] sm:$0xff]  ;;  %v9666_v58 = vpack.c.bf16 %v197_v44, %v173_v43  ;;  %v8262_v43 = vld [vmem:[#allocation2 + $0xda0] ss:$16 sps:$4 sm:$0xff]  }
 0x10f   :  { %5092 = vmatprep.subr.bf16.mxu1 %v8141_v59  ;;  %v9668_v59 = vpack.c.bf16 %v199_v49, %v175_v48  ;;  %v8265_v44 = vld [vmem:[#allocation2 + $0xfa0] ss:$16 sps:$4 sm:$0xff]   ;;  %v8270_v48 = vld [vmem:[#allocation2 + $0xd84] ss:$16 sps:$4 sm:$0xff]  }
 0x110   :  { %v8273_v49 = vld [vmem:[#allocation2 + $0xf84] ss:$16 sps:$4 sm:$0xff]  }
 0x111   :  { %5050 = vmatpush1.bf16.msra.mxu0 %v8136_v60  ;;  %v204_v60 = vld [vmem:[%s9966_s0 + $0x138] sm:$0xff] }
 0x112   :  { %5093 = vmatpush1.bf16.msra.mxu1 %v8139_v61  ;;  %5051 = vmatprep.subr.bf16.mxu0 %v8144_v62  ;;  %v8205_v61 = vld [vmem:[#allocation2 + $0xee0] ss:$16 sps:$4 sm:$0xff]   ;;  %v8210_v62 = vld [vmem:[#allocation2 + $0xcc4] ss:$16 sps:$4 sm:$0xff]  }
 0x113   :  { %5094 = vmatprep.subr.bf16.mxu1 %v8147_v63  ;;  %v8213_v63 = vld [vmem:[#allocation2 + $0xec4] ss:$16 sps:$4 sm:$0xff]  }
 0x115   :  { %5052 = vmatpush1.bf16.msra.mxu0 %v8142_v0  ;;  %v9673_v0 = vpack.c.bf16 %v202_v56, %v178_v52  ;;  %v8276_v52 = vld [vmem:[#allocation2 + $0xd64] ss:$16 sps:$4 sm:$0xff]   ;;  %v8274_v56 = vld [vmem:[#allocation2 + $0xd60] ss:$16 sps:$4 sm:$0xff]  }
 0x116   :  { %5095 = vmatpush1.bf16.msra.mxu1 %v8145_v1  ;;  %5053 = vmatprep.subr.bf16.mxu0 %v8150_v2  ;;  %v9675_v1 = vpack.c.bf16 %v204_v60, %v180_v57  ;;  %v8208_v2 = vld [vmem:[#allocation2 + $0xcc0] ss:$16 sps:$4 sm:$0xff]   ;;  %v8282_v60 = vld [vmem:[#allocation2 + $0xd44] ss:$16 sps:$4 sm:$0xff]  }
 0x117   :  { %5096 = vmatprep.subr.bf16.mxu1 %v8153_v3  ;;  %v8211_v3 = vld [vmem:[#allocation2 + $0xec0] ss:$16 sps:$4 sm:$0xff]  }
 0x118   :  { %v8277_v57 = vld [vmem:[#allocation2 + $0xf60] ss:$16 sps:$4 sm:$0xff]  }
 0x119   :  { %5054 = vmatpush1.bf16.msra.mxu0 %v8148_v4  ;;  %v8216_v4 = vld [vmem:[#allocation2 + $0xca4] ss:$16 sps:$4 sm:$0xff]  }
 0x11a   :  { %5097 = vmatpush1.bf16.msra.mxu1 %v8151_v5  ;;  %5055 = vmatprep.subr.bf16.mxu0 %v8156_v6  ;;  %v8219_v5 = vld [vmem:[#allocation2 + $0xea4] ss:$16 sps:$4 sm:$0xff]   ;;  %v8214_v6 = vld [vmem:[#allocation2 + $0xca0] ss:$16 sps:$4 sm:$0xff]  }
 0x11b   :  { %5098 = vmatprep.subr.bf16.mxu1 %v8159_v7  ;;  %v8217_v7 = vld [vmem:[#allocation2 + $0xea0] ss:$16 sps:$4 sm:$0xff]  }
 0x11d   :  { %5056 = vmatpush2.bf16.msra.mxu0 %v8154_v8  ;;  %v8222_v8 = vld [vmem:[#allocation2 + $0xc84] ss:$16 sps:$4 sm:$0xff]  }
 0x11e   :  { %5099 = vmatpush2.bf16.msra.mxu1 %v8157_v9  ;;  %5057 = vmatprep.subr.bf16.mxu0 %v8162_v10  ;;  %v8225_v9 = vld [vmem:[#allocation2 + $0xe84] ss:$16 sps:$4 sm:$0xff]   ;;  %v8220_v10 = vld [vmem:[#allocation2 + $0xc80] ss:$16 sps:$4 sm:$0xff]  }
 0x11f   :  { %5100 = vmatprep.subr.bf16.mxu1 %v8165_v11  ;;  %v8223_v11 = vld [vmem:[#allocation2 + $0xe80] ss:$16 sps:$4 sm:$0xff]  }
 0x121   :  { %5058 = vmatpush2.bf16.msra.mxu0 %v8160_v14  ;;  %v8228_v14 = vld [vmem:[#allocation2 + $0xc64] ss:$16 sps:$4 sm:$0xff]  }
 0x122   :  { %5101 = vmatpush2.bf16.msra.mxu1 %v8163_v15  ;;  %5059 = vmatprep.subr.bf16.mxu0 %v8168_v16  ;;  %v8231_v15 = vld [vmem:[#allocation2 + $0xe64] ss:$16 sps:$4 sm:$0xff]   ;;  %v8226_v16 = vld [vmem:[#allocation2 + $0xc60] ss:$16 sps:$4 sm:$0xff]  }
 0x123   :  { %5102 = vmatprep.subr.bf16.mxu1 %v8171_v17  ;;  %v8229_v17 = vld [vmem:[#allocation2 + $0xe60] ss:$16 sps:$4 sm:$0xff]  }
 0x125   :  { %5060 = vmatpush2.bf16.msra.mxu0 %v8166_v18  ;;  %v8234_v18 = vld [vmem:[#allocation2 + $0xc44] ss:$16 sps:$4 sm:$0xff]  }
 0x126   :  { %5103 = vmatpush2.bf16.msra.mxu1 %v8169_v19  ;;  %5061 = vmatprep.subr.bf16.mxu0 %v8174_v20  ;;  %v8237_v19 = vld [vmem:[#allocation2 + $0xe44] ss:$16 sps:$4 sm:$0xff]   ;;  %v8232_v20 = vld [vmem:[#allocation2 + $0xc40] ss:$16 sps:$4 sm:$0xff]  }
 0x127   :  { %5104 = vmatprep.subr.bf16.mxu1 %v8177_v21  ;;  %v8235_v21 = vld [vmem:[#allocation2 + $0xe40] ss:$16 sps:$4 sm:$0xff]  }
 0x129   :  { %5062 = vmatpush2.bf16.msra.mxu0 %v8172_v22  ;;  %v8240_v22 = vld [vmem:[#allocation2 + $0xc24] ss:$16 sps:$4 sm:$0xff]  }
 0x12a   :  { %5105 = vmatpush2.bf16.msra.mxu1 %v8175_v23  ;;  %5063 = vmatprep.subr.bf16.mxu0 %v8180_v24  ;;  %v8243_v23 = vld [vmem:[#allocation2 + $0xe24] ss:$16 sps:$4 sm:$0xff]   ;;  %v8238_v24 = vld [vmem:[#allocation2 + $0xc20] ss:$16 sps:$4 sm:$0xff]  }
 0x12b   :  { %5106 = vmatprep.subr.bf16.mxu1 %v8183_v25  ;;  %v8241_v25 = vld [vmem:[#allocation2 + $0xe20] ss:$16 sps:$4 sm:$0xff]  }
 0x12d   :  { %5064 = vmatpush2.bf16.msra.mxu0 %v8178_v26  ;;  %v8246_v26 = vld [vmem:[#allocation2 + $0xc04] ss:$16 sps:$4 sm:$0xff]  }
 0x12e   :  { %5107 = vmatpush2.bf16.msra.mxu1 %v8181_v27  ;;  %5065 = vmatprep.subr.bf16.mxu0 %v8186_v30  ;;  %v8249_v27 = vld [vmem:[#allocation2 + $0xe04] ss:$16 sps:$4 sm:$0xff]   ;;  %v8244_v30 = vld [vmem:[#allocation2 + $0xc00] ss:$16 sps:$4 sm:$0xff]  }
 0x12f   :  { %5108 = vmatprep.subr.bf16.mxu1 %v8189_v31  ;;  %v8247_v31 = vld [vmem:[#allocation2 + $0xe00] ss:$16 sps:$4 sm:$0xff]  }
 0x131   :  { %5066 = vmatpush2.bf16.msra.mxu0 %v8184_v32  ;;  %v8252_v32 = vld [vmem:[#allocation2 + $0xde4] ss:$16 sps:$4 sm:$0xff]  }
 0x132   :  { %5109 = vmatpush2.bf16.msra.mxu1 %v8187_v33  ;;  %5067 = vmatprep.subr.bf16.mxu0 %v8192_v34  ;;  %v8255_v33 = vld [vmem:[#allocation2 + $0xfe4] ss:$16 sps:$4 sm:$0xff]   ;;  %v8250_v34 = vld [vmem:[#allocation2 + $0xde0] ss:$16 sps:$4 sm:$0xff]  }
 0x133   :  { %5110 = vmatprep.subr.bf16.mxu1 %v8195_v35  ;;  %v8253_v35 = vld [vmem:[#allocation2 + $0xfe0] ss:$16 sps:$4 sm:$0xff]  }
 0x135   :  { %5068 = vmatpush2.bf16.msra.mxu0 %v8190_v36  ;;  %v8258_v36 = vld [vmem:[#allocation2 + $0xdc4] ss:$16 sps:$4 sm:$0xff]  }
 0x136   :  { %5111 = vmatpush2.bf16.msra.mxu1 %v8193_v37  ;;  %5069 = vmatprep.subr.bf16.mxu0 %v8198_v38  ;;  %v8261_v37 = vld [vmem:[#allocation2 + $0xfc4] ss:$16 sps:$4 sm:$0xff]   ;;  %v8256_v38 = vld [vmem:[#allocation2 + $0xdc0] ss:$16 sps:$4 sm:$0xff]  }
 0x137   :  { %5112 = vmatprep.subr.bf16.mxu1 %v8201_v39  ;;  %v8259_v39 = vld [vmem:[#allocation2 + $0xfc0] ss:$16 sps:$4 sm:$0xff]  }
 0x139   :  { %5070 = vmatpush2.bf16.msra.mxu0 %v8196_v41  ;;  %v8264_v41 = vld [vmem:[#allocation2 + $0xda4] ss:$16 sps:$4 sm:$0xff]  }
 0x13a   :  { %5113 = vmatpush2.bf16.msra.mxu1 %v8199_v42  ;;  %5125 = vmatprep.subr.bf16.mxu0 %v8204_v50  ;;  %v8267_v42 = vld [vmem:[#allocation2 + $0xfa4] ss:$16 sps:$4 sm:$0xff]   ;;  %v8268_v50 = vld [vmem:[#allocation2 + $0xd80] ss:$16 sps:$4 sm:$0xff]  }
 0x13b   :  { %5168 = vmatprep.subr.bf16.mxu1 %v8207_v51  ;;  %v8271_v51 = vld [vmem:[#allocation2 + $0xf80] ss:$16 sps:$4 sm:$0xff]  }
 0x13c   :  { %5072 = vmatmul.mubr.bf16.vlgmr.msra.gmra.mxu0 %v9666_v58 }
 0x13d   :  { %5115 = vmatmul.mubr.bf16.vlgmr.msra.gmra.mxu1 %v9668_v59  ;;  %5126 = vmatpush1.bf16.msra.mxu0 %v8202_v55  ;;  %v8279_v55 = vld [vmem:[#allocation2 + $0xf64] ss:$16 sps:$4 sm:$0xff]  }
 0x13e   :  { %5169 = vmatpush1.bf16.msra.mxu1 %v8205_v61  ;;  %5127 = vmatprep.subr.bf16.mxu0 %v8210_v62  ;;  %v8285_v61 = vld [vmem:[#allocation2 + $0xf44] ss:$16 sps:$4 sm:$0xff]   ;;  %v8280_v62 = vld [vmem:[#allocation2 + $0xd40] ss:$16 sps:$4 sm:$0xff]  }
 0x13f   :  { %5170 = vmatprep.subr.bf16.mxu1 %v8213_v63  ;;  %5157 = vmatprep.mubr.bf16.mxu0 %v9673_v0  ;;  %v8283_v63 = vld [vmem:[#allocation2 + $0xf40] ss:$16 sps:$4 sm:$0xff]  }
 0x140   :  { %5200 = vmatprep.mubr.bf16.mxu1 %v9675_v1 }
 0x141   :  { %5128 = vmatpush1.bf16.msra.mxu0 %v8208_v2  ;;  %v1007_v2 = vlaneseq }
 0x142   :  { %5171 = vmatpush1.bf16.msra.mxu1 %v8211_v3  ;;  %5129 = vmatprep.subr.bf16.mxu0 %v8216_v4  ;;  %v8288_v3 = vld [vmem:[#allocation2 + $0xd24] ss:$16 sps:$4 sm:$0xff]  }
 0x143   :  { %5172 = vmatprep.subr.bf16.mxu1 %v8219_v5  ;;  %v8291_v4 = vld [vmem:[#allocation2 + $0xf24] ss:$16 sps:$4 sm:$0xff]   ;;  %v8286_v5 = vld [vmem:[#allocation2 + $0xd20] ss:$16 sps:$4 sm:$0xff]  }
 0x145   :  { %5130 = vmatpush1.bf16.msra.mxu0 %v8214_v6  ;;  %v8289_v6 = vld [vmem:[#allocation2 + $0xf20] ss:$16 sps:$4 sm:$0xff]  }
 0x146   :  { %5173 = vmatpush1.bf16.msra.mxu1 %v8217_v7  ;;  %5131 = vmatprep.subr.bf16.mxu0 %v8222_v8  ;;  %v9681_v7 = vshrl.u32 %v1007_v2, 7  ;;  %v8294_v8 = vld [vmem:[#allocation2 + $0xd04] ss:$16 sps:$4 sm:$0xff]   ;;  %v8319_v2 = vld [vmem:[#allocation2 + $0x1280] ss:$16 sps:$4 sm:$0xff]  }
 0x147   :  { %5174 = vmatprep.subr.bf16.mxu1 %v8225_v9  ;;  %v8297_v9 = vld [vmem:[#allocation2 + $0xf04] ss:$16 sps:$4 sm:$0xff]  }
 0x149   :  { %5132 = vmatpush1.bf16.msra.mxu0 %v8220_v10  ;;  %v8292_v10 = vld [vmem:[#allocation2 + $0xd00] ss:$16 sps:$4 sm:$0xff]  }
 0x14a   :  { %5175 = vmatpush1.bf16.msra.mxu1 %v8223_v11  ;;  %5133 = vmatprep.subr.bf16.mxu0 %v8228_v14  ;;  %v8295_v11 = vld [vmem:[#allocation2 + $0xf00] ss:$16 sps:$4 sm:$0xff]  }
 0x14b   :  { %5176 = vmatprep.subr.bf16.mxu1 %v8231_v15  ;;  %v177_v14 = vld [vmem:[%s9966_s0 + $0x60] sm:$0xff] }
 0x14c   :  { %v201_v15 = vld [vmem:[%s9966_s0 + $0x120] sm:$0xff] }
 0x14d   :  { %5134 = vmatpush1.bf16.msra.mxu0 %v8226_v16  ;;  %v179_v16 = vld [vmem:[%s9966_s0 + $0x70] sm:$0xff] }
 0x14e   :  { %5177 = vmatpush1.bf16.msra.mxu1 %v8229_v17  ;;  %5135 = vmatprep.subr.bf16.mxu0 %v8234_v18  ;;  %v1005_v17 = vld [vmem:[#allocation4] sm:$0xf]  ;;  %v203_v18 = vld [vmem:[%s9966_s0 + $0x130] sm:$0xff] }
 0x14f   :  { %5178 = vmatprep.subr.bf16.mxu1 %v8237_v19  ;;  %v9696_v19 = vsub.s32 0, %v9681_v7 }
 0x151   :  { %5136 = vmatpush1.bf16.msra.mxu0 %v8232_v20  ;;  %v8300_v20 = vld [vmem:[#allocation2 + $0x10e4] ss:$16 sps:$4 sm:$0xff]  }
 0x152   :  { %5179 = vmatpush1.bf16.msra.mxu1 %v8235_v21  ;;  %5137 = vmatprep.subr.bf16.mxu0 %v8240_v22  ;;  %v8303_v21 = vld [vmem:[#allocation2 + $0x12e4] ss:$16 sps:$4 sm:$0xff]   ;;  %v182_v22 = vld [vmem:[%s9966_s0 + $0x88] sm:$0xff] }
 0x153   :  { %5180 = vmatprep.subr.bf16.mxu1 %v8243_v23  ;;  %v8298_v23 = vld [vmem:[#allocation2 + $0x10e0] ss:$16 sps:$4 sm:$0xff]  }
 0x155   :  { %5138 = vmatpush1.bf16.msra.mxu0 %v8238_v24  ;;  %v206_v24 = vld [vmem:[%s9966_s0 + $0x148] sm:$0xff] }
 0x156   :  { %5181 = vmatpush1.bf16.msra.mxu1 %v8241_v25  ;;  %5139 = vmatprep.subr.bf16.mxu0 %v8246_v26  ;;  %v184_v25 = vld [vmem:[%s9966_s0 + $0x98] sm:$0xff]  ;;  %v9707_v26 = vpack.c.bf16 %v201_v15, %v177_v14  ;;  %v8336_v14 = vld [vmem:[#allocation2 + $0x1024] ss:$16 sps:$4 sm:$0xff]  }
 0x157   :  { %5182 = vmatprep.subr.bf16.mxu1 %v8249_v27  ;;  %v9709_v27 = vpack.c.bf16 %v203_v18, %v179_v16  ;;  %v8339_v15 = vld [vmem:[#allocation2 + $0x1224] ss:$16 sps:$4 sm:$0xff]   ;;  %v8334_v16 = vld [vmem:[#allocation2 + $0x1020] ss:$16 sps:$4 sm:$0xff]  }
 0x158   :  { %v8342_v18 = vld [vmem:[#allocation2 + $0x1004] ss:$16 sps:$4 sm:$0xff]  }
 0x159   :  { %5140 = vmatpush1.bf16.msra.mxu0 %v8244_v30  ;;  %v208_v30 = vld [vmem:[%s9966_s0 + $0x158] sm:$0xff] }
 0x15a   :  { %5183 = vmatpush1.bf16.msra.mxu1 %v8247_v31  ;;  %5141 = vmatprep.subr.bf16.mxu0 %v8252_v32  ;;  %v1010_v31 = vrot.slane %v1005_v17, %v9696_v19  ;;  %v8301_v32 = vld [vmem:[#allocation2 + $0x12e0] ss:$16 sps:$4 sm:$0xff]  }
 0x15b   :  { %5184 = vmatprep.subr.bf16.mxu1 %v8255_v33  ;;  %v8306_v33 = vld [vmem:[#allocation2 + $0x10c4] ss:$16 sps:$4 sm:$0xff]   ;;  %v8337_v17 = vld [vmem:[#allocation2 + $0x1220] ss:$16 sps:$4 sm:$0xff]  }
 0x15d   :  { %5142 = vmatpush2.bf16.msra.mxu0 %v8250_v34  ;;  %v8309_v34 = vld [vmem:[#allocation2 + $0x12c4] ss:$16 sps:$4 sm:$0xff]  }
 0x15e   :  { %5185 = vmatpush2.bf16.msra.mxu1 %v8253_v35  ;;  %5143 = vmatprep.subr.bf16.mxu0 %v8258_v36  ;;  %v9715_v35 = vpack.c.bf16 %v206_v24, %v182_v22  ;;  %v9717_v36 = vpack.c.bf16 %v208_v30, %v184_v25  ;;  %v8343_v22 = vld [vmem:[#allocation2 + $0x1200] ss:$16 sps:$4 sm:$0xff]   ;;  %v8351_v24 = vld [vmem:[#allocation2 + $0x13e4] ss:$16 sps:$4 sm:$0xff]  }
 0x15f   :  { %5186 = vmatprep.subr.bf16.mxu1 %v8261_v37  ;;  %v8346_v25 = vld [vmem:[#allocation2 + $0x11e0] ss:$16 sps:$4 sm:$0xff]  }
 0x160   :  { %v8349_v30 = vld [vmem:[#allocation2 + $0x13e0] ss:$16 sps:$4 sm:$0xff]  }
 0x161   :  { %5144 = vmatpush2.bf16.msra.mxu0 %v8256_v38 }
 0x162   :  { %5187 = vmatpush2.bf16.msra.mxu1 %v8259_v39  ;;  %5145 = vmatprep.subr.bf16.mxu0 %v8264_v41  ;;  %v8304_v39 = vld [vmem:[#allocation2 + $0x10c0] ss:$16 sps:$4 sm:$0xff]  }
 0x163   :  { %5188 = vmatprep.subr.bf16.mxu1 %v8267_v42  ;;  %v8307_v42 = vld [vmem:[#allocation2 + $0x12c0] ss:$16 sps:$4 sm:$0xff]  }
 0x165   :  { %5146 = vmatpush2.bf16.msra.mxu0 %v8262_v43 }
 0x166   :  { %5189 = vmatpush2.bf16.msra.mxu1 %v8265_v44  ;;  %5147 = vmatprep.subr.bf16.mxu0 %v8270_v48  ;;  %v8312_v48 = vld [vmem:[#allocation2 + $0x10a4] ss:$16 sps:$4 sm:$0xff]  }
 0x167   :  { %5190 = vmatprep.subr.bf16.mxu1 %v8273_v49  ;;  %v8315_v49 = vld [vmem:[#allocation2 + $0x12a4] ss:$16 sps:$4 sm:$0xff]  }
 0x169   :  { %5148 = vmatpush2.bf16.msra.mxu0 %v8268_v50 }
 0x16a   :  { %5191 = vmatpush2.bf16.msra.mxu1 %v8271_v51  ;;  %5149 = vmatprep.subr.bf16.mxu0 %v8276_v52  ;;  %v8310_v52 = vld [vmem:[#allocation2 + $0x10a0] ss:$16 sps:$4 sm:$0xff]  }
 0x16b   :  { %5192 = vmatprep.subr.bf16.mxu1 %v8279_v55 }
 0x16d   :  { %5150 = vmatpush2.bf16.msra.mxu0 %v8274_v56  ;;  %v8313_v56 = vld [vmem:[#allocation2 + $0x12a0] ss:$16 sps:$4 sm:$0xff]  }
 0x16e   :  { %5193 = vmatpush2.bf16.msra.mxu1 %v8277_v57  ;;  %5151 = vmatprep.subr.bf16.mxu0 %v8282_v60  ;;  %v8318_v60 = vld [vmem:[#allocation2 + $0x1084] ss:$16 sps:$4 sm:$0xff]  }
 0x16f   :  { %5194 = vmatprep.subr.bf16.mxu1 %v8285_v61  ;;  %v8321_v61 = vld [vmem:[#allocation2 + $0x1284] ss:$16 sps:$4 sm:$0xff]  }
 0x171   :  { %5152 = vmatpush2.bf16.msra.mxu0 %v8280_v62 }
 0x172   :  { %5195 = vmatpush2.bf16.msra.mxu1 %v8283_v63  ;;  %5153 = vmatprep.subr.bf16.mxu0 %v8288_v3  ;;  %v8316_v63 = vld [vmem:[#allocation2 + $0x1080] ss:$16 sps:$4 sm:$0xff]   ;;  %v8324_v3 = vld [vmem:[#allocation2 + $0x1064] ss:$16 sps:$4 sm:$0xff]  }
 0x173   :  { %5196 = vmatprep.subr.bf16.mxu1 %v8291_v4  ;;  %v8327_v4 = vld [vmem:[#allocation2 + $0x1264] ss:$16 sps:$4 sm:$0xff]  }
 0x175   :  { %5154 = vmatpush2.bf16.msra.mxu0 %v8286_v5  ;;  %v8322_v5 = vld [vmem:[#allocation2 + $0x1060] ss:$16 sps:$4 sm:$0xff]  }
 0x176   :  { %5197 = vmatpush2.bf16.msra.mxu1 %v8289_v6  ;;  %5155 = vmatprep.subr.bf16.mxu0 %v8294_v8  ;;  %v8325_v6 = vld [vmem:[#allocation2 + $0x1260] ss:$16 sps:$4 sm:$0xff]   ;;  %v8330_v8 = vld [vmem:[#allocation2 + $0x1044] ss:$16 sps:$4 sm:$0xff]  }
 0x177   :  { %5198 = vmatprep.subr.bf16.mxu1 %v8297_v9  ;;  %v8333_v9 = vld [vmem:[#allocation2 + $0x1244] ss:$16 sps:$4 sm:$0xff]  }
 0x179   :  { %5156 = vmatpush2.bf16.msra.mxu0 %v8292_v10  ;;  %v8328_v10 = vld [vmem:[#allocation2 + $0x1040] ss:$16 sps:$4 sm:$0xff]  }
 0x17a   :  { %5199 = vmatpush2.bf16.msra.mxu1 %v8295_v11  ;;  %5211 = vmatprep.subr.bf16.mxu0 %v8300_v20  ;;  %v8331_v11 = vld [vmem:[#allocation2 + $0x1240] ss:$16 sps:$4 sm:$0xff]   ;;  %v8345_v20 = vld [vmem:[#allocation2 + $0x1204] ss:$16 sps:$4 sm:$0xff]  }
 0x17b   :  { %5254 = vmatprep.subr.bf16.mxu1 %v8303_v21  ;;  %v8340_v21 = vld [vmem:[#allocation2 + $0x1000] ss:$16 sps:$4 sm:$0xff]  }
 0x17c   :  { %v4901_v37 = vpop.f32.mrf.mxu0  ;;  %5158 = vmatmul.mubr.bf16.vlgmr.msra.gmra.mxu0 %v9707_v26 }
 0x17d   :  { %v4944_v38 = vpop.f32.mrf.mxu1  ;;  %5201 = vmatmul.mubr.bf16.vlgmr.msra.gmra.mxu1 %v9709_v27  ;;  %v4902_v41 = vadd.f32 %v4901_v37, %v1010_v31  ;;  %5212 = vmatpush1.bf16.msra.mxu0 %v8298_v23  ;;  %v8348_v23 = vld [vmem:[#allocation2 + $0x11e4] ss:$16 sps:$4 sm:$0xff]  }
 0x17e   :  { %5255 = vmatpush1.bf16.msra.mxu1 %v8301_v32  ;;  %v9721_v43 = vpop.f32.mrf.mxu0  ;;  %5213 = vmatprep.subr.bf16.mxu0 %v8306_v33  ;;  %v8357_v32 = vld [vmem:[#allocation2 + $0x13c4] ss:$16 sps:$4 sm:$0xff]   ;;  %v8352_v33 = vld [vmem:[#allocation2 + $0x11c0] ss:$16 sps:$4 sm:$0xff]  }
 0x17f   :  { %v9723_v44 = vpop.f32.mrf.mxu1  ;;  %5256 = vmatprep.subr.bf16.mxu1 %v8309_v34  ;;  %v9725_v50 = vadd.f32 %v4944_v38, %v4902_v41  ;;  %5243 = vmatprep.mubr.bf16.mxu0 %v9715_v35  ;;  %v8355_v34 = vld [vmem:[#allocation2 + $0x13c0] ss:$16 sps:$4 sm:$0xff]   ;;  %v8360_v37 = vld [vmem:[#allocation2 + $0x11a4] ss:$16 sps:$4 sm:$0xff]  }
 0x180   :  { %5286 = vmatprep.mubr.bf16.mxu1 %v9717_v36  ;;  %v4905_v51 = vpop.f32.mrf.mxu0  ;;  %v8363_v38 = vld [vmem:[#allocation2 + $0x13a4] ss:$16 sps:$4 sm:$0xff]   ;;  %v8361_v41 = vld [vmem:[#allocation2 + $0x13a0] ss:$16 sps:$4 sm:$0xff]  }
 0x181   :  { %v4906_v55 = vadd.f32 %v4905_v51, %v1010_v31  ;;  %5214 = vmatpush1.bf16.msra.mxu0 %v8304_v39  ;;  %v4948_v57 = vpop.f32.mrf.mxu1  ;;  %v8354_v31 = vld [vmem:[#allocation2 + $0x11c4] ss:$16 sps:$4 sm:$0xff]   ;;  %v8358_v39 = vld [vmem:[#allocation2 + $0x11a0] ss:$16 sps:$4 sm:$0xff]  }
 0x182   :  { %5257 = vmatpush1.bf16.msra.mxu1 %v8307_v42  ;;  %5215 = vmatprep.subr.bf16.mxu0 %v8312_v48  ;;  %v8366_v42 = vld [vmem:[#allocation2 + $0x1184] ss:$16 sps:$4 sm:$0xff]   ;;  %v8367_v51 = vld [vmem:[#allocation2 + $0x1380] ss:$16 sps:$4 sm:$0xff]  }
 0x183   :  { %5258 = vmatprep.subr.bf16.mxu1 %v8315_v49  ;;  %v9729_v62 = vadd.f32 %v4948_v57, %v4906_v55  ;;  %v8369_v48 = vld [vmem:[#allocation2 + $0x1384] ss:$16 sps:$4 sm:$0xff]   ;;  %v8364_v49 = vld [vmem:[#allocation2 + $0x1180] ss:$16 sps:$4 sm:$0xff]  }
 0x184   :  { %v8375_v55 = vld [vmem:[#allocation2 + $0x1364] ss:$16 sps:$4 sm:$0xff]   ;;  %v8373_v57 = vld [vmem:[#allocation2 + $0x1360] ss:$16 sps:$4 sm:$0xff]  }
 0x185   :  { %5216 = vmatpush1.bf16.msra.mxu0 %v8310_v52  ;;  %v8372_v52 = vld [vmem:[#allocation2 + $0x1164] ss:$16 sps:$4 sm:$0xff]  }
 0x186   :  { %5259 = vmatpush1.bf16.msra.mxu1 %v8313_v56  ;;  %5217 = vmatprep.subr.bf16.mxu0 %v8318_v60  ;;  %v8370_v56 = vld [vmem:[#allocation2 + $0x1160] ss:$16 sps:$4 sm:$0xff]   ;;  %v8378_v60 = vld [vmem:[#allocation2 + $0x1144] ss:$16 sps:$4 sm:$0xff]  }
 0x187   :  { %5260 = vmatprep.subr.bf16.mxu1 %v8321_v61  ;;  %v8381_v61 = vld [vmem:[#allocation2 + $0x1344] ss:$16 sps:$4 sm:$0xff]  }
 0x189   :  { %5218 = vmatpush1.bf16.msra.mxu0 %v8316_v63  ;;  %v8376_v63 = vld [vmem:[#allocation2 + $0x1140] ss:$16 sps:$4 sm:$0xff]  }
 0x18a   :  { %5261 = vmatpush1.bf16.msra.mxu1 %v8319_v2  ;;  %5219 = vmatprep.subr.bf16.mxu0 %v8324_v3  ;;  %v8379_v2 = vld [vmem:[#allocation2 + $0x1340] ss:$16 sps:$4 sm:$0xff]   ;;  %v8384_v3 = vld [vmem:[#allocation2 + $0x1124] ss:$16 sps:$4 sm:$0xff]  }
 0x18b   :  { %5262 = vmatprep.subr.bf16.mxu1 %v8327_v4  ;;  %v8387_v4 = vld [vmem:[#allocation2 + $0x1324] ss:$16 sps:$4 sm:$0xff]  }
 0x18d   :  { %5220 = vmatpush1.bf16.msra.mxu0 %v8322_v5  ;;  %v8382_v5 = vld [vmem:[#allocation2 + $0x1120] ss:$16 sps:$4 sm:$0xff]  }
 0x18e   :  { %5263 = vmatpush1.bf16.msra.mxu1 %v8325_v6  ;;  %5221 = vmatprep.subr.bf16.mxu0 %v8330_v8  ;;  %v8385_v6 = vld [vmem:[#allocation2 + $0x1320] ss:$16 sps:$4 sm:$0xff]   ;;  %v8390_v8 = vld [vmem:[#allocation2 + $0x1104] ss:$16 sps:$4 sm:$0xff]  }
 0x18f   :  { %5264 = vmatprep.subr.bf16.mxu1 %v8333_v9  ;;  %v8393_v9 = vld [vmem:[#allocation2 + $0x1304] ss:$16 sps:$4 sm:$0xff]  }
 0x191   :  { %5222 = vmatpush1.bf16.msra.mxu0 %v8328_v10  ;;  %v8388_v10 = vld [vmem:[#allocation2 + $0x1100] ss:$16 sps:$4 sm:$0xff]  }
 0x192   :  { %5265 = vmatpush1.bf16.msra.mxu1 %v8331_v11  ;;  %5223 = vmatprep.subr.bf16.mxu0 %v8336_v14  ;;  %v8391_v11 = vld [vmem:[#allocation2 + $0x1300] ss:$16 sps:$4 sm:$0xff]  }
 0x193   :  { %5266 = vmatprep.subr.bf16.mxu1 %v8339_v15  ;;  %v181_v14 = vld [vmem:[%s9966_s0 + $0x80] sm:$0xff] }
 0x194   :  { %v205_v15 = vld [vmem:[%s9966_s0 + $0x140] sm:$0xff] }
 0x195   :  { %5224 = vmatpush1.bf16.msra.mxu0 %v8334_v16  ;;  %v183_v16 = vld [vmem:[%s9966_s0 + $0x90] sm:$0xff] }
 0x196   :  { %5267 = vmatpush1.bf16.msra.mxu1 %v8337_v17  ;;  %5225 = vmatprep.subr.bf16.mxu0 %v8342_v18  ;;  %v207_v17 = vld [vmem:[%s9966_s0 + $0x150] sm:$0xff] }
 0x197   :  { %5268 = vmatprep.subr.bf16.mxu1 %v8345_v20  ;;  %v8396_v18 = vld [vmem:[#allocation2 + $0x14e4] ss:$16 sps:$4 sm:$0xff]  }
 0x198   :  { %v8399_v20 = vld [vmem:[#allocation2 + $0x16e4] ss:$16 sps:$4 sm:$0xff]  }
 0x199   :  { %5226 = vmatpush1.bf16.msra.mxu0 %v8340_v21  ;;  %v186_v21 = vld [vmem:[%s9966_s0 + $0xa8] sm:$0xff] }
 0x19a   :  { %5269 = vmatpush1.bf16.msra.mxu1 %v8343_v22  ;;  %5227 = vmatprep.subr.bf16.mxu0 %v8348_v23  ;;  %v210_v22 = vld [vmem:[%s9966_s0 + $0x168] sm:$0xff]  ;;  %v188_v23 = vld [vmem:[%s9966_s0 + $0xb8] sm:$0xff] }
 0x19b   :  { %5270 = vmatprep.subr.bf16.mxu1 %v8351_v24  ;;  %v212_v24 = vld [vmem:[%s9966_s0 + $0x178] sm:$0xff] }
 0x19d   :  { %5228 = vmatpush2.bf16.msra.mxu0 %v8346_v25  ;;  %v8394_v25 = vld [vmem:[#allocation2 + $0x14e0] ss:$16 sps:$4 sm:$0xff]  }
 0x19e   :  { %5271 = vmatpush2.bf16.msra.mxu1 %v8349_v30  ;;  %5229 = vmatprep.subr.bf16.mxu0 %v8354_v31  ;;  %v8397_v30 = vld [vmem:[#allocation2 + $0x16e0] ss:$16 sps:$4 sm:$0xff]   ;;  %v9755_v31 = vpack.c.bf16 %v205_v15, %v181_v14  ;;  %v8423_v14 = vld [vmem:[#allocation2 + $0x1664] ss:$16 sps:$4 sm:$0xff]  }
 0x19f   :  { %5272 = vmatprep.subr.bf16.mxu1 %v8357_v32  ;;  %v9757_v32 = vpack.c.bf16 %v207_v17, %v183_v16  ;;  %v8421_v15 = vld [vmem:[#allocation2 + $0x1660] ss:$16 sps:$4 sm:$0xff]   ;;  %v8426_v16 = vld [vmem:[#allocation2 + $0x1444] ss:$16 sps:$4 sm:$0xff]  }
 0x1a0   :  { %v8429_v17 = vld [vmem:[#allocation2 + $0x1644] ss:$16 sps:$4 sm:$0xff]  }
 0x1a1   :  { %5230 = vmatpush2.bf16.msra.mxu0 %v8352_v33  ;;  %v9759_v33 = vpop.f32.mrf.mxu0 }
 0x1a2   :  { %5273 = vmatpush2.bf16.msra.mxu1 %v8355_v34  ;;  %5231 = vmatprep.subr.bf16.mxu0 %v8360_v37  ;;  %v9761_v34 = vpop.f32.mrf.mxu1  ;;  %v8402_v37 = vld [vmem:[#allocation2 + $0x14c4] ss:$16 sps:$4 sm:$0xff]  }
 0x1a3   :  { %5274 = vmatprep.subr.bf16.mxu1 %v8363_v38  ;;  %v8405_v38 = vld [vmem:[#allocation2 + $0x16c4] ss:$16 sps:$4 sm:$0xff]  }
 0x1a5   :  { %5232 = vmatpush2.bf16.msra.mxu0 %v8358_v39  ;;  %v8400_v39 = vld [vmem:[#allocation2 + $0x14c0] ss:$16 sps:$4 sm:$0xff]  }
 0x1a6   :  { %5275 = vmatpush2.bf16.msra.mxu1 %v8361_v41  ;;  %5233 = vmatprep.subr.bf16.mxu0 %v8366_v42  ;;  %v8403_v41 = vld [vmem:[#allocation2 + $0x16c0] ss:$16 sps:$4 sm:$0xff]   ;;  %v9763_v42 = vpack.c.bf16 %v210_v22, %v186_v21  ;;  %v8432_v21 = vld [vmem:[#allocation2 + $0x1424] ss:$16 sps:$4 sm:$0xff]  }
 0x1a7   :  { %5276 = vmatprep.subr.bf16.mxu1 %v8369_v48  ;;  %v9765_v48 = vpack.c.bf16 %v212_v24, %v188_v23  ;;  %v8435_v22 = vld [vmem:[#allocation2 + $0x1624] ss:$16 sps:$4 sm:$0xff]   ;;  %v8430_v23 = vld [vmem:[#allocation2 + $0x1420] ss:$16 sps:$4 sm:$0xff]  }
 0x1a8   :  { %v8433_v24 = vld [vmem:[#allocation2 + $0x1620] ss:$16 sps:$4 sm:$0xff]  }
 0x1a9   :  { %5234 = vmatpush2.bf16.msra.mxu0 %v8364_v49 }
 0x1aa   :  { %5277 = vmatpush2.bf16.msra.mxu1 %v8367_v51  ;;  %5235 = vmatprep.subr.bf16.mxu0 %v8372_v52 }
 0x1ab   :  { %5278 = vmatprep.subr.bf16.mxu1 %v8375_v55 }
 0x1ad   :  { %5236 = vmatpush2.bf16.msra.mxu0 %v8370_v56 }
 0x1ae   :  { %5279 = vmatpush2.bf16.msra.mxu1 %v8373_v57  ;;  %5237 = vmatprep.subr.bf16.mxu0 %v8378_v60  ;;  %v8408_v57 = vld [vmem:[#allocation2 + $0x14a4] ss:$16 sps:$4 sm:$0xff]  }
 0x1af   :  { %5280 = vmatprep.subr.bf16.mxu1 %v8381_v61  ;;  %v8411_v60 = vld [vmem:[#allocation2 + $0x16a4] ss:$16 sps:$4 sm:$0xff]  }
 0x1b1   :  { %5238 = vmatpush2.bf16.msra.mxu0 %v8376_v63  ;;  %v8406_v63 = vld [vmem:[#allocation2 + $0x14a0] ss:$16 sps:$4 sm:$0xff]  }
 0x1b2   :  { %5281 = vmatpush2.bf16.msra.mxu1 %v8379_v2  ;;  %5239 = vmatprep.subr.bf16.mxu0 %v8384_v3  ;;  %v8409_v2 = vld [vmem:[#allocation2 + $0x16a0] ss:$16 sps:$4 sm:$0xff]  }
 0x1b3   :  { %5282 = vmatprep.subr.bf16.mxu1 %v8387_v4 }
 0x1b5   :  { %5240 = vmatpush2.bf16.msra.mxu0 %v8382_v5  ;;  %v8414_v5 = vld [vmem:[#allocation2 + $0x1484] ss:$16 sps:$4 sm:$0xff]  }
 0x1b6   :  { %5283 = vmatpush2.bf16.msra.mxu1 %v8385_v6  ;;  %5241 = vmatprep.subr.bf16.mxu0 %v8390_v8  ;;  %v8417_v6 = vld [vmem:[#allocation2 + $0x1684] ss:$16 sps:$4 sm:$0xff]  }
 0x1b7   :  { %5284 = vmatprep.subr.bf16.mxu1 %v8393_v9  ;;  %v8412_v9 = vld [vmem:[#allocation2 + $0x1480] ss:$16 sps:$4 sm:$0xff]  }
 0x1b9   :  { %5242 = vmatpush2.bf16.msra.mxu0 %v8388_v10  ;;  %v8415_v10 = vld [vmem:[#allocation2 + $0x1680] ss:$16 sps:$4 sm:$0xff]  }
 0x1ba   :  { %5285 = vmatpush2.bf16.msra.mxu1 %v8391_v11  ;;  %5297 = vmatprep.subr.bf16.mxu0 %v8396_v18  ;;  %v8420_v11 = vld [vmem:[#allocation2 + $0x1464] ss:$16 sps:$4 sm:$0xff]   ;;  %v8424_v18 = vld [vmem:[#allocation2 + $0x1440] ss:$16 sps:$4 sm:$0xff]  }
 0x1bb   :  { %5340 = vmatprep.subr.bf16.mxu1 %v8399_v20  ;;  %v8427_v20 = vld [vmem:[#allocation2 + $0x1640] ss:$16 sps:$4 sm:$0xff]  }
 0x1bc   :  { %v4987_v49 = vpop.f32.mrf.mxu0  ;;  %5244 = vmatmul.mubr.bf16.vlgmr.msra.gmra.mxu0 %v9755_v31 }
 0x1bd   :  { %v5030_v51 = vpop.f32.mrf.mxu1  ;;  %5287 = vmatmul.mubr.bf16.vlgmr.msra.gmra.mxu1 %v9757_v32  ;;  %v4988_v52 = vadd.f32 %v4987_v49, %v9725_v50  ;;  %5298 = vmatpush1.bf16.msra.mxu0 %v8394_v25  ;;  %v8438_v25 = vld [vmem:[#allocation2 + $0x1404] ss:$16 sps:$4 sm:$0xff]   ;;  %v8442_v49 = vld [vmem:[#allocation2 + $0x15e0] ss:$16 sps:$4 sm:$0xff]  }
 0x1be   :  { %5341 = vmatpush1.bf16.msra.mxu1 %v8397_v30  ;;  %v9770_v55 = vpop.f32.mrf.mxu0  ;;  %5299 = vmatprep.subr.bf16.mxu0 %v8402_v37  ;;  %v8441_v30 = vld [vmem:[#allocation2 + $0x1604] ss:$16 sps:$4 sm:$0xff]   ;;  %v8436_v37 = vld [vmem:[#allocation2 + $0x1400] ss:$16 sps:$4 sm:$0xff]  }
 0x1bf   :  { %v9772_v56 = vpop.f32.mrf.mxu1  ;;  %5342 = vmatprep.subr.bf16.mxu1 %v8405_v38  ;;  %v9774_v61 = vadd.f32 %v5030_v51, %v4988_v52  ;;  %5329 = vmatprep.mubr.bf16.mxu0 %v9763_v42  ;;  %v8439_v38 = vld [vmem:[#allocation2 + $0x1600] ss:$16 sps:$4 sm:$0xff]   ;;  %v8450_v52 = vld [vmem:[#allocation2 + $0x15c4] ss:$16 sps:$4 sm:$0xff]  }
 0x1c0   :  { %5372 = vmatprep.mubr.bf16.mxu1 %v9765_v48  ;;  %v4991_v3 = vpop.f32.mrf.mxu0  ;;  %v8445_v51 = vld [vmem:[#allocation2 + $0x17e0] ss:$16 sps:$4 sm:$0xff]  }
 0x1c1   :  { %v4992_v50 = vadd.f32 %v4991_v3, %v9729_v62  ;;  %5300 = vmatpush1.bf16.msra.mxu0 %v8400_v39  ;;  %v5034_v4 = vpop.f32.mrf.mxu1  ;;  %v8418_v62 = vld [vmem:[#allocation2 + $0x1460] ss:$16 sps:$4 sm:$0xff]   ;;  %v8444_v39 = vld [vmem:[#allocation2 + $0x15e4] ss:$16 sps:$4 sm:$0xff]  }
 0x1c2   :  { %5343 = vmatpush1.bf16.msra.mxu1 %v8403_v41  ;;  %5301 = vmatprep.subr.bf16.mxu0 %v8408_v57  ;;  %v8447_v41 = vld [vmem:[#allocation2 + $0x17e4] ss:$16 sps:$4 sm:$0xff]  }
 0x1c3   :  { %5344 = vmatprep.subr.bf16.mxu1 %v8411_v60  ;;  %v9779_v8 = vadd.f32 %v5034_v4, %v4992_v50  ;;  %v8453_v57 = vld [vmem:[#allocation2 + $0x17c4] ss:$16 sps:$4 sm:$0xff]   ;;  %v8448_v60 = vld [vmem:[#allocation2 + $0x15c0] ss:$16 sps:$4 sm:$0xff]  }
 0x1c4   :  { %v8459_v3 = vld [vmem:[#allocation2 + $0x17a4] ss:$16 sps:$4 sm:$0xff]   ;;  %v8454_v50 = vld [vmem:[#allocation2 + $0x15a0] ss:$16 sps:$4 sm:$0xff]  }
 0x1c5   :  { %5302 = vmatpush1.bf16.msra.mxu0 %v8406_v63  ;;  %v8451_v63 = vld [vmem:[#allocation2 + $0x17c0] ss:$16 sps:$4 sm:$0xff]  }
 0x1c6   :  { %5345 = vmatpush1.bf16.msra.mxu1 %v8409_v2  ;;  %5303 = vmatprep.subr.bf16.mxu0 %v8414_v5  ;;  %v8456_v2 = vld [vmem:[#allocation2 + $0x15a4] ss:$16 sps:$4 sm:$0xff]   ;;  %v8457_v4 = vld [vmem:[#allocation2 + $0x17a0] ss:$16 sps:$4 sm:$0xff]  }
 0x1c7   :  { %5346 = vmatprep.subr.bf16.mxu1 %v8417_v6  ;;  %v8462_v5 = vld [vmem:[#allocation2 + $0x1584] ss:$16 sps:$4 sm:$0xff]  }
 0x1c8   :  { %v8465_v6 = vld [vmem:[#allocation2 + $0x1784] ss:$16 sps:$4 sm:$0xff]  }
 0x1c9   :  { %5304 = vmatpush1.bf16.msra.mxu0 %v8412_v9  ;;  %v8460_v9 = vld [vmem:[#allocation2 + $0x1580] ss:$16 sps:$4 sm:$0xff]  }
 0x1ca   :  { %5347 = vmatpush1.bf16.msra.mxu1 %v8415_v10  ;;  %5305 = vmatprep.subr.bf16.mxu0 %v8420_v11  ;;  %v8463_v10 = vld [vmem:[#allocation2 + $0x1780] ss:$16 sps:$4 sm:$0xff]   ;;  %v8468_v11 = vld [vmem:[#allocation2 + $0x1564] ss:$16 sps:$4 sm:$0xff]  }
 0x1cb   :  { %5348 = vmatprep.subr.bf16.mxu1 %v8423_v14  ;;  %v8471_v14 = vld [vmem:[#allocation2 + $0x1764] ss:$16 sps:$4 sm:$0xff]  }
 0x1cd   :  { %5306 = vmatpush1.bf16.msra.mxu0 %v8418_v62  ;;  %v8466_v62 = vld [vmem:[#allocation2 + $0x1560] ss:$16 sps:$4 sm:$0xff]  }
 0x1ce   :  { %5349 = vmatpush1.bf16.msra.mxu1 %v8421_v15  ;;  %5307 = vmatprep.subr.bf16.mxu0 %v8426_v16  ;;  %v8469_v15 = vld [vmem:[#allocation2 + $0x1760] ss:$16 sps:$4 sm:$0xff]   ;;  %v8474_v16 = vld [vmem:[#allocation2 + $0x1544] ss:$16 sps:$4 sm:$0xff]  }
 0x1cf   :  { %5350 = vmatprep.subr.bf16.mxu1 %v8429_v17  ;;  %v8477_v17 = vld [vmem:[#allocation2 + $0x1744] ss:$16 sps:$4 sm:$0xff]  }
 0x1d1   :  { %5308 = vmatpush1.bf16.msra.mxu0 %v8424_v18  ;;  %v8472_v18 = vld [vmem:[#allocation2 + $0x1540] ss:$16 sps:$4 sm:$0xff]  }
 0x1d2   :  { %5351 = vmatpush1.bf16.msra.mxu1 %v8427_v20  ;;  %5309 = vmatprep.subr.bf16.mxu0 %v8432_v21  ;;  %v8475_v20 = vld [vmem:[#allocation2 + $0x1740] ss:$16 sps:$4 sm:$0xff]   ;;  %v8480_v21 = vld [vmem:[#allocation2 + $0x1524] ss:$16 sps:$4 sm:$0xff]  }
 0x1d3   :  { %5352 = vmatprep.subr.bf16.mxu1 %v8435_v22  ;;  %v8483_v22 = vld [vmem:[#allocation2 + $0x1724] ss:$16 sps:$4 sm:$0xff]  }
 0x1d5   :  { %5310 = vmatpush1.bf16.msra.mxu0 %v8430_v23  ;;  %v8478_v23 = vld [vmem:[#allocation2 + $0x1520] ss:$16 sps:$4 sm:$0xff]  }
 0x1d6   :  { %5353 = vmatpush1.bf16.msra.mxu1 %v8433_v24  ;;  %5311 = vmatprep.subr.bf16.mxu0 %v8438_v25  ;;  %v8481_v24 = vld [vmem:[#allocation2 + $0x1720] ss:$16 sps:$4 sm:$0xff]   ;;  %v8486_v25 = vld [vmem:[#allocation2 + $0x1504] ss:$16 sps:$4 sm:$0xff]  }
 0x1d7   :  { %5354 = vmatprep.subr.bf16.mxu1 %v8441_v30  ;;  %v8489_v30 = vld [vmem:[#allocation2 + $0x1704] ss:$16 sps:$4 sm:$0xff]  }
 0x1d9   :  { %5312 = vmatpush1.bf16.msra.mxu0 %v8436_v37  ;;  %v8484_v37 = vld [vmem:[#allocation2 + $0x1500] ss:$16 sps:$4 sm:$0xff]  }
 0x1da   :  { %5355 = vmatpush1.bf16.msra.mxu1 %v8439_v38  ;;  %5313 = vmatprep.subr.bf16.mxu0 %v8444_v39  ;;  %v8487_v38 = vld [vmem:[#allocation2 + $0x1700] ss:$16 sps:$4 sm:$0xff]  }
 0x1db   :  { %5356 = vmatprep.subr.bf16.mxu1 %v8447_v41  ;;  %v185_v39 = vld [vmem:[%s9966_s0 + $0xa0] sm:$0xff] }
 0x1dc   :  { %v209_v41 = vld [vmem:[%s9966_s0 + $0x160] sm:$0xff] }
 0x1dd   :  { %5314 = vmatpush2.bf16.msra.mxu0 %v8442_v49  ;;  %v187_v49 = vld [vmem:[%s9966_s0 + $0xb0] sm:$0xff] }
 0x1de   :  { %5357 = vmatpush2.bf16.msra.mxu1 %v8445_v51  ;;  %5315 = vmatprep.subr.bf16.mxu0 %v8450_v52  ;;  %v211_v51 = vld [vmem:[%s9966_s0 + $0x170] sm:$0xff]  ;;  %v8492_v52 = vld [vmem:[#allocation2 + $0xec] ss:$16 sps:$4 sm:$0xff]  }
 0x1df   :  { %5358 = vmatprep.subr.bf16.mxu1 %v8453_v57  ;;  %v8495_v57 = vld [vmem:[#allocation2 + $0x2ec] ss:$16 sps:$4 sm:$0xff]  }
 0x1e1   :  { %5316 = vmatpush2.bf16.msra.mxu0 %v8448_v60  ;;  %v8490_v60 = vld [vmem:[#allocation2 + $0xe8] ss:$16 sps:$4 sm:$0xff]  }
 0x1e2   :  { %5359 = vmatpush2.bf16.msra.mxu1 %v8451_v63  ;;  %5317 = vmatprep.subr.bf16.mxu0 %v8456_v2  ;;  %v8493_v63 = vld [vmem:[#allocation2 + $0x2e8] ss:$16 sps:$4 sm:$0xff]   ;;  %v9793_v2 = vpack.c.bf16 %v209_v41, %v185_v39 }
 0x1e3   :  { %5360 = vmatprep.subr.bf16.mxu1 %v8459_v3  ;;  %v9795_v3 = vpack.c.bf16 %v211_v51, %v187_v49  ;;  %v8511_v39 = vld [vmem:[#allocation2 + $0x288] ss:$16 sps:$4 sm:$0xff]   ;;  %v8522_v49 = vld [vmem:[#allocation2 + $0x4c] ss:$16 sps:$4 sm:$0xff]  }
 0x1e4   :  { %v8517_v41 = vld [vmem:[#allocation2 + $0x268] ss:$16 sps:$4 sm:$0xff]   ;;  %v8525_v51 = vld [vmem:[#allocation2 + $0x24c] ss:$16 sps:$4 sm:$0xff]  }
 0x1e5   :  { %5318 = vmatpush2.bf16.msra.mxu0 %v8454_v50  ;;  %v9797_v50 = vpop.f32.mrf.mxu0 }
 0x1e6   :  { %5361 = vmatpush2.bf16.msra.mxu1 %v8457_v4  ;;  %5319 = vmatprep.subr.bf16.mxu0 %v8462_v5  ;;  %v9799_v4 = vpop.f32.mrf.mxu1  ;;  %v8498_v5 = vld [vmem:[#allocation2 + $0xcc] ss:$16 sps:$4 sm:$0xff]  }
 0x1e7   :  { %5362 = vmatprep.subr.bf16.mxu1 %v8465_v6  ;;  %v8501_v6 = vld [vmem:[#allocation2 + $0x2cc] ss:$16 sps:$4 sm:$0xff]  }
 0x1e9   :  { %5320 = vmatpush2.bf16.msra.mxu0 %v8460_v9  ;;  %v8496_v9 = vld [vmem:[#allocation2 + $0xc8] ss:$16 sps:$4 sm:$0xff]  }
 0x1ea   :  { %5363 = vmatpush2.bf16.msra.mxu1 %v8463_v10  ;;  %5321 = vmatprep.subr.bf16.mxu0 %v8468_v11  ;;  %v8499_v10 = vld [vmem:[#allocation2 + $0x2c8] ss:$16 sps:$4 sm:$0xff]  }
 0x1eb   :  { %5364 = vmatprep.subr.bf16.mxu1 %v8471_v14 }
 0x1ed   :  { %5322 = vmatpush2.bf16.msra.mxu0 %v8466_v62 }
 0x1ee   :  { %5365 = vmatpush2.bf16.msra.mxu1 %v8469_v15  ;;  %5323 = vmatprep.subr.bf16.mxu0 %v8474_v16 }
 0x1ef   :  { %5366 = vmatprep.subr.bf16.mxu1 %v8477_v17  ;;  %v8504_v17 = vld [vmem:[#allocation2 + $0xac] ss:$16 sps:$4 sm:$0xff]  }
 0x1f1   :  { %5324 = vmatpush2.bf16.msra.mxu0 %v8472_v18  ;;  %v8507_v18 = vld [vmem:[#allocation2 + $0x2ac] ss:$16 sps:$4 sm:$0xff]  }
 0x1f2   :  { %5367 = vmatpush2.bf16.msra.mxu1 %v8475_v20  ;;  %5325 = vmatprep.subr.bf16.mxu0 %v8480_v21  ;;  %v8502_v21 = vld [vmem:[#allocation2 + $0xa8] ss:$16 sps:$4 sm:$0xff]  }
 0x1f3   :  { %5368 = vmatprep.subr.bf16.mxu1 %v8483_v22  ;;  %v8505_v22 = vld [vmem:[#allocation2 + $0x2a8] ss:$16 sps:$4 sm:$0xff]  }
 0x1f5   :  { %5326 = vmatpush2.bf16.msra.mxu0 %v8478_v23 }
 0x1f6   :  { %5369 = vmatpush2.bf16.msra.mxu1 %v8481_v24  ;;  %5327 = vmatprep.subr.bf16.mxu0 %v8486_v25  ;;  %v8510_v25 = vld [vmem:[#allocation2 + $0x8c] ss:$16 sps:$4 sm:$0xff]  }
 0x1f7   :  { %5370 = vmatprep.subr.bf16.mxu1 %v8489_v30  ;;  %v8513_v30 = vld [vmem:[#allocation2 + $0x28c] ss:$16 sps:$4 sm:$0xff]  }
 0x1f9   :  { %5328 = vmatpush2.bf16.msra.mxu0 %v8484_v37 }
 0x1fa   :  { %5371 = vmatpush2.bf16.msra.mxu1 %v8487_v38  ;;  %5383 = vmatprep.subr.bf16.mxu0 %v8492_v52  ;;  %v8508_v38 = vld [vmem:[#allocation2 + $0x88] ss:$16 sps:$4 sm:$0xff]  }
 0x1fb   :  { %5426 = vmatprep.subr.bf16.mxu1 %v8495_v57  ;;  %v8520_v52 = vld [vmem:[#allocation2 + $0x48] ss:$16 sps:$4 sm:$0xff]  }
 0x1fc   :  { %v5073_v11 = vpop.f32.mrf.mxu0  ;;  %5330 = vmatmul.mubr.bf16.vlgmr.msra.gmra.mxu0 %v9793_v2  ;;  %v8523_v57 = vld [vmem:[#allocation2 + $0x248] ss:$16 sps:$4 sm:$0xff]  }
 0x1fd   :  { %v5116_v14 = vpop.f32.mrf.mxu1  ;;  %5373 = vmatmul.mubr.bf16.vlgmr.msra.gmra.mxu1 %v9795_v3  ;;  %v5074_v62 = vadd.f32 %v5073_v11, %v9774_v61  ;;  %5384 = vmatpush1.bf16.msra.mxu0 %v8490_v60  ;;  %v8528_v60 = vld [vmem:[#allocation2 + $0x2c] ss:$16 sps:$4 sm:$0xff]   ;;  %v8532_v11 = vld [vmem:[#allocation2 + $0x8] ss:$16 sps:$4 sm:$0xff]  }
 0x1fe   :  { %5427 = vmatpush1.bf16.msra.mxu1 %v8493_v63  ;;  %v9804_v15 = vpop.f32.mrf.mxu0  ;;  %5385 = vmatprep.subr.bf16.mxu0 %v8498_v5  ;;  %v8531_v63 = vld [vmem:[#allocation2 + $0x22c] ss:$16 sps:$4 sm:$0xff]   ;;  %v8526_v5 = vld [vmem:[#allocation2 + $0x28] ss:$16 sps:$4 sm:$0xff]  }
 0x1ff   :  { %v9806_v16 = vpop.f32.mrf.mxu1  ;;  %5428 = vmatprep.subr.bf16.mxu1 %v8501_v6  ;;  %v9808_v20 = vadd.f32 %v5116_v14, %v5074_v62  ;;  %5415 = vmatprep.mubr.bf16.mxu0 %v9567_v53  ;;  %v8516_v53 = vld [vmem:[#allocation2 + $0x6c] ss:$16 sps:$4 sm:$0xff]   ;;  %v8529_v6 = vld [vmem:[#allocation2 + $0x228] ss:$16 sps:$4 sm:$0xff]  }
 0x200   :  { %5458 = vmatprep.mubr.bf16.mxu1 %v9569_v54  ;;  %v5077_v23 = vpop.f32.mrf.mxu0  ;;  %v8519_v54 = vld [vmem:[#allocation2 + $0x26c] ss:$16 sps:$4 sm:$0xff]   ;;  %v8535_v14 = vld [vmem:[#allocation2 + $0x208] ss:$16 sps:$4 sm:$0xff]  }
 0x201   :  { %v5078_v61 = vadd.f32 %v5077_v23, %v9779_v8  ;;  %5386 = vmatpush1.bf16.msra.mxu0 %v8496_v9  ;;  %v5120_v24 = vpop.f32.mrf.mxu1  ;;  %v8514_v8 = vld [vmem:[#allocation2 + $0x68] ss:$16 sps:$4 sm:$0xff]   ;;  %v8534_v9 = vld [vmem:[#allocation2 + $0xc] ss:$16 sps:$4 sm:$0xff]  }
 0x202   :  { %5429 = vmatpush1.bf16.msra.mxu1 %v8499_v10  ;;  %5387 = vmatprep.subr.bf16.mxu0 %v8504_v17  ;;  %v8537_v10 = vld [vmem:[#allocation2 + $0x20c] ss:$16 sps:$4 sm:$0xff]  }
 0x203   :  { %5430 = vmatprep.subr.bf16.mxu1 %v8507_v18  ;;  %v9813_v37 = vadd.f32 %v5120_v24, %v5078_v61  ;;  %v8540_v62 = vld [vmem:[#allocation2 + $0x1ec] ss:$16 sps:$4 sm:$0xff]   ;;  %v8538_v18 = vld [vmem:[#allocation2 + $0x1e8] ss:$16 sps:$4 sm:$0xff]  }
 0x204   :  { %v8543_v17 = vld [vmem:[#allocation2 + $0x3ec] ss:$16 sps:$4 sm:$0xff]   ;;  %v8544_v61 = vld [vmem:[#allocation2 + $0x1c8] ss:$16 sps:$4 sm:$0xff]  }
 0x205   :  { %5388 = vmatpush1.bf16.msra.mxu0 %v8502_v21  ;;  %v8541_v21 = vld [vmem:[#allocation2 + $0x3e8] ss:$16 sps:$4 sm:$0xff]   ;;  %v8549_v23 = vld [vmem:[#allocation2 + $0x3cc] ss:$16 sps:$4 sm:$0xff]  }
 0x206   :  { %5431 = vmatpush1.bf16.msra.mxu1 %v8505_v22  ;;  %5389 = vmatprep.subr.bf16.mxu0 %v8510_v25  ;;  %v8546_v22 = vld [vmem:[#allocation2 + $0x1cc] ss:$16 sps:$4 sm:$0xff]   ;;  %v8547_v24 = vld [vmem:[#allocation2 + $0x3c8] ss:$16 sps:$4 sm:$0xff]  }
 0x207   :  { %5432 = vmatprep.subr.bf16.mxu1 %v8513_v30  ;;  %v8552_v25 = vld [vmem:[#allocation2 + $0x1ac] ss:$16 sps:$4 sm:$0xff]  }
 0x208   :  { %v8555_v30 = vld [vmem:[#allocation2 + $0x3ac] ss:$16 sps:$4 sm:$0xff]  }
 0x209   :  { %5390 = vmatpush1.bf16.msra.mxu0 %v8508_v38  ;;  %v8550_v38 = vld [vmem:[#allocation2 + $0x1a8] ss:$16 sps:$4 sm:$0xff]  }
 0x20a   :  { %5433 = vmatpush1.bf16.msra.mxu1 %v8511_v39  ;;  %5391 = vmatprep.subr.bf16.mxu0 %v8516_v53  ;;  %v8553_v39 = vld [vmem:[#allocation2 + $0x3a8] ss:$16 sps:$4 sm:$0xff]   ;;  %v8558_v53 = vld [vmem:[#allocation2 + $0x18c] ss:$16 sps:$4 sm:$0xff]  }
 0x20b   :  { %5434 = vmatprep.subr.bf16.mxu1 %v8519_v54  ;;  %v8561_v54 = vld [vmem:[#allocation2 + $0x38c] ss:$16 sps:$4 sm:$0xff]  }
 0x20d   :  { %5392 = vmatpush1.bf16.msra.mxu0 %v8514_v8  ;;  %v8556_v8 = vld [vmem:[#allocation2 + $0x188] ss:$16 sps:$4 sm:$0xff]  }
 0x20e   :  { %5435 = vmatpush1.bf16.msra.mxu1 %v8517_v41  ;;  %5393 = vmatprep.subr.bf16.mxu0 %v8522_v49  ;;  %v8559_v41 = vld [vmem:[#allocation2 + $0x388] ss:$16 sps:$4 sm:$0xff]   ;;  %v8564_v49 = vld [vmem:[#allocation2 + $0x16c] ss:$16 sps:$4 sm:$0xff]  }
 0x20f   :  { %5436 = vmatprep.subr.bf16.mxu1 %v8525_v51  ;;  %v8567_v51 = vld [vmem:[#allocation2 + $0x36c] ss:$16 sps:$4 sm:$0xff]  }
 0x211   :  { %5394 = vmatpush1.bf16.msra.mxu0 %v8520_v52  ;;  %v8562_v52 = vld [vmem:[#allocation2 + $0x168] ss:$16 sps:$4 sm:$0xff]  }
 0x212   :  { %5437 = vmatpush1.bf16.msra.mxu1 %v8523_v57  ;;  %5395 = vmatprep.subr.bf16.mxu0 %v8528_v60  ;;  %v8565_v57 = vld [vmem:[#allocation2 + $0x368] ss:$16 sps:$4 sm:$0xff]   ;;  %v8570_v60 = vld [vmem:[#allocation2 + $0x14c] ss:$16 sps:$4 sm:$0xff]  }
 0x213   :  { %5438 = vmatprep.subr.bf16.mxu1 %v8531_v63  ;;  %v8573_v63 = vld [vmem:[#allocation2 + $0x34c] ss:$16 sps:$4 sm:$0xff]  }
 0x215   :  { %5396 = vmatpush1.bf16.msra.mxu0 %v8526_v5  ;;  %v8568_v5 = vld [vmem:[#allocation2 + $0x148] ss:$16 sps:$4 sm:$0xff]  }
 0x216   :  { %5439 = vmatpush1.bf16.msra.mxu1 %v8529_v6  ;;  %5397 = vmatprep.subr.bf16.mxu0 %v8534_v9  ;;  %v8571_v6 = vld [vmem:[#allocation2 + $0x348] ss:$16 sps:$4 sm:$0xff]   ;;  %v8576_v9 = vld [vmem:[#allocation2 + $0x12c] ss:$16 sps:$4 sm:$0xff]  }
 0x217   :  { %5440 = vmatprep.subr.bf16.mxu1 %v8537_v10  ;;  %v8579_v10 = vld [vmem:[#allocation2 + $0x32c] ss:$16 sps:$4 sm:$0xff]  }
 0x219   :  { %5398 = vmatpush1.bf16.msra.mxu0 %v8532_v11  ;;  %v8574_v11 = vld [vmem:[#allocation2 + $0x128] ss:$16 sps:$4 sm:$0xff]  }
 0x21a   :  { %5441 = vmatpush1.bf16.msra.mxu1 %v8535_v14  ;;  %5399 = vmatprep.subr.bf16.mxu0 %v8540_v62  ;;  %v8577_v14 = vld [vmem:[#allocation2 + $0x328] ss:$16 sps:$4 sm:$0xff]   ;;  %v8582_v62 = vld [vmem:[#allocation2 + $0x10c] ss:$16 sps:$4 sm:$0xff]  }
 0x21b   :  { %5442 = vmatprep.subr.bf16.mxu1 %v8543_v17  ;;  %v8585_v17 = vld [vmem:[#allocation2 + $0x30c] ss:$16 sps:$4 sm:$0xff]  }
 0x21d   :  { %5400 = vmatpush2.bf16.msra.mxu0 %v8538_v18  ;;  %v8580_v18 = vld [vmem:[#allocation2 + $0x108] ss:$16 sps:$4 sm:$0xff]  }
 0x21e   :  { %5443 = vmatpush2.bf16.msra.mxu1 %v8541_v21  ;;  %5401 = vmatprep.subr.bf16.mxu0 %v8546_v22  ;;  %v8583_v21 = vld [vmem:[#allocation2 + $0x308] ss:$16 sps:$4 sm:$0xff]   ;;  %v8588_v22 = vld [vmem:[#allocation2 + $0x4ec] ss:$16 sps:$4 sm:$0xff]  }
 0x21f   :  { %5444 = vmatprep.subr.bf16.mxu1 %v8549_v23  ;;  %v8591_v23 = vld [vmem:[#allocation2 + $0x6ec] ss:$16 sps:$4 sm:$0xff]  }
 0x221   :  { %5402 = vmatpush2.bf16.msra.mxu0 %v8544_v61  ;;  %v8586_v61 = vld [vmem:[#allocation2 + $0x4e8] ss:$16 sps:$4 sm:$0xff]  }
 0x222   :  { %5445 = vmatpush2.bf16.msra.mxu1 %v8547_v24  ;;  %5403 = vmatprep.subr.bf16.mxu0 %v8552_v25  ;;  %v8589_v24 = vld [vmem:[#allocation2 + $0x6e8] ss:$16 sps:$4 sm:$0xff]   ;;  %v9815_v25 = vpop.f32.mrf.mxu0 }
 0x223   :  { %5446 = vmatprep.subr.bf16.mxu1 %v8555_v30  ;;  %v9817_v30 = vpop.f32.mrf.mxu1 }
 0x225   :  { %5404 = vmatpush2.bf16.msra.mxu0 %v8550_v38  ;;  %v8594_v38 = vld [vmem:[#allocation2 + $0x4cc] ss:$16 sps:$4 sm:$0xff]  }
 0x226   :  { %5447 = vmatpush2.bf16.msra.mxu1 %v8553_v39  ;;  %5405 = vmatprep.subr.bf16.mxu0 %v8558_v53  ;;  %v8597_v39 = vld [vmem:[#allocation2 + $0x6cc] ss:$16 sps:$4 sm:$0xff]   ;;  %v8592_v53 = vld [vmem:[#allocation2 + $0x4c8] ss:$16 sps:$4 sm:$0xff]  }
 0x227   :  { %5448 = vmatprep.subr.bf16.mxu1 %v8561_v54  ;;  %v8595_v54 = vld [vmem:[#allocation2 + $0x6c8] ss:$16 sps:$4 sm:$0xff]  }
 0x229   :  { %5406 = vmatpush2.bf16.msra.mxu0 %v8556_v8 }
 0x22a   :  { %5449 = vmatpush2.bf16.msra.mxu1 %v8559_v41  ;;  %5407 = vmatprep.subr.bf16.mxu0 %v8564_v49 }
 0x22b   :  { %5450 = vmatprep.subr.bf16.mxu1 %v8567_v51 }
 0x22d   :  { %5408 = vmatpush2.bf16.msra.mxu0 %v8562_v52 }
 0x22e   :  { %5451 = vmatpush2.bf16.msra.mxu1 %v8565_v57  ;;  %5409 = vmatprep.subr.bf16.mxu0 %v8570_v60  ;;  %v8600_v57 = vld [vmem:[#allocation2 + $0x4ac] ss:$16 sps:$4 sm:$0xff]  }
 0x22f   :  { %5452 = vmatprep.subr.bf16.mxu1 %v8573_v63  ;;  %v8603_v60 = vld [vmem:[#allocation2 + $0x6ac] ss:$16 sps:$4 sm:$0xff]  }
 0x231   :  { %5410 = vmatpush2.bf16.msra.mxu0 %v8568_v5  ;;  %v8598_v5 = vld [vmem:[#allocation2 + $0x4a8] ss:$16 sps:$4 sm:$0xff]  }
 0x232   :  { %5453 = vmatpush2.bf16.msra.mxu1 %v8571_v6  ;;  %5411 = vmatprep.subr.bf16.mxu0 %v8576_v9  ;;  %v8601_v6 = vld [vmem:[#allocation2 + $0x6a8] ss:$16 sps:$4 sm:$0xff]   ;;  %v8606_v9 = vld [vmem:[#allocation2 + $0x48c] ss:$16 sps:$4 sm:$0xff]  }
 0x233   :  { %5454 = vmatprep.subr.bf16.mxu1 %v8579_v10  ;;  %v8609_v10 = vld [vmem:[#allocation2 + $0x68c] ss:$16 sps:$4 sm:$0xff]  }
 0x235   :  { %5412 = vmatpush2.bf16.msra.mxu0 %v8574_v11 }
 0x236   :  { %5455 = vmatpush2.bf16.msra.mxu1 %v8577_v14  ;;  %5413 = vmatprep.subr.bf16.mxu0 %v8582_v62  ;;  %v8604_v14 = vld [vmem:[#allocation2 + $0x488] ss:$16 sps:$4 sm:$0xff]  }
 0x237   :  { %5456 = vmatprep.subr.bf16.mxu1 %v8585_v17  ;;  %v8607_v62 = vld [vmem:[#allocation2 + $0x688] ss:$16 sps:$4 sm:$0xff]  }
 0x238   :  { %v8613_v17 = vld [vmem:[#allocation2 + $0x668] ss:$16 sps:$4 sm:$0xff]  }
 0x239   :  { %5414 = vmatpush2.bf16.msra.mxu0 %v8580_v18  ;;  %v8618_v18 = vld [vmem:[#allocation2 + $0x44c] ss:$16 sps:$4 sm:$0xff]  }
 0x23a   :  { %5457 = vmatpush2.bf16.msra.mxu1 %v8583_v21  ;;  %5469 = vmatprep.subr.bf16.mxu0 %v8588_v22  ;;  %v8621_v21 = vld [vmem:[#allocation2 + $0x64c] ss:$16 sps:$4 sm:$0xff]   ;;  %v8616_v22 = vld [vmem:[#allocation2 + $0x448] ss:$16 sps:$4 sm:$0xff]  }
 0x23b   :  { %5512 = vmatprep.subr.bf16.mxu1 %v8591_v23  ;;  %v8619_v23 = vld [vmem:[#allocation2 + $0x648] ss:$16 sps:$4 sm:$0xff]  }
 0x23c   :  { %v5159_v8 = vpop.f32.mrf.mxu0  ;;  %5416 = vmatmul.mubr.bf16.vlgmr.msra.gmra.mxu0 %v9585_v12 }
 0x23d   :  { %v5202_v41 = vpop.f32.mrf.mxu1  ;;  %5459 = vmatmul.mubr.bf16.vlgmr.msra.gmra.mxu1 %v9587_v13  ;;  %v5160_v49 = vadd.f32 %v5159_v8, %v9808_v20  ;;  %5470 = vmatpush1.bf16.msra.mxu0 %v8586_v61  ;;  %v8624_v61 = vld [vmem:[#allocation2 + $0x42c] ss:$16 sps:$4 sm:$0xff]   ;;  %v8628_v8 = vld [vmem:[#allocation2 + $0x408] ss:$16 sps:$4 sm:$0xff]  }
 0x23e   :  { %5513 = vmatpush1.bf16.msra.mxu1 %v8589_v24  ;;  %v9822_v51 = vpop.f32.mrf.mxu0  ;;  %5471 = vmatprep.subr.bf16.mxu0 %v8594_v38  ;;  %v8627_v24 = vld [vmem:[#allocation2 + $0x62c] ss:$16 sps:$4 sm:$0xff]   ;;  %v8622_v38 = vld [vmem:[#allocation2 + $0x428] ss:$16 sps:$4 sm:$0xff]  }
 0x23f   :  { %v9824_v52 = vpop.f32.mrf.mxu1  ;;  %5514 = vmatprep.subr.bf16.mxu1 %v8597_v39  ;;  %v9826_v63 = vadd.f32 %v5202_v41, %v5160_v49  ;;  %5501 = vmatprep.mubr.bf16.mxu0 %v9600_v45  ;;  %v8612_v45 = vld [vmem:[#allocation2 + $0x46c] ss:$16 sps:$4 sm:$0xff]   ;;  %v8625_v39 = vld [vmem:[#allocation2 + $0x628] ss:$16 sps:$4 sm:$0xff]  }
 0x240   :  { %5544 = vmatprep.mubr.bf16.mxu1 %v9605_v47  ;;  %v5163_v12 = vpop.f32.mrf.mxu0  ;;  %v8615_v47 = vld [vmem:[#allocation2 + $0x66c] ss:$16 sps:$4 sm:$0xff]   ;;  %v8631_v41 = vld [vmem:[#allocation2 + $0x608] ss:$16 sps:$4 sm:$0xff]  }
 0x241   :  { %v5164_v13 = vadd.f32 %v5163_v12, %v9813_v37  ;;  %5472 = vmatpush1.bf16.msra.mxu0 %v8592_v53  ;;  %v5206_v20 = vpop.f32.mrf.mxu1  ;;  %v8610_v37 = vld [vmem:[#allocation2 + $0x468] ss:$16 sps:$4 sm:$0xff]   ;;  %v8630_v53 = vld [vmem:[#allocation2 + $0x40c] ss:$16 sps:$4 sm:$0xff]  }
 0x242   :  { %5515 = vmatpush1.bf16.msra.mxu1 %v8595_v54  ;;  %5473 = vmatprep.subr.bf16.mxu0 %v8600_v57  ;;  %v8633_v54 = vld [vmem:[#allocation2 + $0x60c] ss:$16 sps:$4 sm:$0xff]  }
 0x243   :  { %5516 = vmatprep.subr.bf16.mxu1 %v8603_v60  ;;  %v9831_v11 = vadd.f32 %v5206_v20, %v5164_v13  ;;  %v8636_v49 = vld [vmem:[#allocation2 + $0x5ec] ss:$16 sps:$4 sm:$0xff]   ;;  %v8634_v60 = vld [vmem:[#allocation2 + $0x5e8] ss:$16 sps:$4 sm:$0xff]  }
 0x244   :  { %v8639_v57 = vld [vmem:[#allocation2 + $0x7ec] ss:$16 sps:$4 sm:$0xff]   ;;  %v8640_v13 = vld [vmem:[#allocation2 + $0x5c8] ss:$16 sps:$4 sm:$0xff]  }
 0x245   :  { %5474 = vmatpush1.bf16.msra.mxu0 %v8598_v5  ;;  %v8637_v5 = vld [vmem:[#allocation2 + $0x7e8] ss:$16 sps:$4 sm:$0xff]   ;;  %v8645_v12 = vld [vmem:[#allocation2 + $0x7cc] ss:$16 sps:$4 sm:$0xff]  }
 0x246   :  { %5517 = vmatpush1.bf16.msra.mxu1 %v8601_v6  ;;  %5475 = vmatprep.subr.bf16.mxu0 %v8606_v9  ;;  %v8642_v6 = vld [vmem:[#allocation2 + $0x5cc] ss:$16 sps:$4 sm:$0xff]   ;;  %v8643_v20 = vld [vmem:[#allocation2 + $0x7c8] ss:$16 sps:$4 sm:$0xff]  }
 0x247   :  { %5518 = vmatprep.subr.bf16.mxu1 %v8609_v10  ;;  %v8648_v9 = vld [vmem:[#allocation2 + $0x5ac] ss:$16 sps:$4 sm:$0xff]  }
 0x248   :  { %v8651_v10 = vld [vmem:[#allocation2 + $0x7ac] ss:$16 sps:$4 sm:$0xff]  }
 0x249   :  { %5476 = vmatpush1.bf16.msra.mxu0 %v8604_v14  ;;  %v8646_v14 = vld [vmem:[#allocation2 + $0x5a8] ss:$16 sps:$4 sm:$0xff]  }
 0x24a   :  { %5519 = vmatpush1.bf16.msra.mxu1 %v8607_v62  ;;  %5477 = vmatprep.subr.bf16.mxu0 %v8612_v45  ;;  %v8649_v62 = vld [vmem:[#allocation2 + $0x7a8] ss:$16 sps:$4 sm:$0xff]   ;;  %v8654_v45 = vld [vmem:[#allocation2 + $0x58c] ss:$16 sps:$4 sm:$0xff]  }
 0x24b   :  { %5520 = vmatprep.subr.bf16.mxu1 %v8615_v47  ;;  %v8657_v47 = vld [vmem:[#allocation2 + $0x78c] ss:$16 sps:$4 sm:$0xff]  }
 0x24d   :  { %5478 = vmatpush1.bf16.msra.mxu0 %v8610_v37  ;;  %v8652_v37 = vld [vmem:[#allocation2 + $0x588] ss:$16 sps:$4 sm:$0xff]  }
 0x24e   :  { %5521 = vmatpush1.bf16.msra.mxu1 %v8613_v17  ;;  %5479 = vmatprep.subr.bf16.mxu0 %v8618_v18  ;;  %v8655_v17 = vld [vmem:[#allocation2 + $0x788] ss:$16 sps:$4 sm:$0xff]   ;;  %v8660_v18 = vld [vmem:[#allocation2 + $0x56c] ss:$16 sps:$4 sm:$0xff]  }
 0x24f   :  { %5522 = vmatprep.subr.bf16.mxu1 %v8621_v21  ;;  %v8663_v21 = vld [vmem:[#allocation2 + $0x76c] ss:$16 sps:$4 sm:$0xff]  }
 0x251   :  { %5480 = vmatpush1.bf16.msra.mxu0 %v8616_v22  ;;  %v8658_v22 = vld [vmem:[#allocation2 + $0x568] ss:$16 sps:$4 sm:$0xff]  }
 0x252   :  { %5523 = vmatpush1.bf16.msra.mxu1 %v8619_v23  ;;  %5481 = vmatprep.subr.bf16.mxu0 %v8624_v61  ;;  %v8661_v23 = vld [vmem:[#allocation2 + $0x768] ss:$16 sps:$4 sm:$0xff]   ;;  %v8666_v61 = vld [vmem:[#allocation2 + $0x54c] ss:$16 sps:$4 sm:$0xff]  }
 0x253   :  { %5524 = vmatprep.subr.bf16.mxu1 %v8627_v24  ;;  %v8669_v24 = vld [vmem:[#allocation2 + $0x74c] ss:$16 sps:$4 sm:$0xff]  }
 0x255   :  { %5482 = vmatpush1.bf16.msra.mxu0 %v8622_v38  ;;  %v8664_v38 = vld [vmem:[#allocation2 + $0x548] ss:$16 sps:$4 sm:$0xff]  }
 0x256   :  { %5525 = vmatpush1.bf16.msra.mxu1 %v8625_v39  ;;  %5483 = vmatprep.subr.bf16.mxu0 %v8630_v53  ;;  %v8667_v39 = vld [vmem:[#allocation2 + $0x748] ss:$16 sps:$4 sm:$0xff]   ;;  %v8672_v53 = vld [vmem:[#allocation2 + $0x52c] ss:$16 sps:$4 sm:$0xff]  }
 0x257   :  { %5526 = vmatprep.subr.bf16.mxu1 %v8633_v54  ;;  %v8675_v54 = vld [vmem:[#allocation2 + $0x72c] ss:$16 sps:$4 sm:$0xff]  }
 0x259   :  { %5484 = vmatpush1.bf16.msra.mxu0 %v8628_v8  ;;  %v8670_v8 = vld [vmem:[#allocation2 + $0x528] ss:$16 sps:$4 sm:$0xff]  }
 0x25a   :  { %5527 = vmatpush1.bf16.msra.mxu1 %v8631_v41  ;;  %5485 = vmatprep.subr.bf16.mxu0 %v8636_v49  ;;  %v8673_v41 = vld [vmem:[#allocation2 + $0x728] ss:$16 sps:$4 sm:$0xff]   ;;  %v8678_v49 = vld [vmem:[#allocation2 + $0x50c] ss:$16 sps:$4 sm:$0xff]  }
 0x25b   :  { %5528 = vmatprep.subr.bf16.mxu1 %v8639_v57  ;;  %v8681_v57 = vld [vmem:[#allocation2 + $0x70c] ss:$16 sps:$4 sm:$0xff]  }
 0x25d   :  { %5486 = vmatpush2.bf16.msra.mxu0 %v8634_v60  ;;  %v8676_v60 = vld [vmem:[#allocation2 + $0x508] ss:$16 sps:$4 sm:$0xff]  }
 0x25e   :  { %5529 = vmatpush2.bf16.msra.mxu1 %v8637_v5  ;;  %5487 = vmatprep.subr.bf16.mxu0 %v8642_v6  ;;  %v8679_v5 = vld [vmem:[#allocation2 + $0x708] ss:$16 sps:$4 sm:$0xff]   ;;  %v8684_v6 = vld [vmem:[#allocation2 + $0x8ec] ss:$16 sps:$4 sm:$0xff]  }
 0x25f   :  { %5530 = vmatprep.subr.bf16.mxu1 %v8645_v12  ;;  %v8687_v12 = vld [vmem:[#allocation2 + $0xaec] ss:$16 sps:$4 sm:$0xff]  }
 0x261   :  { %5488 = vmatpush2.bf16.msra.mxu0 %v8640_v13  ;;  %v8682_v13 = vld [vmem:[#allocation2 + $0x8e8] ss:$16 sps:$4 sm:$0xff]  }
 0x262   :  { %5531 = vmatpush2.bf16.msra.mxu1 %v8643_v20  ;;  %5489 = vmatprep.subr.bf16.mxu0 %v8648_v9  ;;  %v8685_v20 = vld [vmem:[#allocation2 + $0xae8] ss:$16 sps:$4 sm:$0xff]   ;;  %v9833_v9 = vpop.f32.mrf.mxu0 }
 0x263   :  { %5532 = vmatprep.subr.bf16.mxu1 %v8651_v10  ;;  %v9835_v10 = vpop.f32.mrf.mxu1 }
 0x265   :  { %5490 = vmatpush2.bf16.msra.mxu0 %v8646_v14  ;;  %v8690_v14 = vld [vmem:[#allocation2 + $0x8cc] ss:$16 sps:$4 sm:$0xff]  }
 0x266   :  { %5533 = vmatpush2.bf16.msra.mxu1 %v8649_v62  ;;  %5491 = vmatprep.subr.bf16.mxu0 %v8654_v45  ;;  %v8693_v62 = vld [vmem:[#allocation2 + $0xacc] ss:$16 sps:$4 sm:$0xff]   ;;  %v8688_v45 = vld [vmem:[#allocation2 + $0x8c8] ss:$16 sps:$4 sm:$0xff]  }
 0x267   :  { %5534 = vmatprep.subr.bf16.mxu1 %v8657_v47  ;;  %v8691_v47 = vld [vmem:[#allocation2 + $0xac8] ss:$16 sps:$4 sm:$0xff]  }
 0x269   :  { %5492 = vmatpush2.bf16.msra.mxu0 %v8652_v37 }
 0x26a   :  { %5535 = vmatpush2.bf16.msra.mxu1 %v8655_v17  ;;  %5493 = vmatprep.subr.bf16.mxu0 %v8660_v18 }
 0x26b   :  { %5536 = vmatprep.subr.bf16.mxu1 %v8663_v21 }
 0x26d   :  { %5494 = vmatpush2.bf16.msra.mxu0 %v8658_v22 }
 0x26e   :  { %5537 = vmatpush2.bf16.msra.mxu1 %v8661_v23  ;;  %5495 = vmatprep.subr.bf16.mxu0 %v8666_v61  ;;  %v8696_v23 = vld [vmem:[#allocation2 + $0x8ac] ss:$16 sps:$4 sm:$0xff]  }
 0x26f   :  { %5538 = vmatprep.subr.bf16.mxu1 %v8669_v24  ;;  %v8699_v61 = vld [vmem:[#allocation2 + $0xaac] ss:$16 sps:$4 sm:$0xff]  }
 0x271   :  { %5496 = vmatpush2.bf16.msra.mxu0 %v8664_v38  ;;  %v8694_v38 = vld [vmem:[#allocation2 + $0x8a8] ss:$16 sps:$4 sm:$0xff]  }
 0x272   :  { %5539 = vmatpush2.bf16.msra.mxu1 %v8667_v39  ;;  %5497 = vmatprep.subr.bf16.mxu0 %v8672_v53  ;;  %v8697_v39 = vld [vmem:[#allocation2 + $0xaa8] ss:$16 sps:$4 sm:$0xff]   ;;  %v8702_v53 = vld [vmem:[#allocation2 + $0x88c] ss:$16 sps:$4 sm:$0xff]  }
 0x273   :  { %5540 = vmatprep.subr.bf16.mxu1 %v8675_v54  ;;  %v8705_v54 = vld [vmem:[#allocation2 + $0xa8c] ss:$16 sps:$4 sm:$0xff]  }
 0x275   :  { %5498 = vmatpush2.bf16.msra.mxu0 %v8670_v8 }
 0x276   :  { %5541 = vmatpush2.bf16.msra.mxu1 %v8673_v41  ;;  %5499 = vmatprep.subr.bf16.mxu0 %v8678_v49  ;;  %v8700_v41 = vld [vmem:[#allocation2 + $0x888] ss:$16 sps:$4 sm:$0xff]  }
 0x277   :  { %5542 = vmatprep.subr.bf16.mxu1 %v8681_v57  ;;  %v8703_v49 = vld [vmem:[#allocation2 + $0xa88] ss:$16 sps:$4 sm:$0xff]  }
 0x278   :  { %v8709_v57 = vld [vmem:[#allocation2 + $0xa68] ss:$16 sps:$4 sm:$0xff]  }
 0x279   :  { %5500 = vmatpush2.bf16.msra.mxu0 %v8676_v60  ;;  %v8714_v60 = vld [vmem:[#allocation2 + $0x84c] ss:$16 sps:$4 sm:$0xff]  }
 0x27a   :  { %5543 = vmatpush2.bf16.msra.mxu1 %v8679_v5  ;;  %5555 = vmatprep.subr.bf16.mxu0 %v8684_v6  ;;  %v8717_v5 = vld [vmem:[#allocation2 + $0xa4c] ss:$16 sps:$4 sm:$0xff]   ;;  %v8712_v6 = vld [vmem:[#allocation2 + $0x848] ss:$16 sps:$4 sm:$0xff]  }
 0x27b   :  { %5598 = vmatprep.subr.bf16.mxu1 %v8687_v12  ;;  %v8715_v12 = vld [vmem:[#allocation2 + $0xa48] ss:$16 sps:$4 sm:$0xff]  }
 0x27c   :  { %v5245_v37 = vpop.f32.mrf.mxu0  ;;  %5502 = vmatmul.mubr.bf16.vlgmr.msra.gmra.mxu0 %v9621_v28 }
 0x27d   :  { %v5288_v17 = vpop.f32.mrf.mxu1  ;;  %5545 = vmatmul.mubr.bf16.vlgmr.msra.gmra.mxu1 %v9623_v29  ;;  %v5246_v18 = vadd.f32 %v5245_v37, %v9826_v63  ;;  %5556 = vmatpush1.bf16.msra.mxu0 %v8682_v13  ;;  %v8720_v13 = vld [vmem:[#allocation2 + $0x82c] ss:$16 sps:$4 sm:$0xff]   ;;  %v8724_v37 = vld [vmem:[#allocation2 + $0x808] ss:$16 sps:$4 sm:$0xff]  }
 0x27e   :  { %5599 = vmatpush1.bf16.msra.mxu1 %v8685_v20  ;;  %v9840_v21 = vpop.f32.mrf.mxu0  ;;  %5557 = vmatprep.subr.bf16.mxu0 %v8690_v14  ;;  %v8723_v20 = vld [vmem:[#allocation2 + $0xa2c] ss:$16 sps:$4 sm:$0xff]   ;;  %v8718_v14 = vld [vmem:[#allocation2 + $0x828] ss:$16 sps:$4 sm:$0xff]  }
 0x27f   :  { %v9842_v22 = vpop.f32.mrf.mxu1  ;;  %5600 = vmatprep.subr.bf16.mxu1 %v8693_v62  ;;  %v9844_v24 = vadd.f32 %v5288_v17, %v5246_v18  ;;  %5587 = vmatprep.mubr.bf16.mxu0 %v9633_v40  ;;  %v8708_v40 = vld [vmem:[#allocation2 + $0x86c] ss:$16 sps:$4 sm:$0xff]   ;;  %v8721_v62 = vld [vmem:[#allocation2 + $0xa28] ss:$16 sps:$4 sm:$0xff]  }
 0x280   :  { %5630 = vmatprep.mubr.bf16.mxu1 %v9641_v46  ;;  %v5249_v28 = vpop.f32.mrf.mxu0  ;;  %v8711_v46 = vld [vmem:[#allocation2 + $0xa6c] ss:$16 sps:$4 sm:$0xff]   ;;  %v8727_v17 = vld [vmem:[#allocation2 + $0xa08] ss:$16 sps:$4 sm:$0xff]  }
 0x281   :  { %v5250_v29 = vadd.f32 %v5249_v28, %v9831_v11  ;;  %5558 = vmatpush1.bf16.msra.mxu0 %v8688_v45  ;;  %v5292_v63 = vpop.f32.mrf.mxu1  ;;  %v8706_v11 = vld [vmem:[#allocation2 + $0x868] ss:$16 sps:$4 sm:$0xff]   ;;  %v8726_v45 = vld [vmem:[#allocation2 + $0x80c] ss:$16 sps:$4 sm:$0xff]  }
 0x282   :  { %5601 = vmatpush1.bf16.msra.mxu1 %v8691_v47  ;;  %5559 = vmatprep.subr.bf16.mxu0 %v8696_v23  ;;  %v8729_v47 = vld [vmem:[#allocation2 + $0xa0c] ss:$16 sps:$4 sm:$0xff]  }
 0x283   :  { %5602 = vmatprep.subr.bf16.mxu1 %v8699_v61  ;;  %v9849_v8 = vadd.f32 %v5292_v63, %v5250_v29  ;;  %v8732_v18 = vld [vmem:[#allocation2 + $0x9ec] ss:$16 sps:$4 sm:$0xff]   ;;  %v8730_v61 = vld [vmem:[#allocation2 + $0x9e8] ss:$16 sps:$4 sm:$0xff]  }
 0x284   :  { %v8735_v23 = vld [vmem:[#allocation2 + $0xbec] ss:$16 sps:$4 sm:$0xff]   ;;  %v8736_v29 = vld [vmem:[#allocation2 + $0x9c8] ss:$16 sps:$4 sm:$0xff]  }
 0x285   :  { %5560 = vmatpush1.bf16.msra.mxu0 %v8694_v38  ;;  %v8733_v38 = vld [vmem:[#allocation2 + $0xbe8] ss:$16 sps:$4 sm:$0xff]   ;;  %v8741_v28 = vld [vmem:[#allocation2 + $0xbcc] ss:$16 sps:$4 sm:$0xff]  }
 0x286   :  { %5603 = vmatpush1.bf16.msra.mxu1 %v8697_v39  ;;  %5561 = vmatprep.subr.bf16.mxu0 %v8702_v53  ;;  %v8738_v39 = vld [vmem:[#allocation2 + $0x9cc] ss:$16 sps:$4 sm:$0xff]   ;;  %v8739_v63 = vld [vmem:[#allocation2 + $0xbc8] ss:$16 sps:$4 sm:$0xff]  }
 0x287   :  { %5604 = vmatprep.subr.bf16.mxu1 %v8705_v54  ;;  %v8744_v53 = vld [vmem:[#allocation2 + $0x9ac] ss:$16 sps:$4 sm:$0xff]  }
 0x288   :  { %v8747_v54 = vld [vmem:[#allocation2 + $0xbac] ss:$16 sps:$4 sm:$0xff]  }
 0x289   :  { %5562 = vmatpush1.bf16.msra.mxu0 %v8700_v41  ;;  %v8742_v41 = vld [vmem:[#allocation2 + $0x9a8] ss:$16 sps:$4 sm:$0xff]  }
 0x28a   :  { %5605 = vmatpush1.bf16.msra.mxu1 %v8703_v49  ;;  %5563 = vmatprep.subr.bf16.mxu0 %v8708_v40  ;;  %v8745_v49 = vld [vmem:[#allocation2 + $0xba8] ss:$16 sps:$4 sm:$0xff]   ;;  %v8750_v40 = vld [vmem:[#allocation2 + $0x98c] ss:$16 sps:$4 sm:$0xff]  }
 0x28b   :  { %5606 = vmatprep.subr.bf16.mxu1 %v8711_v46  ;;  %v8753_v46 = vld [vmem:[#allocation2 + $0xb8c] ss:$16 sps:$4 sm:$0xff]  }
 0x28d   :  { %5564 = vmatpush1.bf16.msra.mxu0 %v8706_v11  ;;  %v8748_v11 = vld [vmem:[#allocation2 + $0x988] ss:$16 sps:$4 sm:$0xff]  }
 0x28e   :  { %5607 = vmatpush1.bf16.msra.mxu1 %v8709_v57  ;;  %5565 = vmatprep.subr.bf16.mxu0 %v8714_v60  ;;  %v8751_v57 = vld [vmem:[#allocation2 + $0xb88] ss:$16 sps:$4 sm:$0xff]   ;;  %v8756_v60 = vld [vmem:[#allocation2 + $0x96c] ss:$16 sps:$4 sm:$0xff]  }
 0x28f   :  { %5608 = vmatprep.subr.bf16.mxu1 %v8717_v5  ;;  %v8759_v5 = vld [vmem:[#allocation2 + $0xb6c] ss:$16 sps:$4 sm:$0xff]  }
 0x291   :  { %5566 = vmatpush1.bf16.msra.mxu0 %v8712_v6  ;;  %v8754_v6 = vld [vmem:[#allocation2 + $0x968] ss:$16 sps:$4 sm:$0xff]  }
 0x292   :  { %5609 = vmatpush1.bf16.msra.mxu1 %v8715_v12  ;;  %5567 = vmatprep.subr.bf16.mxu0 %v8720_v13  ;;  %v8757_v12 = vld [vmem:[#allocation2 + $0xb68] ss:$16 sps:$4 sm:$0xff]   ;;  %v8762_v13 = vld [vmem:[#allocation2 + $0x94c] ss:$16 sps:$4 sm:$0xff]  }
 0x293   :  { %5610 = vmatprep.subr.bf16.mxu1 %v8723_v20  ;;  %v8765_v20 = vld [vmem:[#allocation2 + $0xb4c] ss:$16 sps:$4 sm:$0xff]  }
 0x295   :  { %5568 = vmatpush1.bf16.msra.mxu0 %v8718_v14  ;;  %v8760_v14 = vld [vmem:[#allocation2 + $0x948] ss:$16 sps:$4 sm:$0xff]  }
 0x296   :  { %5611 = vmatpush1.bf16.msra.mxu1 %v8721_v62  ;;  %5569 = vmatprep.subr.bf16.mxu0 %v8726_v45  ;;  %v8763_v62 = vld [vmem:[#allocation2 + $0xb48] ss:$16 sps:$4 sm:$0xff]   ;;  %v8768_v45 = vld [vmem:[#allocation2 + $0x92c] ss:$16 sps:$4 sm:$0xff]  }
 0x297   :  { %5612 = vmatprep.subr.bf16.mxu1 %v8729_v47  ;;  %v8771_v47 = vld [vmem:[#allocation2 + $0xb2c] ss:$16 sps:$4 sm:$0xff]  }
 0x299   :  { %5570 = vmatpush1.bf16.msra.mxu0 %v8724_v37  ;;  %v8766_v37 = vld [vmem:[#allocation2 + $0x928] ss:$16 sps:$4 sm:$0xff]  }
 0x29a   :  { %5613 = vmatpush1.bf16.msra.mxu1 %v8727_v17  ;;  %5571 = vmatprep.subr.bf16.mxu0 %v8732_v18  ;;  %v8769_v17 = vld [vmem:[#allocation2 + $0xb28] ss:$16 sps:$4 sm:$0xff]   ;;  %v8774_v18 = vld [vmem:[#allocation2 + $0x90c] ss:$16 sps:$4 sm:$0xff]  }
 0x29b   :  { %5614 = vmatprep.subr.bf16.mxu1 %v8735_v23  ;;  %v8777_v23 = vld [vmem:[#allocation2 + $0xb0c] ss:$16 sps:$4 sm:$0xff]  }
 0x29d   :  { %5572 = vmatpush2.bf16.msra.mxu0 %v8730_v61  ;;  %v8772_v61 = vld [vmem:[#allocation2 + $0x908] ss:$16 sps:$4 sm:$0xff]  }
 0x29e   :  { %5615 = vmatpush2.bf16.msra.mxu1 %v8733_v38  ;;  %5573 = vmatprep.subr.bf16.mxu0 %v8738_v39  ;;  %v8775_v38 = vld [vmem:[#allocation2 + $0xb08] ss:$16 sps:$4 sm:$0xff]   ;;  %v8780_v39 = vld [vmem:[#allocation2 + $0xcec] ss:$16 sps:$4 sm:$0xff]  }
 0x29f   :  { %5616 = vmatprep.subr.bf16.mxu1 %v8741_v28  ;;  %v8783_v28 = vld [vmem:[#allocation2 + $0xeec] ss:$16 sps:$4 sm:$0xff]  }
 0x2a1   :  { %5574 = vmatpush2.bf16.msra.mxu0 %v8736_v29  ;;  %v8778_v29 = vld [vmem:[#allocation2 + $0xce8] ss:$16 sps:$4 sm:$0xff]  }
 0x2a2   :  { %5617 = vmatpush2.bf16.msra.mxu1 %v8739_v63  ;;  %5575 = vmatprep.subr.bf16.mxu0 %v8744_v53  ;;  %v8781_v63 = vld [vmem:[#allocation2 + $0xee8] ss:$16 sps:$4 sm:$0xff]   ;;  %v9851_v53 = vpop.f32.mrf.mxu0 }
 0x2a3   :  { %5618 = vmatprep.subr.bf16.mxu1 %v8747_v54  ;;  %v9853_v54 = vpop.f32.mrf.mxu1 }
 0x2a5   :  { %5576 = vmatpush2.bf16.msra.mxu0 %v8742_v41  ;;  %v8786_v41 = vld [vmem:[#allocation2 + $0xccc] ss:$16 sps:$4 sm:$0xff]  }
 0x2a6   :  { %5619 = vmatpush2.bf16.msra.mxu1 %v8745_v49  ;;  %5577 = vmatprep.subr.bf16.mxu0 %v8750_v40  ;;  %v8789_v49 = vld [vmem:[#allocation2 + $0xecc] ss:$16 sps:$4 sm:$0xff]  }
 0x2a7   :  { %5620 = vmatprep.subr.bf16.mxu1 %v8753_v46 }
 0x2a9   :  { %5578 = vmatpush2.bf16.msra.mxu0 %v8748_v11 }
 0x2aa   :  { %5621 = vmatpush2.bf16.msra.mxu1 %v8751_v57  ;;  %5579 = vmatprep.subr.bf16.mxu0 %v8756_v60  ;;  %v8784_v57 = vld [vmem:[#allocation2 + $0xcc8] ss:$16 sps:$4 sm:$0xff]  }
 0x2ab   :  { %5622 = vmatprep.subr.bf16.mxu1 %v8759_v5  ;;  %v8787_v60 = vld [vmem:[#allocation2 + $0xec8] ss:$16 sps:$4 sm:$0xff]  }
 0x2ad   :  { %5580 = vmatpush2.bf16.msra.mxu0 %v8754_v6 }
 0x2ae   :  { %5623 = vmatpush2.bf16.msra.mxu1 %v8757_v12  ;;  %5581 = vmatprep.subr.bf16.mxu0 %v8762_v13  ;;  %v8792_v12 = vld [vmem:[#allocation2 + $0xcac] ss:$16 sps:$4 sm:$0xff]  }
 0x2af   :  { %5624 = vmatprep.subr.bf16.mxu1 %v8765_v20  ;;  %v8795_v13 = vld [vmem:[#allocation2 + $0xeac] ss:$16 sps:$4 sm:$0xff]  }
 0x2b1   :  { %5582 = vmatpush2.bf16.msra.mxu0 %v8760_v14  ;;  %v8793_v14 = vld [vmem:[#allocation2 + $0xea8] ss:$16 sps:$4 sm:$0xff]  }
 0x2b2   :  { %5625 = vmatpush2.bf16.msra.mxu1 %v8763_v62  ;;  %5583 = vmatprep.subr.bf16.mxu0 %v8768_v45  ;;  %v8798_v45 = vld [vmem:[#allocation2 + $0xc8c] ss:$16 sps:$4 sm:$0xff]  }
 0x2b3   :  { %5626 = vmatprep.subr.bf16.mxu1 %v8771_v47  ;;  %v8801_v47 = vld [vmem:[#allocation2 + $0xe8c] ss:$16 sps:$4 sm:$0xff]  }
 0x2b5   :  { %5584 = vmatpush2.bf16.msra.mxu0 %v8766_v37 }
 0x2b6   :  { %5627 = vmatpush2.bf16.msra.mxu1 %v8769_v17  ;;  %5585 = vmatprep.subr.bf16.mxu0 %v8774_v18 }
 0x2b7   :  { %5628 = vmatprep.subr.bf16.mxu1 %v8777_v23  ;;  %v8799_v23 = vld [vmem:[#allocation2 + $0xe88] ss:$16 sps:$4 sm:$0xff]  }
 0x2b9   :  { %5586 = vmatpush2.bf16.msra.mxu0 %v8772_v61 }
 0x2ba   :  { %5629 = vmatpush2.bf16.msra.mxu1 %v8775_v38  ;;  %5641 = vmatprep.subr.bf16.mxu0 %v8780_v39  ;;  %v8802_v38 = vld [vmem:[#allocation2 + $0xc68] ss:$16 sps:$4 sm:$0xff]  }
 0x2bb   :  { %5684 = vmatprep.subr.bf16.mxu1 %v8783_v28  ;;  %v8805_v39 = vld [vmem:[#allocation2 + $0xe68] ss:$16 sps:$4 sm:$0xff]   ;;  %v8810_v28 = vld [vmem:[#allocation2 + $0xc4c] ss:$16 sps:$4 sm:$0xff]  }
 0x2bc   :  { %v5331_v40 = vpop.f32.mrf.mxu0  ;;  %5588 = vmatmul.mubr.bf16.vlgmr.msra.gmra.mxu0 %v9666_v58 }
 0x2bd   :  { %v5374_v46 = vpop.f32.mrf.mxu1  ;;  %5631 = vmatmul.mubr.bf16.vlgmr.msra.gmra.mxu1 %v9668_v59  ;;  %v5332_v11 = vadd.f32 %v5331_v40, %v9844_v24  ;;  %5642 = vmatpush1.bf16.msra.mxu0 %v8778_v29  ;;  %v8790_v24 = vld [vmem:[#allocation2 + $0xca8] ss:$16 sps:$4 sm:$0xff]   ;;  %v8813_v29 = vld [vmem:[#allocation2 + $0xe4c] ss:$16 sps:$4 sm:$0xff]  }
 0x2be   :  { %5685 = vmatpush1.bf16.msra.mxu1 %v8781_v63  ;;  %v9858_v5 = vpop.f32.mrf.mxu0  ;;  %5643 = vmatprep.subr.bf16.mxu0 %v8786_v41  ;;  %v8808_v63 = vld [vmem:[#allocation2 + $0xc48] ss:$16 sps:$4 sm:$0xff]   ;;  %v8819_v40 = vld [vmem:[#allocation2 + $0xe2c] ss:$16 sps:$4 sm:$0xff]  }
 0x2bf   :  { %v9860_v6 = vpop.f32.mrf.mxu1  ;;  %5686 = vmatprep.subr.bf16.mxu1 %v8789_v49  ;;  %v5375_v20 = vadd.f32 %v5374_v46, %v5332_v11  ;;  %5673 = vmatprep.mubr.bf16.mxu0 %v9673_v0  ;;  %v8796_v0 = vld [vmem:[#allocation2 + $0xc88] ss:$16 sps:$4 sm:$0xff]   ;;  %v8816_v49 = vld [vmem:[#allocation2 + $0xc2c] ss:$16 sps:$4 sm:$0xff]  }
 0x2c0   :  { %5716 = vmatprep.mubr.bf16.mxu1 %v9675_v1  ;;  %v5335_v58 = vpop.f32.mrf.mxu0  ;;  %v8804_v1 = vld [vmem:[#allocation2 + $0xc6c] ss:$16 sps:$4 sm:$0xff]   ;;  %v8811_v41 = vld [vmem:[#allocation2 + $0xe48] ss:$16 sps:$4 sm:$0xff]  }
 0x2c1   :  { %v5336_v59 = vadd.f32 %v5335_v58, %v9849_v8  ;;  %5644 = vmatpush1.bf16.msra.mxu0 %v8784_v57  ;;  %v5378_v62 = vpop.f32.mrf.mxu1  ;;  %v5899_v17 = vmax.f32 %v5375_v20, 0.0  ;;  %v8807_v8 = vld [vmem:[#allocation2 + $0xe6c] ss:$16 sps:$4 sm:$0xff]   ;;  %v8814_v46 = vld [vmem:[#allocation2 + $0xc28] ss:$16 sps:$4 sm:$0xff]  }
 0x2c2   :  { %5687 = vmatpush1.bf16.msra.mxu1 %v8787_v60  ;;  %5645 = vmatprep.subr.bf16.mxu0 %v8792_v12  ;;  %v8817_v11 = vld [vmem:[#allocation2 + $0xe28] ss:$16 sps:$4 sm:$0xff]   ;;  %v8822_v57 = vld [vmem:[#allocation2 + $0xc0c] ss:$16 sps:$4 sm:$0xff]  }
 0x2c3   :  { %5688 = vmatprep.subr.bf16.mxu1 %v8795_v13  ;;  %v5379_v37 = vadd.f32 %v5378_v62, %v5336_v59  ;;  %v8825_v60 = vld [vmem:[#allocation2 + $0xe0c] ss:$16 sps:$4 sm:$0xff]   ;;  %v8820_v12 = vld [vmem:[#allocation2 + $0xc08] ss:$16 sps:$4 sm:$0xff]  }
 0x2c4   :  { %v8823_v13 = vld [vmem:[#allocation2 + $0xe08] ss:$16 sps:$4 sm:$0xff]   ;;  %v8828_v20 = vld [vmem:[#allocation2 + $0xdec] ss:$16 sps:$4 sm:$0xff]  }
 0x2c5   :  { %v5903_v18 = vmax.f32 %v5379_v37, 0.0  ;;  %5646 = vmatpush1.bf16.msra.mxu0 %v8790_v24  ;;  %v8831_v58 = vld [vmem:[#allocation2 + $0xfec] ss:$16 sps:$4 sm:$0xff]   ;;  %v8826_v59 = vld [vmem:[#allocation2 + $0xde8] ss:$16 sps:$4 sm:$0xff]  }
 0x2c6   :  { %5689 = vmatpush1.bf16.msra.mxu1 %v8793_v14  ;;  %5647 = vmatprep.subr.bf16.mxu0 %v8798_v45  ;;  %v8829_v24 = vld [vmem:[#allocation2 + $0xfe8] ss:$16 sps:$4 sm:$0xff]   ;;  %v8834_v14 = vld [vmem:[#allocation2 + $0xdcc] ss:$16 sps:$4 sm:$0xff]  }
 0x2c7   :  { %5690 = vmatprep.subr.bf16.mxu1 %v8801_v47  ;;  %v9865_v61 = vpack.c.bf16 %v5903_v18, %v5899_v17  ;;  %v8837_v62 = vld [vmem:[#allocation2 + $0xfcc] ss:$16 sps:$4 sm:$0xff]   ;;  %v8832_v45 = vld [vmem:[#allocation2 + $0xdc8] ss:$16 sps:$4 sm:$0xff]  }
 0x2c8   :  { %v8835_v47 = vld [vmem:[#allocation2 + $0xfc8] ss:$16 sps:$4 sm:$0xff]   ;;  %v8840_v37 = vld [vmem:[#allocation2 + $0xdac] ss:$16 sps:$4 sm:$0xff]  }
 0x2c9   :  { %5648 = vmatpush1.bf16.msra.mxu0 %v8796_v0  ;;  %v8843_v17 = vld [vmem:[#allocation2 + $0xfac] ss:$16 sps:$4 sm:$0xff]   ;;  %v8838_v18 = vld [vmem:[#allocation2 + $0xda8] ss:$16 sps:$4 sm:$0xff]  }
 0x2ca   :  { %5691 = vmatpush1.bf16.msra.mxu1 %v8799_v23  ;;  %5649 = vmatprep.subr.bf16.mxu0 %v8804_v1  ;;  %v8841_v0 = vld [vmem:[#allocation2 + $0xfa8] ss:$16 sps:$4 sm:$0xff]   ;;  %v8846_v23 = vld [vmem:[#allocation2 + $0xd8c] ss:$16 sps:$4 sm:$0xff]  }
 0x2cb   :  { %5692 = vmatprep.subr.bf16.mxu1 %v8807_v8  ;;  %v8849_v1 = vld [vmem:[#allocation2 + $0xf8c] ss:$16 sps:$4 sm:$0xff]   ;;  %v8844_v8 = vld [vmem:[#allocation2 + $0xd88] ss:$16 sps:$4 sm:$0xff]  }
 0x2cd   :  { %5650 = vmatpush1.bf16.msra.mxu0 %v8802_v38  ;;  %v8847_v38 = vld [vmem:[#allocation2 + $0xf88] ss:$16 sps:$4 sm:$0xff]  }
 0x2ce   :  { %5693 = vmatpush1.bf16.msra.mxu1 %v8805_v39  ;;  %5651 = vmatprep.subr.bf16.mxu0 %v8810_v28  ;;  %v8852_v39 = vld [vmem:[#allocation2 + $0xd6c] ss:$16 sps:$4 sm:$0xff]  }
 0x2cf   :  { %5694 = vmatprep.subr.bf16.mxu1 %v8813_v29  ;;  %v8855_v28 = vld [vmem:[#allocation2 + $0xf6c] ss:$16 sps:$4 sm:$0xff]   ;;  %v8850_v29 = vld [vmem:[#allocation2 + $0xd68] ss:$16 sps:$4 sm:$0xff]  }
 0x2d1   :  { %5652 = vmatpush1.bf16.msra.mxu0 %v8808_v63  ;;  %v8853_v63 = vld [vmem:[#allocation2 + $0xf68] ss:$16 sps:$4 sm:$0xff]  }
 0x2d2   :  { %5695 = vmatpush1.bf16.msra.mxu1 %v8811_v41  ;;  %5653 = vmatprep.subr.bf16.mxu0 %v8816_v49  ;;  %v8858_v41 = vld [vmem:[#allocation2 + $0xd4c] ss:$16 sps:$4 sm:$0xff]  }
 0x2d3   :  { %5696 = vmatprep.subr.bf16.mxu1 %v8819_v40  ;;  %v8861_v49 = vld [vmem:[#allocation2 + $0xf4c] ss:$16 sps:$4 sm:$0xff]   ;;  %v8856_v40 = vld [vmem:[#allocation2 + $0xd48] ss:$16 sps:$4 sm:$0xff]  }
 0x2d5   :  { %5654 = vmatpush1.bf16.msra.mxu0 %v8814_v46  ;;  %v8859_v46 = vld [vmem:[#allocation2 + $0xf48] ss:$16 sps:$4 sm:$0xff]  }
 0x2d6   :  { %5697 = vmatpush1.bf16.msra.mxu1 %v8817_v11  ;;  %5655 = vmatprep.subr.bf16.mxu0 %v8822_v57  ;;  %v8864_v11 = vld [vmem:[#allocation2 + $0xd2c] ss:$16 sps:$4 sm:$0xff]  }
 0x2d7   :  { %5698 = vmatprep.subr.bf16.mxu1 %v8825_v60  ;;  %v8867_v57 = vld [vmem:[#allocation2 + $0xf2c] ss:$16 sps:$4 sm:$0xff]   ;;  %v8862_v60 = vld [vmem:[#allocation2 + $0xd28] ss:$16 sps:$4 sm:$0xff]  }
 0x2d9   :  { %5656 = vmatpush1.bf16.msra.mxu0 %v8820_v12  ;;  %v8865_v12 = vld [vmem:[#allocation2 + $0xf28] ss:$16 sps:$4 sm:$0xff]  }
 0x2da   :  { %5699 = vmatpush1.bf16.msra.mxu1 %v8823_v13  ;;  %5657 = vmatprep.subr.bf16.mxu0 %v8828_v20  ;;  %v8870_v13 = vld [vmem:[#allocation2 + $0xd0c] ss:$16 sps:$4 sm:$0xff]  }
 0x2db   :  { %5700 = vmatprep.subr.bf16.mxu1 %v8831_v58  ;;  %v8873_v20 = vld [vmem:[#allocation2 + $0xf0c] ss:$16 sps:$4 sm:$0xff]   ;;  %v8868_v58 = vld [vmem:[#allocation2 + $0xd08] ss:$16 sps:$4 sm:$0xff]  }
 0x2dd   :  { %5658 = vmatpush2.bf16.msra.mxu0 %v8826_v59  ;;  %v8871_v59 = vld [vmem:[#allocation2 + $0xf08] ss:$16 sps:$4 sm:$0xff]  }
 0x2de   :  { %5701 = vmatpush2.bf16.msra.mxu1 %v8829_v24  ;;  %5659 = vmatprep.subr.bf16.mxu0 %v8834_v14  ;;  %v8876_v24 = vld [vmem:[#allocation2 + $0x10ec] ss:$16 sps:$4 sm:$0xff]  }
 0x2df   :  { %5702 = vmatprep.subr.bf16.mxu1 %v8837_v62  ;;  %v8879_v14 = vld [vmem:[#allocation2 + $0x12ec] ss:$16 sps:$4 sm:$0xff]   ;;  %v8874_v62 = vld [vmem:[#allocation2 + $0x10e8] ss:$16 sps:$4 sm:$0xff]  }
 0x2e1   :  { %5660 = vmatpush2.bf16.msra.mxu0 %v8832_v45  ;;  %v8877_v45 = vld [vmem:[#allocation2 + $0x12e8] ss:$16 sps:$4 sm:$0xff]  }
 0x2e2   :  { %5703 = vmatpush2.bf16.msra.mxu1 %v8835_v47  ;;  %5661 = vmatprep.subr.bf16.mxu0 %v8840_v37  ;;  %v8882_v47 = vld [vmem:[#allocation2 + $0x10cc] ss:$16 sps:$4 sm:$0xff]  }
 0x2e3   :  { %5704 = vmatprep.subr.bf16.mxu1 %v8843_v17  ;;  %v8885_v37 = vld [vmem:[#allocation2 + $0x12cc] ss:$16 sps:$4 sm:$0xff]   ;;  %v8880_v17 = vld [vmem:[#allocation2 + $0x10c8] ss:$16 sps:$4 sm:$0xff]  }
 0x2e5   :  { %5662 = vmatpush2.bf16.msra.mxu0 %v8838_v18  ;;  %v8883_v18 = vld [vmem:[#allocation2 + $0x12c8] ss:$16 sps:$4 sm:$0xff]  }
 0x2e6   :  { %5705 = vmatpush2.bf16.msra.mxu1 %v8841_v0  ;;  %5663 = vmatprep.subr.bf16.mxu0 %v8846_v23  ;;  %v8888_v0 = vld [vmem:[#allocation2 + $0x10ac] ss:$16 sps:$4 sm:$0xff]  }
 0x2e7   :  { %5706 = vmatprep.subr.bf16.mxu1 %v8849_v1  ;;  %v8891_v23 = vld [vmem:[#allocation2 + $0x12ac] ss:$16 sps:$4 sm:$0xff]   ;;  %v8886_v1 = vld [vmem:[#allocation2 + $0x10a8] ss:$16 sps:$4 sm:$0xff]  }
 0x2e9   :  { %5664 = vmatpush2.bf16.msra.mxu0 %v8844_v8  ;;  %v8889_v8 = vld [vmem:[#allocation2 + $0x12a8] ss:$16 sps:$4 sm:$0xff]  }
 0x2ea   :  { %5707 = vmatpush2.bf16.msra.mxu1 %v8847_v38  ;;  %5665 = vmatprep.subr.bf16.mxu0 %v8852_v39  ;;  %v8892_v38 = vld [vmem:[#allocation2 + $0x1088] ss:$16 sps:$4 sm:$0xff]  }
 0x2eb   :  { %5708 = vmatprep.subr.bf16.mxu1 %v8855_v28  ;;  %v8895_v39 = vld [vmem:[#allocation2 + $0x1288] ss:$16 sps:$4 sm:$0xff]   ;;  %v8900_v28 = vld [vmem:[#allocation2 + $0x106c] ss:$16 sps:$4 sm:$0xff]  }
 0x2ed   :  { %5666 = vmatpush2.bf16.msra.mxu0 %v8850_v29  ;;  %v8903_v29 = vld [vmem:[#allocation2 + $0x126c] ss:$16 sps:$4 sm:$0xff]  }
 0x2ee   :  { %5709 = vmatpush2.bf16.msra.mxu1 %v8853_v63  ;;  %5667 = vmatprep.subr.bf16.mxu0 %v8858_v41  ;;  %v8906_v63 = vld [vmem:[#allocation2 + $0x104c] ss:$16 sps:$4 sm:$0xff]  }
 0x2ef   :  { %5710 = vmatprep.subr.bf16.mxu1 %v8861_v49  ;;  %v8909_v41 = vld [vmem:[#allocation2 + $0x124c] ss:$16 sps:$4 sm:$0xff]   ;;  %v8904_v49 = vld [vmem:[#allocation2 + $0x1048] ss:$16 sps:$4 sm:$0xff]  }
 0x2f1   :  { %5668 = vmatpush2.bf16.msra.mxu0 %v8856_v40  ;;  %v8907_v40 = vld [vmem:[#allocation2 + $0x1248] ss:$16 sps:$4 sm:$0xff]  }
 0x2f2   :  { %5711 = vmatpush2.bf16.msra.mxu1 %v8859_v46  ;;  %5669 = vmatprep.subr.bf16.mxu0 %v8864_v11  ;;  %v8912_v46 = vld [vmem:[#allocation2 + $0x102c] ss:$16 sps:$4 sm:$0xff]  }
 0x2f3   :  { %5712 = vmatprep.subr.bf16.mxu1 %v8867_v57  ;;  %v8915_v11 = vld [vmem:[#allocation2 + $0x122c] ss:$16 sps:$4 sm:$0xff]   ;;  %v8910_v57 = vld [vmem:[#allocation2 + $0x1028] ss:$16 sps:$4 sm:$0xff]  }
 0x2f5   :  { %5670 = vmatpush2.bf16.msra.mxu0 %v8862_v60  ;;  %v8913_v60 = vld [vmem:[#allocation2 + $0x1228] ss:$16 sps:$4 sm:$0xff]  }
 0x2f6   :  { %5713 = vmatpush2.bf16.msra.mxu1 %v8865_v12  ;;  %5671 = vmatprep.subr.bf16.mxu0 %v8870_v13  ;;  %v8918_v12 = vld [vmem:[#allocation2 + $0x100c] ss:$16 sps:$4 sm:$0xff]  }
 0x2f7   :  { %5714 = vmatprep.subr.bf16.mxu1 %v8873_v20  ;;  %v8921_v13 = vld [vmem:[#allocation2 + $0x120c] ss:$16 sps:$4 sm:$0xff]   ;;  %v8916_v20 = vld [vmem:[#allocation2 + $0x1008] ss:$16 sps:$4 sm:$0xff]  }
 0x2f9   :  { %5672 = vmatpush2.bf16.msra.mxu0 %v8868_v58  ;;  %v8919_v58 = vld [vmem:[#allocation2 + $0x1208] ss:$16 sps:$4 sm:$0xff]  }
 0x2fa   :  { %5715 = vmatpush2.bf16.msra.mxu1 %v8871_v59  ;;  %5727 = vmatprep.subr.bf16.mxu0 %v8876_v24  ;;  %v8924_v59 = vld [vmem:[#allocation2 + $0x11ec] ss:$16 sps:$4 sm:$0xff]  }
 0x2fb   :  { %5770 = vmatprep.subr.bf16.mxu1 %v8879_v14  ;;  %v8927_v24 = vld [vmem:[#allocation2 + $0x13ec] ss:$16 sps:$4 sm:$0xff]   ;;  %v8922_v14 = vld [vmem:[#allocation2 + $0x11e8] ss:$16 sps:$4 sm:$0xff]  }
 0x2fc   :  { %5674 = vmatmul.mubr.bf16.vlgmr.msra.gmra.mxu0 %v9707_v26  ;;  %v8894_v26 = vld [vmem:[#allocation2 + $0x108c] ss:$16 sps:$4 sm:$0xff]  }
 0x2fd   :  { %5717 = vmatmul.mubr.bf16.vlgmr.msra.gmra.mxu1 %v9709_v27  ;;  %5728 = vmatpush1.bf16.msra.mxu0 %v8874_v62  ;;  %v8897_v27 = vld [vmem:[#allocation2 + $0x128c] ss:$16 sps:$4 sm:$0xff]   ;;  %v8925_v62 = vld [vmem:[#allocation2 + $0x13e8] ss:$16 sps:$4 sm:$0xff]  }
 0x2fe   :  { %5771 = vmatpush1.bf16.msra.mxu1 %v8877_v45  ;;  %5729 = vmatprep.subr.bf16.mxu0 %v8882_v47  ;;  %v8930_v45 = vld [vmem:[#allocation2 + $0x11cc] ss:$16 sps:$4 sm:$0xff]  }
 0x2ff   :  { %5772 = vmatprep.subr.bf16.mxu1 %v8885_v37  ;;  %5759 = vmatprep.mubr.bf16.mxu0 %v9715_v35  ;;  %v8898_v35 = vld [vmem:[#allocation2 + $0x1068] ss:$16 sps:$4 sm:$0xff]   ;;  %v8933_v47 = vld [vmem:[#allocation2 + $0x13cc] ss:$16 sps:$4 sm:$0xff]  }
 0x300   :  { %5802 = vmatprep.mubr.bf16.mxu1 %v9717_v36  ;;  %v8901_v36 = vld [vmem:[#allocation2 + $0x1268] ss:$16 sps:$4 sm:$0xff]  }
 0x301   :  { %5730 = vmatpush1.bf16.msra.mxu0 %v8880_v17  ;;  %v8928_v37 = vld [vmem:[#allocation2 + $0x11c8] ss:$16 sps:$4 sm:$0xff]  }
 0x302   :  { %5773 = vmatpush1.bf16.msra.mxu1 %v8883_v18  ;;  %5731 = vmatprep.subr.bf16.mxu0 %v8888_v0  ;;  %v8931_v17 = vld [vmem:[#allocation2 + $0x13c8] ss:$16 sps:$4 sm:$0xff]   ;;  %v8936_v18 = vld [vmem:[#allocation2 + $0x11ac] ss:$16 sps:$4 sm:$0xff]  }
 0x303   :  { %5774 = vmatprep.subr.bf16.mxu1 %v8891_v23  ;;  %v8939_v0 = vld [vmem:[#allocation2 + $0x13ac] ss:$16 sps:$4 sm:$0xff]   ;;  %v8934_v23 = vld [vmem:[#allocation2 + $0x11a8] ss:$16 sps:$4 sm:$0xff]  }
 0x305   :  { %5732 = vmatpush1.bf16.msra.mxu0 %v8886_v1  ;;  %v8937_v1 = vld [vmem:[#allocation2 + $0x13a8] ss:$16 sps:$4 sm:$0xff]  }
 0x306   :  { %5775 = vmatpush1.bf16.msra.mxu1 %v8889_v8  ;;  %5733 = vmatprep.subr.bf16.mxu0 %v8894_v26  ;;  %v8942_v8 = vld [vmem:[#allocation2 + $0x118c] ss:$16 sps:$4 sm:$0xff]  }
 0x307   :  { %5776 = vmatprep.subr.bf16.mxu1 %v8897_v27  ;;  %v8945_v26 = vld [vmem:[#allocation2 + $0x138c] ss:$16 sps:$4 sm:$0xff]   ;;  %v8940_v27 = vld [vmem:[#allocation2 + $0x1188] ss:$16 sps:$4 sm:$0xff]  }
 0x309   :  { %5734 = vmatpush1.bf16.msra.mxu0 %v8892_v38  ;;  %v8943_v38 = vld [vmem:[#allocation2 + $0x1388] ss:$16 sps:$4 sm:$0xff]  }
 0x30a   :  { %5777 = vmatpush1.bf16.msra.mxu1 %v8895_v39  ;;  %5735 = vmatprep.subr.bf16.mxu0 %v8900_v28  ;;  %v8948_v39 = vld [vmem:[#allocation2 + $0x116c] ss:$16 sps:$4 sm:$0xff]  }
 0x30b   :  { %5778 = vmatprep.subr.bf16.mxu1 %v8903_v29  ;;  %v8951_v28 = vld [vmem:[#allocation2 + $0x136c] ss:$16 sps:$4 sm:$0xff]   ;;  %v8946_v29 = vld [vmem:[#allocation2 + $0x1168] ss:$16 sps:$4 sm:$0xff]  }
 0x30d   :  { %5736 = vmatpush1.bf16.msra.mxu0 %v8898_v35  ;;  %v8949_v35 = vld [vmem:[#allocation2 + $0x1368] ss:$16 sps:$4 sm:$0xff]  }
 0x30e   :  { %5779 = vmatpush1.bf16.msra.mxu1 %v8901_v36  ;;  %5737 = vmatprep.subr.bf16.mxu0 %v8906_v63  ;;  %v8954_v36 = vld [vmem:[#allocation2 + $0x114c] ss:$16 sps:$4 sm:$0xff]  }
 0x30f   :  { %5780 = vmatprep.subr.bf16.mxu1 %v8909_v41  ;;  %v8957_v63 = vld [vmem:[#allocation2 + $0x134c] ss:$16 sps:$4 sm:$0xff]   ;;  %v8952_v41 = vld [vmem:[#allocation2 + $0x1148] ss:$16 sps:$4 sm:$0xff]  }
 0x311   :  { %5738 = vmatpush1.bf16.msra.mxu0 %v8904_v49  ;;  %v8955_v49 = vld [vmem:[#allocation2 + $0x1348] ss:$16 sps:$4 sm:$0xff]  }
 0x312   :  { %5781 = vmatpush1.bf16.msra.mxu1 %v8907_v40  ;;  %5739 = vmatprep.subr.bf16.mxu0 %v8912_v46  ;;  %v8960_v40 = vld [vmem:[#allocation2 + $0x112c] ss:$16 sps:$4 sm:$0xff]  }
 0x313   :  { %5782 = vmatprep.subr.bf16.mxu1 %v8915_v11  ;;  %v8963_v46 = vld [vmem:[#allocation2 + $0x132c] ss:$16 sps:$4 sm:$0xff]   ;;  %v8958_v11 = vld [vmem:[#allocation2 + $0x1128] ss:$16 sps:$4 sm:$0xff]  }
 0x315   :  { %5740 = vmatpush1.bf16.msra.mxu0 %v8910_v57  ;;  %v8961_v57 = vld [vmem:[#allocation2 + $0x1328] ss:$16 sps:$4 sm:$0xff]  }
 0x316   :  { %5783 = vmatpush1.bf16.msra.mxu1 %v8913_v60  ;;  %5741 = vmatprep.subr.bf16.mxu0 %v8918_v12  ;;  %v8966_v60 = vld [vmem:[#allocation2 + $0x110c] ss:$16 sps:$4 sm:$0xff]  }
 0x317   :  { %5784 = vmatprep.subr.bf16.mxu1 %v8921_v13  ;;  %v8969_v12 = vld [vmem:[#allocation2 + $0x130c] ss:$16 sps:$4 sm:$0xff]   ;;  %v8964_v13 = vld [vmem:[#allocation2 + $0x1108] ss:$16 sps:$4 sm:$0xff]  }
 0x319   :  { %5742 = vmatpush1.bf16.msra.mxu0 %v8916_v20  ;;  %v8967_v20 = vld [vmem:[#allocation2 + $0x1308] ss:$16 sps:$4 sm:$0xff]  }
 0x31a   :  { %5785 = vmatpush1.bf16.msra.mxu1 %v8919_v58  ;;  %5743 = vmatprep.subr.bf16.mxu0 %v8924_v59  ;;  %v8972_v58 = vld [vmem:[#allocation2 + $0x14ec] ss:$16 sps:$4 sm:$0xff]  }
 0x31b   :  { %5786 = vmatprep.subr.bf16.mxu1 %v8927_v24  ;;  %v8975_v59 = vld [vmem:[#allocation2 + $0x16ec] ss:$16 sps:$4 sm:$0xff]   ;;  %v8970_v24 = vld [vmem:[#allocation2 + $0x14e8] ss:$16 sps:$4 sm:$0xff]  }
 0x31d   :  { %5744 = vmatpush2.bf16.msra.mxu0 %v8922_v14  ;;  %v8973_v14 = vld [vmem:[#allocation2 + $0x16e8] ss:$16 sps:$4 sm:$0xff]  }
 0x31e   :  { %5787 = vmatpush2.bf16.msra.mxu1 %v8925_v62  ;;  %5745 = vmatprep.subr.bf16.mxu0 %v8930_v45  ;;  %v8978_v62 = vld [vmem:[#allocation2 + $0x14cc] ss:$16 sps:$4 sm:$0xff]  }
 0x31f   :  { %5788 = vmatprep.subr.bf16.mxu1 %v8933_v47  ;;  %v8981_v45 = vld [vmem:[#allocation2 + $0x16cc] ss:$16 sps:$4 sm:$0xff]   ;;  %v8976_v47 = vld [vmem:[#allocation2 + $0x14c8] ss:$16 sps:$4 sm:$0xff]  }
 0x321   :  { %5746 = vmatpush2.bf16.msra.mxu0 %v8928_v37  ;;  %v8979_v37 = vld [vmem:[#allocation2 + $0x16c8] ss:$16 sps:$4 sm:$0xff]  }
 0x322   :  { %5789 = vmatpush2.bf16.msra.mxu1 %v8931_v17  ;;  %5747 = vmatprep.subr.bf16.mxu0 %v8936_v18  ;;  %v8984_v17 = vld [vmem:[#allocation2 + $0x14ac] ss:$16 sps:$4 sm:$0xff]  }
 0x323   :  { %5790 = vmatprep.subr.bf16.mxu1 %v8939_v0  ;;  %v8987_v18 = vld [vmem:[#allocation2 + $0x16ac] ss:$16 sps:$4 sm:$0xff]   ;;  %v8982_v0 = vld [vmem:[#allocation2 + $0x14a8] ss:$16 sps:$4 sm:$0xff]  }
 0x325   :  { %5748 = vmatpush2.bf16.msra.mxu0 %v8934_v23  ;;  %v8985_v23 = vld [vmem:[#allocation2 + $0x16a8] ss:$16 sps:$4 sm:$0xff]  }
 0x326   :  { %5791 = vmatpush2.bf16.msra.mxu1 %v8937_v1  ;;  %5749 = vmatprep.subr.bf16.mxu0 %v8942_v8  ;;  %v8988_v1 = vld [vmem:[#allocation2 + $0x1488] ss:$16 sps:$4 sm:$0xff]  }
 0x327   :  { %5792 = vmatprep.subr.bf16.mxu1 %v8945_v26  ;;  %v8991_v8 = vld [vmem:[#allocation2 + $0x1688] ss:$16 sps:$4 sm:$0xff]   ;;  %v8996_v26 = vld [vmem:[#allocation2 + $0x146c] ss:$16 sps:$4 sm:$0xff]  }
 0x329   :  { %5750 = vmatpush2.bf16.msra.mxu0 %v8940_v27  ;;  %v8999_v27 = vld [vmem:[#allocation2 + $0x166c] ss:$16 sps:$4 sm:$0xff]  }
 0x32a   :  { %5793 = vmatpush2.bf16.msra.mxu1 %v8943_v38  ;;  %5751 = vmatprep.subr.bf16.mxu0 %v8948_v39  ;;  %v9002_v38 = vld [vmem:[#allocation2 + $0x144c] ss:$16 sps:$4 sm:$0xff]  }
 0x32b   :  { %5794 = vmatprep.subr.bf16.mxu1 %v8951_v28  ;;  %v9005_v39 = vld [vmem:[#allocation2 + $0x164c] ss:$16 sps:$4 sm:$0xff]   ;;  %v9876_v28 = vsub.s32 1, %v9681_v7 }
 0x32d   :  { %5752 = vmatpush2.bf16.msra.mxu0 %v8946_v29  ;;  %v9000_v29 = vld [vmem:[#allocation2 + $0x1448] ss:$16 sps:$4 sm:$0xff]  }
 0x32e   :  { %5795 = vmatpush2.bf16.msra.mxu1 %v8949_v35  ;;  %5753 = vmatprep.subr.bf16.mxu0 %v8954_v36  ;;  %v9003_v35 = vld [vmem:[#allocation2 + $0x1648] ss:$16 sps:$4 sm:$0xff]   ;;  %v9008_v36 = vld [vmem:[#allocation2 + $0x142c] ss:$16 sps:$4 sm:$0xff]  }
 0x32f   :  { %5796 = vmatprep.subr.bf16.mxu1 %v8957_v63  ;;  %v9011_v63 = vld [vmem:[#allocation2 + $0x162c] ss:$16 sps:$4 sm:$0xff]  }
 0x331   :  { %5754 = vmatpush2.bf16.msra.mxu0 %v8952_v41  ;;  %v9878_v41 = vld [vmem:[#allocation4] sm:$0xf] }
 0x332   :  { %5797 = vmatpush2.bf16.msra.mxu1 %v8955_v49  ;;  %5755 = vmatprep.subr.bf16.mxu0 %v8960_v40  ;;  %v1014_v49 = vrot.slane %v9878_v41, %v9876_v28 }
 0x333   :  { %5798 = vmatprep.subr.bf16.mxu1 %v8963_v46  ;;  %v9006_v46 = vld [vmem:[#allocation2 + $0x1428] ss:$16 sps:$4 sm:$0xff]  }
 0x334   :  { %v4908_v40 = vadd.f32 %v9759_v33, %v1014_v49  ;;  %v9023_v33 = vld [vmem:[#allocation2 + $0x17ec] ss:$16 sps:$4 sm:$0xff]  }
 0x335   :  { %5756 = vmatpush2.bf16.msra.mxu0 %v8958_v11  ;;  %v9009_v11 = vld [vmem:[#allocation2 + $0x1628] ss:$16 sps:$4 sm:$0xff]  }
 0x336   :  { %5799 = vmatpush2.bf16.msra.mxu1 %v8961_v57  ;;  %5757 = vmatprep.subr.bf16.mxu0 %v8966_v60  ;;  %v9014_v57 = vld [vmem:[#allocation2 + $0x140c] ss:$16 sps:$4 sm:$0xff]  }
 0x337   :  { %5800 = vmatprep.subr.bf16.mxu1 %v8969_v12  ;;  %v9017_v60 = vld [vmem:[#allocation2 + $0x160c] ss:$16 sps:$4 sm:$0xff]   ;;  %v4904_v12 = vadd.f32 %v9721_v43, %v1014_v49  ;;  %v9021_v43 = vld [vmem:[#allocation2 + $0x17e8] ss:$16 sps:$4 sm:$0xff]  }
 0x338   :  { %v9051_v49 = vld [vmem:[#allocation2 + $0x1748] ss:$16 sps:$4 sm:$0xff]  }
 0x339   :  { %5758 = vmatpush2.bf16.msra.mxu0 %v8964_v13  ;;  %v4951_v13 = vadd.f32 %v9761_v34, %v4908_v40  ;;  %v9026_v34 = vld [vmem:[#allocation2 + $0x15cc] ss:$16 sps:$4 sm:$0xff]  }
 0x33a   :  { %5801 = vmatpush2.bf16.msra.mxu1 %v8967_v20  ;;  %5813 = vmatprep.subr.bf16.mxu0 %v8972_v58  ;;  %v9012_v20 = vld [vmem:[#allocation2 + $0x1408] ss:$16 sps:$4 sm:$0xff]  }
 0x33b   :  { %5856 = vmatprep.subr.bf16.mxu1 %v8975_v59  ;;  %v9015_v58 = vld [vmem:[#allocation2 + $0x1608] ss:$16 sps:$4 sm:$0xff]   ;;  %v9020_v59 = vld [vmem:[#allocation2 + $0x15ec] ss:$16 sps:$4 sm:$0xff]  }
 0x33c   :  { %5760 = vmatmul.mubr.bf16.vlgmr.msra.gmra.mxu0 %v9755_v31  ;;  %v8990_v31 = vld [vmem:[#allocation2 + $0x148c] ss:$16 sps:$4 sm:$0xff]  }
 0x33d   :  { %5803 = vmatmul.mubr.bf16.vlgmr.msra.gmra.mxu1 %v9757_v32  ;;  %5814 = vmatpush1.bf16.msra.mxu0 %v8970_v24  ;;  %v8993_v32 = vld [vmem:[#allocation2 + $0x168c] ss:$16 sps:$4 sm:$0xff]   ;;  %v4947_v24 = vadd.f32 %v9723_v44, %v4904_v12  ;;  %v9024_v44 = vld [vmem:[#allocation2 + $0x15c8] ss:$16 sps:$4 sm:$0xff]  }
 0x33e   :  { %5857 = vmatpush1.bf16.msra.mxu1 %v8973_v14  ;;  %5815 = vmatprep.subr.bf16.mxu0 %v8978_v62  ;;  %v4994_v14 = vadd.f32 %v9797_v50, %v4951_v13  ;;  %v9027_v50 = vld [vmem:[#allocation2 + $0x17c8] ss:$16 sps:$4 sm:$0xff]   ;;  %v9065_v12 = vld [vmem:[#allocation2 + $0x170c] ss:$16 sps:$4 sm:$0xff]  }
 0x33f   :  { %5858 = vmatprep.subr.bf16.mxu1 %v8981_v45  ;;  %5845 = vmatprep.mubr.bf16.mxu0 %v9763_v42  ;;  %v8994_v42 = vld [vmem:[#allocation2 + $0x1468] ss:$16 sps:$4 sm:$0xff]   ;;  %v4990_v62 = vadd.f32 %v9770_v55, %v4947_v24  ;;  %v9032_v55 = vld [vmem:[#allocation2 + $0x15ac] ss:$16 sps:$4 sm:$0xff]  }
 0x340   :  { %5888 = vmatprep.mubr.bf16.mxu1 %v9765_v48  ;;  %v8997_v48 = vld [vmem:[#allocation2 + $0x1668] ss:$16 sps:$4 sm:$0xff]   ;;  %v9066_v24 = vld [vmem:[#allocation6 + $0x70] ss:$8 sps:$4 sm:$0xff]  }
 0x341   :  { %5816 = vmatpush1.bf16.msra.mxu0 %v8976_v47  ;;  %v9018_v45 = vld [vmem:[#allocation2 + $0x15e8] ss:$16 sps:$4 sm:$0xff]   ;;  %v9029_v47 = vld [vmem:[#allocation2 + $0x17cc] ss:$16 sps:$4 sm:$0xff]  }
 0x342   :  { %5859 = vmatpush1.bf16.msra.mxu1 %v8979_v37  ;;  %5817 = vmatprep.subr.bf16.mxu0 %v8984_v17  ;;  %v5037_v37 = vadd.f32 %v9799_v4, %v4994_v14  ;;  %v5033_v17 = vadd.f32 %v9772_v56, %v4990_v62  ;;  %v9033_v4 = vld [vmem:[#allocation2 + $0x17a8] ss:$16 sps:$4 sm:$0xff]   ;;  %v9038_v56 = vld [vmem:[#allocation2 + $0x158c] ss:$16 sps:$4 sm:$0xff]  }
 0x343   :  { %5860 = vmatprep.subr.bf16.mxu1 %v8987_v18  ;;  %v9071_v14 = vld [vmem:[#allocation6 + $0x64] ss:$8 sps:$4 sm:$0xff]  }
 0x344   :  { %v5080_v18 = vadd.f32 %v9815_v25, %v5037_v37  ;;  %v9041_v25 = vld [vmem:[#allocation2 + $0x178c] ss:$16 sps:$4 sm:$0xff]  }
 0x345   :  { %5818 = vmatpush1.bf16.msra.mxu0 %v8982_v0  ;;  %v9035_v0 = vld [vmem:[#allocation2 + $0x17ac] ss:$16 sps:$4 sm:$0xff]  }
 0x346   :  { %5861 = vmatpush1.bf16.msra.mxu1 %v8985_v23  ;;  %5819 = vmatprep.subr.bf16.mxu0 %v8990_v31  ;;  %v5076_v23 = vadd.f32 %v9804_v15, %v5033_v17  ;;  %v5123_v31 = vadd.f32 %v9817_v30, %v5080_v18  ;;  %v9039_v15 = vld [vmem:[#allocation2 + $0x1788] ss:$16 sps:$4 sm:$0xff]   ;;  %v9044_v30 = vld [vmem:[#allocation2 + $0x156c] ss:$16 sps:$4 sm:$0xff]  }
 0x347   :  { %5862 = vmatprep.subr.bf16.mxu1 %v8993_v32  ;;  %v9030_v32 = vld [vmem:[#allocation2 + $0x15a8] ss:$16 sps:$4 sm:$0xff]   ;;  %v9114_v37 = vld [vmem:[#allocation6 + $0x170] ss:$8 sps:$4 sm:$0xff]  }
 0x348   :  { %v9116_v17 = vld [vmem:[#allocation6 + $0x174] ss:$8 sps:$4 sm:$0xff]  }
 0x349   :  { %5820 = vmatpush1.bf16.msra.mxu0 %v8988_v1  ;;  %v5119_v1 = vadd.f32 %v9806_v16, %v5076_v23  ;;  %v9042_v16 = vld [vmem:[#allocation2 + $0x1568] ss:$16 sps:$4 sm:$0xff]   ;;  %v9081_v23 = vld [vmem:[#allocation6 + $0x20] ss:$8 sps:$4 sm:$0xff]  }
 0x34a   :  { %5863 = vmatpush1.bf16.msra.mxu1 %v8991_v8  ;;  %5821 = vmatprep.subr.bf16.mxu0 %v8996_v26  ;;  %v5166_v8 = vadd.f32 %v9833_v9, %v5123_v31  ;;  %v9045_v9 = vld [vmem:[#allocation2 + $0x1768] ss:$16 sps:$4 sm:$0xff]  }
 0x34b   :  { %5864 = vmatprep.subr.bf16.mxu1 %v8999_v27  ;;  %v5162_v26 = vadd.f32 %v9822_v51, %v5119_v1  ;;  %v9036_v27 = vld [vmem:[#allocation2 + $0x1588] ss:$16 sps:$4 sm:$0xff]   ;;  %v9050_v51 = vld [vmem:[#allocation2 + $0x154c] ss:$16 sps:$4 sm:$0xff]  }
 0x34c   :  { %v9080_v18 = vld [vmem:[#allocation6 + $0x34] ss:$8 sps:$4 sm:$0xff]   ;;  %v9125_v31 = vld [vmem:[#allocation6 + $0x144] ss:$8 sps:$4 sm:$0xff]  }
 0x34d   :  { %5822 = vmatpush1.bf16.msra.mxu0 %v8994_v42  ;;  %v9047_v42 = vld [vmem:[#allocation2 + $0x176c] ss:$16 sps:$4 sm:$0xff]   ;;  %v9089_v1 = vld [vmem:[#allocation6 + $0x4] ss:$8 sps:$4 sm:$0xff]  }
 0x34e   :  { %5865 = vmatpush1.bf16.msra.mxu1 %v8997_v48  ;;  %5823 = vmatprep.subr.bf16.mxu0 %v9002_v38  ;;  %v5209_v48 = vadd.f32 %v9835_v10, %v5166_v8  ;;  %v5205_v38 = vadd.f32 %v9824_v52, %v5162_v26  ;;  %v9048_v10 = vld [vmem:[#allocation2 + $0x1548] ss:$16 sps:$4 sm:$0xff]   ;;  %v9056_v52 = vld [vmem:[#allocation2 + $0x152c] ss:$16 sps:$4 sm:$0xff]  }
 0x34f   :  { %5866 = vmatprep.subr.bf16.mxu1 %v9005_v39  ;;  %v9126_v8 = vld [vmem:[#allocation6 + $0x130] ss:$8 sps:$4 sm:$0xff]   ;;  %v9087_v26 = vld [vmem:[#allocation6] ss:$8 sps:$4 sm:$0xff]  }
 0x350   :  { %v5252_v39 = vadd.f32 %v9851_v53, %v5209_v48  ;;  %v9059_v53 = vld [vmem:[#allocation2 + $0x172c] ss:$16 sps:$4 sm:$0xff]   ;;  %v9134_v48 = vld [vmem:[#allocation6 + $0x114] ss:$8 sps:$4 sm:$0xff]  }
 0x351   :  { %5824 = vmatpush1.bf16.msra.mxu0 %v9000_v29  ;;  %v9053_v29 = vld [vmem:[#allocation2 + $0x174c] ss:$16 sps:$4 sm:$0xff]  }
 0x352   :  { %5867 = vmatpush1.bf16.msra.mxu1 %v9003_v35  ;;  %5825 = vmatprep.subr.bf16.mxu0 %v9008_v36  ;;  %v5248_v35 = vadd.f32 %v9840_v21, %v5205_v38  ;;  %v5337_v36 = vpop.f32.mrf.mxu0  ;;  %v9057_v21 = vld [vmem:[#allocation2 + $0x1728] ss:$16 sps:$4 sm:$0xff]  }
 0x353   :  { %5868 = vmatprep.subr.bf16.mxu1 %v9011_v63  ;;  %v5295_v63 = vadd.f32 %v9853_v54, %v5252_v39  ;;  %v9062_v54 = vld [vmem:[#allocation2 + $0x150c] ss:$16 sps:$4 sm:$0xff]   ;;  %v9095_v38 = vld [vmem:[#allocation6 + $0xe4] ss:$8 sps:$4 sm:$0xff]  }
 0x354   :  { %v5291_v40 = vadd.f32 %v9842_v22, %v5248_v35  ;;  %v9068_v22 = vld [vmem:[#allocation6 + $0x74] ss:$8 sps:$4 sm:$0xff]   ;;  %v9132_v39 = vld [vmem:[#allocation6 + $0x110] ss:$8 sps:$4 sm:$0xff]  }
 0x355   :  { %5826 = vmatpush1.bf16.msra.mxu0 %v9006_v46  ;;  %v5338_v46 = vadd.f32 %v5337_v36, %v5295_v63  ;;  %v9096_v35 = vld [vmem:[#allocation6 + $0xd0] ss:$8 sps:$4 sm:$0xff]   ;;  %v9140_v36 = vld [vmem:[#allocation6 + $0x1f4] ss:$8 sps:$4 sm:$0xff]   ;;  %v9101_v63 = vld [vmem:[#allocation6 + $0xc4] ss:$8 sps:$4 sm:$0xff]  }
 0x356   :  { %5869 = vmatpush1.bf16.msra.mxu1 %v9009_v11  ;;  %5827 = vmatprep.subr.bf16.mxu0 %v9014_v57  ;;  %v5334_v11 = vadd.f32 %v9858_v5, %v5291_v40  ;;  %v9054_v57 = vld [vmem:[#allocation2 + $0x1528] ss:$16 sps:$4 sm:$0xff]   ;;  %v9141_v40 = vld [vmem:[#allocation6 + $0x1e0] ss:$8 sps:$4 sm:$0xff]  }
 0x357   :  { %5870 = vmatprep.subr.bf16.mxu1 %v9017_v60  ;;  %v5380_v60 = vpop.f32.mrf.mxu1 }
 0x358   :  { %v5381_v13 = vadd.f32 %v5380_v60, %v5338_v46  ;;  %v9102_v46 = vld [vmem:[#allocation6 + $0xb0] ss:$8 sps:$4 sm:$0xff]   ;;  %v9105_v60 = vld [vmem:[#allocation6 + $0xa0] ss:$8 sps:$4 sm:$0xff]  }
 0x359   :  { %5828 = vmatpush1.bf16.msra.mxu0 %v9012_v20  ;;  %v5377_v20 = vadd.f32 %v9860_v6, %v5334_v11  ;;  %v9069_v6 = vld [vmem:[#allocation6 + $0x60] ss:$8 sps:$4 sm:$0xff]   ;;  %v9146_v11 = vld [vmem:[#allocation6 + $0x1d4] ss:$8 sps:$4 sm:$0xff]  }
 0x35a   :  { %5871 = vmatpush1.bf16.msra.mxu1 %v9015_v58  ;;  %5829 = vmatprep.subr.bf16.mxu0 %v9020_v59  ;;  %v9060_v58 = vld [vmem:[#allocation2 + $0x1508] ss:$16 sps:$4 sm:$0xff]   ;;  %v5904_v5 = vmax.f32 %v5381_v13, 0.0  ;;  %v9147_v13 = vld [vmem:[#allocation6 + $0x1c0] ss:$8 sps:$4 sm:$0xff]  }
 0x35b   :  { %5872 = vmatprep.subr.bf16.mxu1 %v9023_v33  ;;  %v9063_v59 = vld [vmem:[#allocation2 + $0x1708] ss:$16 sps:$4 sm:$0xff]   ;;  %v5900_v33 = vmax.f32 %v5377_v20, 0.0  ;;  %v9108_v20 = vld [vmem:[#allocation6 + $0x90] ss:$8 sps:$4 sm:$0xff]  }
 0x35d   :  { %5830 = vmatpush2.bf16.msra.mxu0 %v9018_v45  ;;  %v5908_v62 = vpack.c.bf16 %v5904_v5, %v5900_v33  ;;  %v9074_v45 = vld [vmem:[#allocation6 + $0x54] ss:$8 sps:$4 sm:$0xff]   ;;  %v9150_v5 = vld [vmem:[#allocation6 + $0x1b0] ss:$8 sps:$4 sm:$0xff]   ;;  %v9155_v33 = vld [vmem:[#allocation6 + $0x1a4] ss:$8 sps:$4 sm:$0xff]  }
 0x35e   :  { %5873 = vmatpush2.bf16.msra.mxu1 %v9021_v43  ;;  %5831 = vmatprep.subr.bf16.mxu0 %v9026_v34  ;;  %v9072_v43 = vld [vmem:[#allocation6 + $0x50] ss:$8 sps:$4 sm:$0xff]   ;;  %v9077_v34 = vld [vmem:[#allocation6 + $0x44] ss:$8 sps:$4 sm:$0xff]  }
 0x35f   :  { %5874 = vmatprep.subr.bf16.mxu1 %v9029_v47  ;;  %v9075_v47 = vld [vmem:[#allocation6 + $0x40] ss:$8 sps:$4 sm:$0xff]  }
 0x361   :  { %5832 = vmatpush2.bf16.msra.mxu0 %v9024_v44  ;;  %v9119_v44 = vld [vmem:[#allocation6 + $0x164] ss:$8 sps:$4 sm:$0xff]  }
 0x362   :  { %5875 = vmatpush2.bf16.msra.mxu1 %v9027_v50  ;;  %5833 = vmatprep.subr.bf16.mxu0 %v9032_v55  ;;  %v9122_v50 = vld [vmem:[#allocation6 + $0x154] ss:$8 sps:$4 sm:$0xff]   ;;  %v9083_v55 = vld [vmem:[#allocation6 + $0x24] ss:$8 sps:$4 sm:$0xff]  }
 0x363   :  { %5876 = vmatprep.subr.bf16.mxu1 %v9035_v0  ;;  %v9120_v0 = vld [vmem:[#allocation6 + $0x150] ss:$8 sps:$4 sm:$0xff]  }
 0x365   :  { %5834 = vmatpush2.bf16.msra.mxu0 %v9030_v32  ;;  %v9086_v32 = vld [vmem:[#allocation6 + $0x14] ss:$8 sps:$4 sm:$0xff]  }
 0x366   :  { %5877 = vmatpush2.bf16.msra.mxu1 %v9033_v4  ;;  %5835 = vmatprep.subr.bf16.mxu0 %v9038_v56  ;;  %v9123_v4 = vld [vmem:[#allocation6 + $0x140] ss:$8 sps:$4 sm:$0xff]   ;;  %v9084_v56 = vld [vmem:[#allocation6 + $0x10] ss:$8 sps:$4 sm:$0xff]  }
 0x367   :  { %5878 = vmatprep.subr.bf16.mxu1 %v9041_v25  ;;  %v9128_v25 = vld [vmem:[#allocation6 + $0x134] ss:$8 sps:$4 sm:$0xff]  }
 0x369   :  { %5836 = vmatpush2.bf16.msra.mxu0 %v9036_v27  ;;  %v9131_v27 = vld [vmem:[#allocation6 + $0x124] ss:$8 sps:$4 sm:$0xff]  }
 0x36a   :  { %5879 = vmatpush2.bf16.msra.mxu1 %v9039_v15  ;;  %5837 = vmatprep.subr.bf16.mxu0 %v9044_v30  ;;  %v9092_v15 = vld [vmem:[#allocation6 + $0xf4] ss:$8 sps:$4 sm:$0xff]   ;;  %v9129_v30 = vld [vmem:[#allocation6 + $0x120] ss:$8 sps:$4 sm:$0xff]  }
 0x36b   :  { %5880 = vmatprep.subr.bf16.mxu1 %v9047_v42  ;;  %v9090_v42 = vld [vmem:[#allocation6 + $0xf0] ss:$8 sps:$4 sm:$0xff]  }
 0x36d   :  { %5838 = vmatpush2.bf16.msra.mxu0 %v9042_v16  ;;  %v9093_v16 = vld [vmem:[#allocation6 + $0xe0] ss:$8 sps:$4 sm:$0xff]  }
 0x36e   :  { %5881 = vmatpush2.bf16.msra.mxu1 %v9045_v9  ;;  %5839 = vmatprep.subr.bf16.mxu0 %v9050_v51  ;;  %v9137_v9 = vld [vmem:[#allocation6 + $0x104] ss:$8 sps:$4 sm:$0xff]   ;;  %v9098_v51 = vld [vmem:[#allocation6 + $0xd4] ss:$8 sps:$4 sm:$0xff]  }
 0x36f   :  { %5882 = vmatprep.subr.bf16.mxu1 %v9053_v29  ;;  %v9135_v29 = vld [vmem:[#allocation6 + $0x100] ss:$8 sps:$4 sm:$0xff]  }
 0x371   :  { %5840 = vmatpush2.bf16.msra.mxu0 %v9048_v10  ;;  %v9138_v10 = vld [vmem:[#allocation6 + $0x1f0] ss:$8 sps:$4 sm:$0xff]  }
 0x372   :  { %5883 = vmatpush2.bf16.msra.mxu1 %v9051_v49  ;;  %5841 = vmatprep.subr.bf16.mxu0 %v9056_v52  ;;  %v9099_v49 = vld [vmem:[#allocation6 + $0xc0] ss:$8 sps:$4 sm:$0xff]   ;;  %v9143_v52 = vld [vmem:[#allocation6 + $0x1e4] ss:$8 sps:$4 sm:$0xff]  }
 0x373   :  { %5884 = vmatprep.subr.bf16.mxu1 %v9059_v53  ;;  %v9104_v53 = vld [vmem:[#allocation6 + $0xb4] ss:$8 sps:$4 sm:$0xff]  }
 0x375   :  { %5842 = vmatpush2.bf16.msra.mxu0 %v9054_v57  ;;  %v9107_v57 = vld [vmem:[#allocation6 + $0xa4] ss:$8 sps:$4 sm:$0xff]  }
 0x376   :  { %5885 = vmatpush2.bf16.msra.mxu1 %v9057_v21  ;;  %5843 = vmatprep.subr.bf16.mxu0 %v9062_v54  ;;  %v9144_v21 = vld [vmem:[#allocation6 + $0x1d0] ss:$8 sps:$4 sm:$0xff]   ;;  %v9149_v54 = vld [vmem:[#allocation6 + $0x1c4] ss:$8 sps:$4 sm:$0xff]  }
 0x377   :  { %5886 = vmatprep.subr.bf16.mxu1 %v9065_v12  ;;  %v9110_v12 = vld [vmem:[#allocation6 + $0x94] ss:$8 sps:$4 sm:$0xff]  }
 0x379   :  { %5844 = vmatpush2.bf16.msra.mxu0 %v9060_v58  ;;  %v9113_v58 = vld [vmem:[#allocation6 + $0x84] ss:$8 sps:$4 sm:$0xff]  }
 0x37a   :  { %5887 = vmatpush2.bf16.msra.mxu1 %v9063_v59  ;;  %6307 = vmatprep.subr.bf16.mxu0 %v9068_v22  ;;  %v9111_v59 = vld [vmem:[#allocation6 + $0x80] ss:$8 sps:$4 sm:$0xff]   ;;  %v9152_v22 = vld [vmem:[#allocation6 + $0x1b4] ss:$8 sps:$4 sm:$0xff]  }
 0x37b   :  { %6350 = vmatprep.subr.bf16.mxu1 %v9116_v17 }
 0x37c   :  { %5846 = vmatmul.mubr.bf16.vlgmr.msra.gmra.mxu0 %v9793_v2  ;;  %v9117_v2 = vld [vmem:[#allocation6 + $0x160] ss:$8 sps:$4 sm:$0xff]  }
 0x37d   :  { %5889 = vmatmul.mubr.bf16.vlgmr.msra.gmra.mxu1 %v9795_v3  ;;  %6308 = vmatpush1.bf16.msra.mxu0 %v9066_v24  ;;  %v9078_v3 = vld [vmem:[#allocation6 + $0x30] ss:$8 sps:$4 sm:$0xff]   ;;  %v9153_v24 = vld [vmem:[#allocation6 + $0x1a0] ss:$8 sps:$4 sm:$0xff]  }
 0x37e   :  { %6339 = vmatprep.mubr.bf16.mxu0 %v5908_v62  ;;  %6309 = vmatprep.subr.bf16.mxu0 %v9071_v14  ;;  %v9158_v14 = vld [vmem:[#allocation6 + $0x194] ss:$8 sps:$4 sm:$0xff]   ;;  %v9156_v62 = vld [vmem:[#allocation6 + $0x190] ss:$8 sps:$4 sm:$0xff]  }
 0x37f   :  { %6351 = vmatpush1.bf16.msra.mxu1 %v9114_v37 }
 0x380   :  { %6352 = vmatprep.subr.bf16.mxu1 %v9119_v44 }
 0x381   :  { %6310 = vmatpush1.bf16.msra.mxu0 %v9069_v6  ;;  %v9161_v6 = vld [vmem:[#allocation6 + $0x184] ss:$8 sps:$4 sm:$0xff]  }
 0x382   :  { %6311 = vmatprep.subr.bf16.mxu0 %v9074_v45  ;;  %v9159_v45 = vld [vmem:[#allocation6 + $0x180] ss:$8 sps:$4 sm:$0xff]  }
 0x383   :  { %6353 = vmatpush1.bf16.msra.mxu1 %v9117_v2  ;;  %v9162_v2 = vld [vmem:[#allocation9 + $0x70] ss:$8 sps:$4 sm:$0xff]  }
 0x384   :  { %6354 = vmatprep.subr.bf16.mxu1 %v9122_v50 }
 0x385   :  { %6312 = vmatpush1.bf16.msra.mxu0 %v9072_v43  ;;  %v9907_v43 = vpop.f32.mrf.mxu0 }
 0x386   :  { %6313 = vmatprep.subr.bf16.mxu0 %v9077_v34  ;;  %v9909_v34 = vpop.f32.mrf.mxu1 }
 0x387   :  { %6355 = vmatpush1.bf16.msra.mxu1 %v9120_v0  ;;  %v9167_v0 = vld [vmem:[#allocation9 + $0x64] ss:$8 sps:$4 sm:$0xff]  }
 0x388   :  { %6356 = vmatprep.subr.bf16.mxu1 %v9125_v31  ;;  %v9170_v31 = vld [vmem:[#allocation9 + $0x54] ss:$8 sps:$4 sm:$0xff]  }
 0x389   :  { %6314 = vmatpush1.bf16.msra.mxu0 %v9075_v47  ;;  %v5419_v47 = vpop.f32.mrf.mxu0 }
 0x38a   :  { %6315 = vmatprep.subr.bf16.mxu0 %v9080_v18 }
 0x38b   :  { %6357 = vmatpush1.bf16.msra.mxu1 %v9123_v4  ;;  %v5421_v37 = vpop.f32.mrf.mxu0 }
 0x38c   :  { %6358 = vmatprep.subr.bf16.mxu1 %v9128_v25  ;;  %v9173_v25 = vld [vmem:[#allocation9 + $0x44] ss:$8 sps:$4 sm:$0xff]  }
 0x38d   :  { %6316 = vmatpush1.bf16.msra.mxu0 %v9078_v3  ;;  %v9915_v18 = vpop.f32.mrf.mxu0  ;;  %v9164_v3 = vld [vmem:[#allocation9 + $0x74] ss:$8 sps:$4 sm:$0xff]  }
 0x38e   :  { %6317 = vmatprep.subr.bf16.mxu0 %v9083_v55 }
 0x38f   :  { %6359 = vmatpush1.bf16.msra.mxu1 %v9126_v8  ;;  %v9919_v50 = vpop.f32.mrf.mxu0 }
 0x390   :  { %6360 = vmatprep.subr.bf16.mxu1 %v9131_v27  ;;  %v9176_v27 = vld [vmem:[#allocation9 + $0x34] ss:$8 sps:$4 sm:$0xff]  }
 0x391   :  { %6318 = vmatpush1.bf16.msra.mxu0 %v9081_v23  ;;  %v9165_v23 = vld [vmem:[#allocation9 + $0x60] ss:$8 sps:$4 sm:$0xff]  }
 0x392   :  { %6319 = vmatprep.subr.bf16.mxu0 %v9086_v32  ;;  %v5505_v32 = vpop.f32.mrf.mxu0 }
 0x393   :  { %6361 = vmatpush1.bf16.msra.mxu1 %v9129_v30 }
 0x394   :  { %6362 = vmatprep.subr.bf16.mxu1 %v9134_v48 }
 0x395   :  { %6320 = vmatpush1.bf16.msra.mxu0 %v9084_v56  ;;  %v9168_v56 = vld [vmem:[#allocation9 + $0x50] ss:$8 sps:$4 sm:$0xff]  }
 0x396   :  { %6321 = vmatprep.subr.bf16.mxu0 %v9089_v1  ;;  %v5507_v1 = vpop.f32.mrf.mxu0 }
 0x397   :  { %6363 = vmatpush1.bf16.msra.mxu1 %v9132_v39  ;;  %v9179_v39 = vld [vmem:[#allocation9 + $0x24] ss:$8 sps:$4 sm:$0xff]  }
 0x398   :  { %6364 = vmatprep.subr.bf16.mxu1 %v9137_v9 }
 0x399   :  { %6322 = vmatpush1.bf16.msra.mxu0 %v9087_v26  ;;  %v9171_v26 = vld [vmem:[#allocation9 + $0x40] ss:$8 sps:$4 sm:$0xff]  }
 0x39a   :  { %6323 = vmatprep.subr.bf16.mxu0 %v9092_v15  ;;  %v5509_v15 = vpop.f32.mrf.mxu0 }
 0x39b   :  { %6365 = vmatpush1.bf16.msra.mxu1 %v9135_v29  ;;  %v9182_v29 = vld [vmem:[#allocation9 + $0x14] ss:$8 sps:$4 sm:$0xff]  }
 0x39c   :  { %6366 = vmatprep.subr.bf16.mxu1 %v9140_v36  ;;  %v1017_v36 = vsub.s32 2, %v9681_v7 }
 0x39d   :  { %6324 = vmatpush2.bf16.msra.mxu0 %v9090_v42  ;;  %v9929_v42 = vpop.f32.mrf.mxu0 }
 0x39e   :  { %6325 = vmatprep.subr.bf16.mxu0 %v9095_v38  ;;  %v9174_v38 = vld [vmem:[#allocation9 + $0x30] ss:$8 sps:$4 sm:$0xff]  }
 0x39f   :  { %6367 = vmatpush2.bf16.msra.mxu1 %v9138_v10 }
 0x3a0   :  { %6368 = vmatprep.subr.bf16.mxu1 %v9143_v52  ;;  %v9185_v52 = vld [vmem:[#allocation9 + $0x4] ss:$8 sps:$4 sm:$0xff]  }
 0x3a1   :  { %6326 = vmatpush2.bf16.msra.mxu0 %v9093_v16  ;;  %v5591_v16 = vpop.f32.mrf.mxu0 }
 0x3a2   :  { %6327 = vmatprep.subr.bf16.mxu0 %v9098_v51  ;;  %v9177_v51 = vld [vmem:[#allocation9 + $0x20] ss:$8 sps:$4 sm:$0xff]  }
 0x3a3   :  { %6369 = vmatpush2.bf16.msra.mxu1 %v9141_v40  ;;  %v1018_v40 = vrot.slane %v9878_v41, %v1017_v36 }
 0x3a4   :  { %6370 = vmatprep.subr.bf16.mxu1 %v9146_v11 }
 0x3a5   :  { %6328 = vmatpush2.bf16.msra.mxu0 %v9096_v35  ;;  %v1021_v35 = vsub.s32 3, %v9681_v7 }
 0x3a6   :  { %6329 = vmatprep.subr.bf16.mxu0 %v9101_v63  ;;  %v5593_v63 = vpop.f32.mrf.mxu0 }
 0x3a7   :  { %6371 = vmatpush2.bf16.msra.mxu1 %v9144_v21  ;;  %v9188_v21 = vld [vmem:[#allocation9 + $0xf4] ss:$8 sps:$4 sm:$0xff]  }
 0x3a8   :  { %6372 = vmatprep.subr.bf16.mxu1 %v9149_v54 }
 0x3a9   :  { %6330 = vmatpush2.bf16.msra.mxu0 %v9099_v49  ;;  %v9180_v49 = vld [vmem:[#allocation9 + $0x10] ss:$8 sps:$4 sm:$0xff]  }
 0x3aa   :  { %6331 = vmatprep.subr.bf16.mxu0 %v9104_v53  ;;  %v1022_v53 = vrot.slane %v9878_v41, %v1021_v35 }
 0x3ab   :  { %6373 = vmatpush2.bf16.msra.mxu1 %v9147_v13  ;;  %v9186_v13 = vld [vmem:[#allocation9 + $0xf0] ss:$8 sps:$4 sm:$0xff]  }
 0x3ac   :  { %6374 = vmatprep.subr.bf16.mxu1 %v9152_v22  ;;  %v5420_v7 = vadd.f32 %v5419_v47, %v1022_v53 }
 0x3ad   :  { %6332 = vmatpush2.bf16.msra.mxu0 %v9102_v46  ;;  %v5595_v46 = vpop.f32.mrf.mxu0 }
 0x3ae   :  { %6333 = vmatprep.subr.bf16.mxu0 %v9107_v57  ;;  %v9183_v57 = vld [vmem:[#allocation9] ss:$8 sps:$4 sm:$0xff]  }
 0x3af   :  { %6375 = vmatpush2.bf16.msra.mxu1 %v9150_v5  ;;  %v5424_v5 = vadd.f32 %v9915_v18, %v1022_v53 }
 0x3b0   :  { %6376 = vmatprep.subr.bf16.mxu1 %v9155_v33 }
 0x3b1   :  { %6334 = vmatpush2.bf16.msra.mxu0 %v9105_v60 }
 0x3b2   :  { %6335 = vmatprep.subr.bf16.mxu0 %v9110_v12  ;;  %v5418_v12 = vadd.f32 %v9907_v43, %v1018_v40 }
 0x3b3   :  { %6377 = vmatpush2.bf16.msra.mxu1 %v9153_v24  ;;  %v9189_v24 = vld [vmem:[#allocation9 + $0xe0] ss:$8 sps:$4 sm:$0xff]  }
 0x3b4   :  { %6378 = vmatprep.subr.bf16.mxu1 %v9158_v14  ;;  %v5461_v33 = vadd.f32 %v9909_v34, %v5418_v12  ;;  %v9197_v34 = vld [vmem:[#allocation9 + $0xc4] ss:$8 sps:$4 sm:$0xff]  }
 0x3b5   :  { %6336 = vmatpush2.bf16.msra.mxu0 %v9108_v20  ;;  %v5422_v20 = vadd.f32 %v5421_v37, %v1018_v40 }
 0x3b6   :  { %6337 = vmatprep.subr.bf16.mxu0 %v9113_v58  ;;  %v9191_v58 = vld [vmem:[#allocation9 + $0xe4] ss:$8 sps:$4 sm:$0xff]  }
 0x3b7   :  { %6379 = vmatpush2.bf16.msra.mxu1 %v9156_v62 }
 0x3b8   :  { %6380 = vmatprep.subr.bf16.mxu1 %v9161_v6  ;;  %v9194_v6 = vld [vmem:[#allocation9 + $0xd4] ss:$8 sps:$4 sm:$0xff]  }
 0x3b9   :  { %6338 = vmatpush2.bf16.msra.mxu0 %v9111_v59 }
 0x3ba   :  { %6603 = vmatprep.subr.bf16.mxu0 %v9164_v3 }
 0x3bb   :  { %6381 = vmatpush2.bf16.msra.mxu1 %v9159_v45  ;;  %v5504_v45 = vadd.f32 %v9919_v50, %v5461_v33 }
 0x3bc   :  { %6340 = vmatmul.mubr.bf16.vlgmr.msra.gmra.mxu0 %v9865_v61  ;;  %v9911_v61 = vpop.f32.mrf.mxu1  ;;  %v5675_v60 = vpop.f32.mrf.mxu0 }
 0x3bd   :  { %6604 = vmatpush1.bf16.msra.mxu0 %v9162_v2  ;;  %v5463_v41 = vadd.f32 %v9911_v61, %v5420_v7  ;;  %v9192_v61 = vld [vmem:[#allocation9 + $0xd0] ss:$8 sps:$4 sm:$0xff]  }
 0x3be   :  { %v9913_v17 = vpop.f32.mrf.mxu1  ;;  %6605 = vmatprep.subr.bf16.mxu0 %v9167_v0  ;;  %v5677_v59 = vpop.f32.mrf.mxu0 }
 0x3bf   :  { %v5465_v14 = vadd.f32 %v9913_v17, %v5422_v20  ;;  %v5506_v62 = vadd.f32 %v5505_v32, %v5463_v41 }
 0x3c0   :  { %v9917_v44 = vpop.f32.mrf.mxu1  ;;  %v5679_v43 = vpop.f32.mrf.mxu0 }
 0x3c1   :  { %6606 = vmatpush1.bf16.msra.mxu0 %v9165_v23  ;;  %v5467_v37 = vadd.f32 %v9917_v44, %v5424_v5  ;;  %v5508_v2 = vadd.f32 %v5507_v1, %v5465_v14  ;;  %v9195_v44 = vld [vmem:[#allocation9 + $0xc0] ss:$8 sps:$4 sm:$0xff]  }
 0x3c2   :  { %v9921_v55 = vpop.f32.mrf.mxu1  ;;  %6607 = vmatprep.subr.bf16.mxu0 %v9170_v31  ;;  %v5681_v17 = vpop.f32.mrf.mxu0 }
 0x3c3   :  { %v5510_v3 = vadd.f32 %v5509_v15, %v5467_v37  ;;  %v5547_v0 = vadd.f32 %v9921_v55, %v5504_v45 }
 0x3c4   :  { %v9923_v4 = vpop.f32.mrf.mxu1 }
 0x3c5   :  { %6608 = vmatpush1.bf16.msra.mxu0 %v9168_v56  ;;  %v5549_v18 = vadd.f32 %v9923_v4, %v5506_v62  ;;  %v5590_v50 = vadd.f32 %v9929_v42, %v5547_v0  ;;  %v9200_v4 = vld [vmem:[#allocation9 + $0xb4] ss:$8 sps:$4 sm:$0xff]   ;;  %v9203_v0 = vld [vmem:[#allocation9 + $0xa4] ss:$8 sps:$4 sm:$0xff]  }
 0x3c6   :  { %v9925_v8 = vpop.f32.mrf.mxu1  ;;  %6609 = vmatprep.subr.bf16.mxu0 %v9173_v25 }
 0x3c7   :  { %v5551_v31 = vadd.f32 %v9925_v8, %v5508_v2  ;;  %v5592_v32 = vadd.f32 %v5591_v16, %v5549_v18  ;;  %v9198_v8 = vld [vmem:[#allocation9 + $0xb0] ss:$8 sps:$4 sm:$0xff]  }
 0x3c8   :  { %v9927_v30 = vpop.f32.mrf.mxu1 }
 0x3c9   :  { %6610 = vmatpush1.bf16.msra.mxu0 %v9171_v26  ;;  %v5553_v1 = vadd.f32 %v9927_v30, %v5510_v3  ;;  %v5594_v26 = vadd.f32 %v5593_v63, %v5551_v31  ;;  %v9204_v31 = vld [vmem:[#allocation9 + $0x90] ss:$8 sps:$4 sm:$0xff]  }
 0x3ca   :  { %v9931_v48 = vpop.f32.mrf.mxu1  ;;  %6611 = vmatprep.subr.bf16.mxu0 %v9176_v27 }
 0x3cb   :  { %v5596_v15 = vadd.f32 %v5595_v46, %v5553_v1  ;;  %v5633_v55 = vadd.f32 %v9931_v48, %v5590_v50  ;;  %v9207_v50 = vld [vmem:[#allocation9 + $0x80] ss:$8 sps:$4 sm:$0xff]   ;;  %v9213_v1 = vld [vmem:[#allocation12 + $0x30] sm:$0xff]  }
 0x3cc   :  { %v9933_v9 = vpop.f32.mrf.mxu1 }
 0x3cd   :  { %6612 = vmatpush1.bf16.msra.mxu0 %v9174_v38  ;;  %v5635_v27 = vadd.f32 %v9933_v9, %v5592_v32  ;;  %v9209_v32 = vld [vmem:[#allocation9 + $0x84] ss:$8 sps:$4 sm:$0xff]  }
 0x3ce   :  { %6613 = vmatprep.subr.bf16.mxu0 %v9179_v39  ;;  %v9937_v10 = vpop.f32.mrf.mxu1 }
 0x3cf   :  { %v5637_v42 = vadd.f32 %v9937_v10, %v5594_v26  ;;  %v5678_v16 = vadd.f32 %v5677_v59, %v5635_v27  ;;  %v9214_v26 = vld [vmem:[#allocation12 + $0x68] sm:$0xff]   ;;  %v9216_v27 = vld [vmem:[#allocation12 + $0x60] sm:$0xff]  }
 0x3d0   :  { %v5638_v11 = vpop.f32.mrf.mxu1 }
 0x3d1   :  { %6614 = vmatpush1.bf16.msra.mxu0 %v9177_v51  ;;  %v5676_v51 = vadd.f32 %v5675_v60, %v5633_v55  ;;  %v5680_v35 = vadd.f32 %v5679_v43, %v5637_v42  ;;  %v9218_v55 = vld [vmem:[#allocation12 + $0x58] sm:$0xff]  }
 0x3d2   :  { %6615 = vmatprep.subr.bf16.mxu0 %v9182_v29  ;;  %v5718_v54 = vpop.f32.mrf.mxu1  ;;  %v5639_v29 = vadd.f32 %v5638_v11, %v5596_v15  ;;  %v9217_v15 = vld [vmem:[#allocation12 + $0x20] sm:$0xff]   ;;  %v5975_v42 = vld [vmem:[#allocation7] sm:$0x3] }
 0x3d3   :  { %v5719_v9 = vadd.f32 %v5718_v54, %v5676_v51  ;;  %v5984_v51 = vrot.slane %v5975_v42, %v9876_v28 }
 0x3d4   :  { %v5720_v22 = vpop.f32.mrf.mxu1 }
 0x3d5   :  { %6616 = vmatpush1.bf16.msra.mxu0 %v9180_v49  ;;  %v5721_v63 = vadd.f32 %v5720_v22, %v5678_v16  ;;  %v5682_v49 = vadd.f32 %v5681_v17, %v5639_v29  ;;  %v9201_v17 = vld [vmem:[#allocation9 + $0xa0] ss:$8 sps:$4 sm:$0xff]   ;;  %v5980_v29 = vrot.slane %v5975_v42, %v9696_v19 }
 0x3d6   :  { %6617 = vmatprep.subr.bf16.mxu0 %v9185_v52  ;;  %v5722_v47 = vpop.f32.mrf.mxu1 }
 0x3d7   :  { %v5723_v52 = vadd.f32 %v5722_v47, %v5680_v35 }
 0x3d8   :  { %v5724_v23 = vpop.f32.mrf.mxu1 }
 0x3d9   :  { %6618 = vmatpush1.bf16.msra.mxu0 %v9183_v57  ;;  %v5725_v57 = vadd.f32 %v5724_v23, %v5682_v49  ;;  %v9206_v23 = vld [vmem:[#allocation9 + $0x94] ss:$8 sps:$4 sm:$0xff]  }
 0x3da   :  { %6619 = vmatprep.subr.bf16.mxu0 %v9188_v21 }
 0x3dd   :  { %6620 = vmatpush2.bf16.msra.mxu0 %v9186_v13 }
 0x3de   :  { %6621 = vmatprep.subr.bf16.mxu0 %v9191_v58 }
 0x3e1   :  { %6622 = vmatpush2.bf16.msra.mxu0 %v9189_v24 }
 0x3e2   :  { %6623 = vmatprep.subr.bf16.mxu0 %v9194_v6 }
 0x3e5   :  { %6624 = vmatpush2.bf16.msra.mxu0 %v9192_v61 }
 0x3e6   :  { %6625 = vmatprep.subr.bf16.mxu0 %v9197_v34 }
 0x3e9   :  { %6626 = vmatpush2.bf16.msra.mxu0 %v9195_v44  ;;  %v9212_v44 = vld [vmem:[#allocation12 + $0x70] sm:$0xff]  }
 0x3ea   :  { %6627 = vmatprep.subr.bf16.mxu0 %v9200_v4  ;;  %v9215_v4 = vld [vmem:[#allocation12 + $0x28] sm:$0xff]  }
 0x3ed   :  { %6628 = vmatpush2.bf16.msra.mxu0 %v9198_v8 }
 0x3ee   :  { %6629 = vmatprep.subr.bf16.mxu0 %v9203_v0 }
 0x3f1   :  { %6630 = vmatpush2.bf16.msra.mxu0 %v9201_v17 }
 0x3f2   :  { %6631 = vmatprep.subr.bf16.mxu0 %v9206_v23  ;;  %v9226_v23 = vld [vmem:[#allocation15 + $0x38] sm:$0xff]  }
 0x3f5   :  { %6632 = vmatpush2.bf16.msra.mxu0 %v9204_v31 }
 0x3f6   :  { %6633 = vmatprep.subr.bf16.mxu0 %v9209_v32  ;;  %v9229_v32 = vld [vmem:[#allocation15 + $0x20] sm:$0xff]  }
 0x3f9   :  { %6634 = vmatpush2.bf16.msra.mxu0 %v9207_v50  ;;  %v9230_v50 = vld [vmem:[#allocation15 + $0x18] sm:$0xff]  }
 0x3fc   :  { %v5761_v56 = vpop.f32.mrf.mxu0 }
 0x3fd   :  { %v5804_v25 = vpop.f32.mrf.mxu1  ;;  %v5762_v48 = vadd.f32 %v5761_v56, %v5719_v9  ;;  %v9210_v56 = vld [vmem:[#allocation12 + $0x78] sm:$0xff]  }
 0x3fe   :  { %v5763_v38 = vpop.f32.mrf.mxu0  ;;  %7845 = vmatprep.subr.bf16.mxu1 %v9210_v56  ;;  %v9231_v56 = vld [vmem:[#allocation15 + $0x10] sm:$0xff]  }
 0x3ff   :  { %v5806_v39 = vpop.f32.mrf.mxu1  ;;  %v5764_v53 = vadd.f32 %v5763_v38, %v5721_v63  ;;  %v5805_v60 = vadd.f32 %v5804_v25, %v5762_v48  ;;  %v9211_v25 = vld [vmem:[#allocation12 + $0x38] sm:$0xff]  }
 0x400   :  { %v5765_v30 = vpop.f32.mrf.mxu0  ;;  %v9219_v38 = vld [vmem:[#allocation12 + $0x18] sm:$0xff]  }
 0x401   :  { %v5808_v36 = vpop.f32.mrf.mxu1  ;;  %v5766_v21 = vadd.f32 %v5765_v30, %v5723_v52  ;;  %v5807_v12 = vadd.f32 %v5806_v39, %v5764_v53 }
 0x402   :  { %v5767_v40 = vpop.f32.mrf.mxu0 }
 0x403   :  { %v5810_v46 = vpop.f32.mrf.mxu1  ;;  %v5768_v13 = vadd.f32 %v5767_v40, %v5725_v57  ;;  %v5809_v58 = vadd.f32 %v5808_v36, %v5766_v21 }
 0x405   :  { %v5811_v54 = vadd.f32 %v5810_v46, %v5768_v13 }
 0x43c   :  { %v5847_v7 = vpop.f32.mrf.mxu0 }
 0x43d   :  { %v5890_v10 = vpop.f32.mrf.mxu1  ;;  %v5848_v41 = vadd.f32 %v5847_v7, %v5805_v60 }
 0x43e   :  { %v5849_v11 = vpop.f32.mrf.mxu0 }
 0x43f   :  { %v5892_v20 = vpop.f32.mrf.mxu1  ;;  %v5850_v59 = vadd.f32 %v5849_v11, %v5807_v12  ;;  %v5891_v45 = vadd.f32 %v5890_v10, %v5848_v41  ;;  %v9223_v41 = vld [vmem:[#allocation12 + $0x8] sm:$0xff]  }
 0x440   :  { %v5851_v22 = vpop.f32.mrf.mxu0 }
 0x441   :  { %v5894_v5 = vpop.f32.mrf.mxu1  ;;  %v5852_v33 = vadd.f32 %v5851_v22, %v5809_v58  ;;  %v5893_v14 = vadd.f32 %v5892_v20, %v5850_v59  ;;  %v5901_v18 = vmax.f32 %v5891_v45, 0.0  ;;  %v9220_v20 = vld [vmem:[#allocation12 + $0x50] sm:$0xff]   ;;  %v9222_v59 = vld [vmem:[#allocation12 + $0x48] sm:$0xff]   ;;  %v9224_v22 = vld [vmem:[#allocation12 + $0x40] sm:$0xff]  }
 0x442   :  { %v5853_v24 = vpop.f32.mrf.mxu0  ;;  %v9221_v58 = vld [vmem:[#allocation12 + $0x10] sm:$0xff]  }
 0x443   :  { %v5895_v62 = vadd.f32 %v5894_v5, %v5852_v33  ;;  %v5854_v6 = vadd.f32 %v5853_v24, %v5811_v54  ;;  %v5896_v43 = vpop.f32.mrf.mxu1  ;;  %v5902_v2 = vmax.f32 %v5893_v14, 0.0  ;;  %v9225_v5 = vld [vmem:[#allocation12] sm:$0xff]   ;;  %v9463_v54 = vmov 0.0   ;;  %v6431_v33 = vld [vmem:[#allocation10] sm:$0x3] }
 0x444   :  { %v6440_v14 = vrot.slane %v6431_v33, %v9876_v28  ;;  %v9227_v28 = vld [vmem:[#allocation15 + $0x30] sm:$0xff]  }
 0x445   :  { %v5897_v47 = vadd.f32 %v5896_v43, %v5854_v6  ;;  %v5905_v37 = vmax.f32 %v5895_v62, 0.0  ;;  %v6436_v62 = vrot.slane %v6431_v33, %v9696_v19  ;;  %v9228_v19 = vld [vmem:[#allocation15 + $0x28] sm:$0xff]  }
 0x447   :  { %v5906_v61 = vmax.f32 %v5897_v47, 0.0  ;;  %v5909_v34 = vpack.c.bf16 %v5905_v37, %v5901_v18 }
 0x449   :  { %v5910_v3 = vpack.c.bf16 %v5906_v61, %v5902_v2 }
 0x44b   :  { %6382 = vmatprep.mubr.bf16.mxu1 %v5910_v3 }
 0x44c   :  { %6383 = vmatmul.mubr.bf16.vlgmr.msra.gmra.mxu1 %v5909_v34 }
 0x44d   :  { %7846 = vmatpush3.bf16.msra.mxu1 %v9211_v25  ;;  %v9232_v25 = vld [vmem:[#allocation15 + $0x8] sm:$0xff]  }
 0x44e   :  { %7847 = vmatprep.subr.bf16.mxu1 %v9212_v44  ;;  %v9233_v44 = vld [vmem:[#allocation15] sm:$0xff]  }
 0x451   :  { %7848 = vmatpush3.bf16.msra.mxu1 %v9213_v1 }
 0x452   :  { %7849 = vmatprep.subr.bf16.mxu1 %v9214_v26 }
 0x455   :  { %7850 = vmatpush3.bf16.msra.mxu1 %v9215_v4 }
 0x456   :  { %7851 = vmatprep.subr.bf16.mxu1 %v9216_v27  ;;  %v7819_v27 = vld [vmem:[#allocation13] ss:$0 sm:$0xff] }
 0x459   :  { %7852 = vmatpush3.bf16.msra.mxu1 %v9217_v15 }
 0x45a   :  { %7853 = vmatprep.subr.bf16.mxu1 %v9218_v55 }
 0x45d   :  { %7854 = vmatpush3.bf16.msra.mxu1 %v9219_v38 }
 0x45e   :  { %7855 = vmatprep.subr.bf16.mxu1 %v9220_v20 }
 0x461   :  { %7856 = vmatpush3.bf16.msra.mxu1 %v9221_v58 }
 0x462   :  { %7857 = vmatprep.subr.bf16.mxu1 %v9222_v59 }
 0x465   :  { %7858 = vmatpush3.bf16.msra.mxu1 %v9223_v41 }
 0x466   :  { %7859 = vmatprep.subr.bf16.mxu1 %v9224_v22 }
 0x469   :  { %7860 = vmatpush3.bf16.msra.mxu1 %v9225_v5 }
 0x46a   :  { %7876 = vmatprep.subr.bf16.mxu1 %v9463_v54 }
 0x47c   :  { %v6341_v39 = vpop.f32.mrf.mxu0 }
 0x47d   :  { %v6342_v9 = vadd.f32 %v6341_v39, %v5980_v29 }
 0x47e   :  { %v6343_v8 = vpop.f32.mrf.mxu0 }
 0x47f   :  { %v6344_v63 = vadd.f32 %v6343_v8, %v5984_v51 }
 0x480   :  { %v6345_v16 = vpop.f32.mrf.mxu0 }
 0x481   :  { %v6346_v49 = vadd.f32 %v6345_v16, %v5980_v29  ;;  %v7836_v29 = vld [vmem:[#allocation16] ss:$0 sm:$0xff] }
 0x482   :  { %v6347_v30 = vpop.f32.mrf.mxu0 }
 0x483   :  { %v6348_v53 = vadd.f32 %v6347_v30, %v5984_v51 }
 0x50c   :  { %v6384_v35 = vpop.f32.mrf.mxu1 }
 0x50d   :  { %v6385_v46 = vadd.f32 %v6384_v35, %v6342_v9 }
 0x50e   :  { %v6386_v36 = vpop.f32.mrf.mxu1 }
 0x50f   :  { %v6387_v48 = vadd.f32 %v6386_v36, %v6344_v63  ;;  %v6393_v13 = vmax.f32 %v6385_v46, 0.0 }
 0x510   :  { %v6388_v52 = vpop.f32.mrf.mxu1 }
 0x511   :  { %v6389_v40 = vadd.f32 %v6388_v52, %v6346_v49  ;;  %v6394_v10 = vmax.f32 %v6387_v48, 0.0 }
 0x512   :  { %v6390_v57 = vpop.f32.mrf.mxu1 }
 0x513   :  { %v6391_v21 = vadd.f32 %v6390_v57, %v6348_v53  ;;  %v6395_v7 = vmax.f32 %v6389_v40, 0.0 }
 0x515   :  { %v6396_v12 = vmax.f32 %v6391_v21, 0.0  ;;  %v6397_v11 = vpack.c.bf16 %v6395_v7, %v6393_v13 }
 0x517   :  { %v6398_v60 = vpack.c.bf16 %v6396_v12, %v6394_v10 }
 0x519   :  { %6635 = vmatprep.mubr.bf16.mxu0 %v6398_v60 }
 0x51a   :  { %6636 = vmatmul.mubr.bf16.vlgmr.msra.gmra.mxu0 %v6397_v11 }
 0x5da   :  { %v6637_v24 = vpop.f32.mrf.mxu0 }
 0x5db   :  { %v6638_v37 = vadd.f32 %v6637_v24, %v6436_v62 }
 0x5dc   :  { %v6639_v6 = vpop.f32.mrf.mxu0 }
 0x5dd   :  { %v6640_v43 = vadd.f32 %v6639_v6, %v6440_v14  ;;  %v6646_v0 = vmax.f32 %v6638_v37, 0.0 }
 0x5de   :  { %v6641_v45 = vpop.f32.mrf.mxu0 }
 0x5df   :  { %v6642_v47 = vadd.f32 %v6641_v45, %v6436_v62  ;;  %v6647_v3 = vmax.f32 %v6640_v43, 0.0 }
 0x5e0   :  { %v6643_v2 = vpop.f32.mrf.mxu0 }
 0x5e1   :  { %v6644_v61 = vadd.f32 %v6643_v2, %v6440_v14  ;;  %v6648_v18 = vmax.f32 %v6642_v47, 0.0 }
 0x5e3   :  { %v6649_v34 = vmax.f32 %v6644_v61, 0.0  ;;  %v6650_v31 = vpack.c.bf16 %v6648_v18, %v6646_v0 }
 0x5e5   :  { %v6651_v17 = vpack.c.bf16 %v6649_v34, %v6647_v3 }
 0x5e7   :  { %6819 = vmatprep.mubr.bf16.mxu1 %v6651_v17 }
 0x5e8   :  { %6820 = vmatmul.mubr.bf16.vlgmr.msra.gmra.mxu1 %v6650_v31 }
 0x5e9   :  { %7877 = vmatpush3.bf16.msra.mxu1 %v9226_v23  ;;  %7892 = vmatprep.mubr.msk.bf16.mxu1 %vm9464_vm0, %v9463_v54 }
 0x5ea   :  { %7878 = vmatprep.subr.bf16.mxu1 %v9463_v54 }
 0x5ed   :  { %7879 = vmatpush3.bf16.msra.mxu1 %v9227_v28 }
 0x5ee   :  { %7880 = vmatprep.subr.bf16.mxu1 %v9463_v54 }
 0x5f1   :  { %7881 = vmatpush3.bf16.msra.mxu1 %v9228_v19 }
 0x5f2   :  { %7882 = vmatprep.subr.bf16.mxu1 %v9463_v54 }
 0x5f5   :  { %7883 = vmatpush3.bf16.msra.mxu1 %v9229_v32 }
 0x5f6   :  { %7884 = vmatprep.subr.bf16.mxu1 %v9463_v54 }
 0x5f9   :  { %7885 = vmatpush3.bf16.msra.mxu1 %v9230_v50 }
 0x5fa   :  { %7886 = vmatprep.subr.bf16.mxu1 %v9463_v54 }
 0x5fd   :  { %7887 = vmatpush3.bf16.msra.mxu1 %v9231_v56 }
 0x5fe   :  { %7888 = vmatprep.subr.bf16.mxu1 %v9463_v54 }
 0x601   :  { %7889 = vmatpush3.bf16.msra.mxu1 %v9232_v25 }
 0x602   :  { %7890 = vmatprep.subr.bf16.mxu1 %v9463_v54 }
 0x605   :  { %7891 = vmatpush3.bf16.msra.mxu1 %v9233_v44 }
 0x6a8   :  { %v7861_v1 = vpop.f32.mrf.mxu1 }
 0x6aa   :  { %v7862_v26 = vpop.f32.mrf.mxu1 }
 0x6ab   :  { %v7863_v4 = vadd.f32 %v7862_v26, %v7861_v1 }
 0x6ac   :  { %v7864_v15 = vpop.f32.mrf.mxu1 }
 0x6ad   :  { %v6822_v38 = vadd.f32 %v7863_v4, %v7819_v27 }
 0x6ae   :  { %v7865_v55 = vpop.f32.mrf.mxu1 }
 0x6af   :  { %v7866_v39 = vadd.f32 %v7865_v55, %v7864_v15  ;;  %v6828_v42 = vmax.f32 %v6822_v38, 0.0 }
 0x6b1   :  { %v6825_v8 = vadd.f32 %v7866_v39, %v7819_v27 }
 0x6b3   :  { %v6829_v16 = vmax.f32 %v6825_v8, 0.0 }
 0x6b5   :  { %v6830_v51 = vpack.c.bf16 %v6829_v16, %v6828_v42 }
 0x6b7   :  { %7893 = vmatmul.mubr.bf16.vlgmr.msra.gmra.mxu1 %v6830_v51 }
 0x777   :  { %v6936_v35 = vpop.f32.mrf.mxu1 }
 0x778   :  { %v6937_v30 = vadd.f32 %v7836_v29, %v6936_v35 }
 0x779   :  { %v7894_v36 = vpop.f32.mrf.mxu1 }
 0x77a   :  { %6943 = vst [vmem:[%s9977_s11] sm:$0xff] %v6937_v30 }
 0x77b   :  { %v6939_v63 = vpop.f32.mrf.mxu1 }
 0x77c   :  { %v6940_v49 = vadd.f32 %v7836_v29, %v6939_v63 }
 0x77d   :  { %v7895_v9 = vpop.f32.mrf.mxu1 }
 0x77e   :  { %6944 = vst [vmem:[%s9977_s11 + $0x8] sm:$0xff] %v6940_v49 }
 0x77f   :  { %6949 = vsyncpa [#allocation3], 1 }
 0x780   :  { %6950 = vsyncpa [#allocation5], 1 }
 0x781   :  { %6951 = vsyncpa [#allocation8], 1 }
 0x782   :  { %6952 = vsyncpa [#allocation11], 1 }
 0x783   :  { %6953 = vsyncpa [#allocation14], 1 }
 0x784   :  { %6954 = vsyncpa [#allocation17], 1 }

</bundles_post_ra>
